<compile_context>
chip_gen: v6e
topology: v6e:2x2x1
jax: 0.10.0
libtpu: 0.0.40
codegen_flags: <defaults>
</compile_context>

<pallas_src>
import jax
import jax.numpy as jnp
from jax import lax
from jax.experimental import pallas as pl
from jax.experimental.pallas import tpu as pltpu  # noqa: F401  (TPU backend assumed)


# ----------------------------- fused forward kernel -----------------------------

def _classifier_kernel(x_ref, w1_ref, w2_ref, w3_ref, wfc_ref, b_ref, o_ref):
    """Entire classifier forward pass in one kernel invocation.

    x_ref  : (N, 200)         input (C_in = 1), spatial length on lanes
    w*_ref : (C_out, 3*C_in)  conv taps merged along the contraction dim,
                              column index = k*C_in + c  (tap k, in-channel c)
    wfc_ref: (6, 128, 25)     fc weight, [o, c, l] = W_fc[o, c*25 + l]
    b_ref  : (1, 6)           fc bias
    o_ref  : (N, 6)           logits
    """
    n = x_ref.shape[0]                       # batch size (layer-1 C_in == 1)
    a = x_ref[...]                           # activations: (n*c_in, l_in)
    c_in = 1
    l_in = x_ref.shape[1]

    for w_ref in (w1_ref, w2_ref, w3_ref):
        c_out = w_ref.shape[0]
        l_out = l_in // 2
        w = w_ref[...]                       # (c_out, 3*c_in)

        # ---- shift + stride-2 decimate: v_off[o][r, p] = a[r, 2p + (o-1)] ----
        # (zero outside [0, l_in) -> implements the conv's zero padding).
        # Done as matmuls against small in-kernel 0/1 selection matrices, so no
        # strided/shifted activation views are ever materialized in HBM.
        j_idx = lax.broadcasted_iota(jnp.int32, (l_in, l_out), 0)
        p_idx = lax.broadcasted_iota(jnp.int32, (l_in, l_out), 1)
        # keep each selection matrix <= ~256 KB of f32 to stay register friendly
        offset_chunks = ((-1,), (0,), (1,), (2,)) if l_in * l_out * 16 > 262144 \
            else ((-1, 0, 1, 2),)
        v_off = []
        for offsets in offset_chunks:
            blocks = [jnp.where(j_idx == 2 * p_idx + off, 1.0, 0.0) for off in offsets]
            sel = blocks[0] if len(blocks) == 1 else jnp.concatenate(blocks, axis=1)
            v = jnp.dot(a, sel, preferred_element_type=jnp.float32)
            for i in range(len(offsets)):
                v_off.append(v[:, i * l_out:(i + 1) * l_out])

        # ---- conv with the 3 taps merged into one K = 3*c_in contraction.
        # Columns of p_all: [sample 0 even | sample 0 odd | sample 1 even | ...],
        # so the whole batch and both pooling parities share ONE MXU matmul with
        # a lane dimension of 2*n*l_out (= 400 / 200 / 100).
        pieces = []
        for s in range(n):
            r0, r1 = s * c_in, (s + 1) * c_in
            pieces.append(jnp.concatenate(          # even outputs: taps at 2p-1, 2p, 2p+1
                [v_off[0][r0:r1, :], v_off[1][r0:r1, :], v_off[2][r0:r1, :]], axis=0))
            pieces.append(jnp.concatenate(          # odd outputs:  taps at 2p, 2p+1, 2p+2
                [v_off[1][r0:r1, :], v_off[2][r0:r1, :], v_off[3][r0:r1, :]], axis=0))
        p_all = jnp.concatenate(pieces, axis=1)     # (3*c_in, 2*n*l_out)
        y = jnp.dot(w, p_all, preferred_element_type=jnp.float32)  # (c_out, 2*n*l_out)

        # ---- fused ReLU + MaxPool1d(2):  maxpool(relu(y)) == relu(max(even, odd))
        outs = []
        for s in range(n):
            y_even = y[:, (2 * s) * l_out:(2 * s + 1) * l_out]
            y_odd = y[:, (2 * s + 1) * l_out:(2 * s + 2) * l_out]
            outs.append(jnp.maximum(jnp.maximum(y_even, y_odd), 0.0))
        a = jnp.concatenate(outs, axis=0)           # (n*c_out, l_out)
        c_in, l_in = c_out, l_out

    # ---- fully connected head: logits[s, o] = sum_{c,l} a_s[c, l]*W[o, c, l] + b[o]
    # The (c, l) layout of `a` matches torch's .view flatten order (c*25 + l), so
    # the contraction is an elementwise multiply + full reduction per class (the
    # ~38 KFLOP head is cheaper on the VPU than a re-layout + skinny MXU matmul).
    wfc = wfc_ref[...]                              # (n_cls, c_in, l_in)
    n_cls = wfc.shape[0]
    cols = []
    for o in range(n_cls):
        rows = []
        for s in range(n):
            t = a[s * c_in:(s + 1) * c_in, :] * wfc[o]
            rows.append(jnp.sum(jnp.sum(t, axis=1, keepdims=True), axis=0, keepdims=True))
        cols.append(jnp.concatenate(rows, axis=0))  # (n, 1)
    logits = jnp.concatenate(cols, axis=1) + b_ref[...]
    o_ref[...] = logits.astype(o_ref.dtype)


# ----------------------------------- wrapper -----------------------------------

def classifier_forward(x, params):
    """x: (N, 1, 200) f32 -> (N, 6) logits, computed by a single fused Pallas kernel."""
    w1, w2, w3, wfc, bfc = params
    n = x.shape[0]
    n_cls = wfc.shape[0]

    # Static weight re-layouts only (no activation-sized tensors built here).
    def merge_taps(w):                      # (C_out, C_in, 3) -> (C_out, 3*C_in)
        c_out, c_in, k = w.shape
        return jnp.transpose(w, (0, 2, 1)).reshape(c_out, k * c_in)

    x2d = x.reshape(n, x.shape[-1])                      # (N, 200)
    wfc3 = wfc.reshape(n_cls, w3.shape[0], -1)           # (6, 128, 25)
    b2 = bfc.reshape(1, n_cls)                           # (1, 6)

    return pl.pallas_call(
        _classifier_kernel,
        out_shape=jax.ShapeDtypeStruct((n, n_cls), jnp.float32),
        # no grid: single invocation, every operand lives fully in VMEM
    )(x2d, merge_taps(w1), merge_taps(w2), merge_taps(w3), wfc3, b2)


# ------------------------------ reference & setup ------------------------------

def _reference_forward(x, params):
    """Pure-JAX (XLA) reference matching the torch module, for a numeric check."""
    w1, w2, w3, wfc, bfc = params
    h = x
    for w in (w1, w2, w3):
        h = lax.conv_general_dilated(
            h, w, window_strides=(1,), padding=((1, 1),),
            dimension_numbers=("NCH", "OIH", "NCH"),
            precision=lax.Precision.HIGHEST)
        h = jnp.maximum(h, 0.0)
        nb, c, l = h.shape
        h = jnp.max(h.reshape(nb, c, l // 2, 2), axis=-1)
    flat = h.reshape(h.shape[0], -1)
    return jnp.dot(flat, wfc.T, precision=lax.Precision.HIGHEST) + bfc


def init_params(key):
    k1, k2, k3, k4, k5 = jax.random.split(key, 5)
    w1 = jax.random.normal(k1, (32, 1, 3), jnp.float32) * 0.20
    w2 = jax.random.normal(k2, (64, 32, 3), jnp.float32) * 0.08
    w3 = jax.random.normal(k3, (128, 64, 3), jnp.float32) * 0.05
    wfc = jax.random.normal(k4, (6, 128 * 25), jnp.float32) * 0.02
    bfc = jax.random.normal(k5, (6,), jnp.float32) * 0.02
    return (w1, w2, w3, wfc, bfc)


if __name__ == "__main__":
    key = jax.random.PRNGKey(0)
    kp, kx = jax.random.split(key)
    params = init_params(kp)

    # Input implied by fc(128*25 -> 6): (batch=2, channels=1, length=200)
    x = jax.random.normal(kx, (2, 1, 200), jnp.float32)

    out = jax.jit(classifier_forward)(x, params)
    out = jax.block_until_ready(out)

    assert out.shape == (2, 6), out.shape
    assert bool(jnp.all(jnp.isfinite(out)))

    ref = _reference_forward(x, params)
    assert bool(jnp.allclose(out, ref, rtol=2e-2, atol=2e-2)), (out, ref)

    print("KERNEL_OK")
</pallas_src>

<mosaic_0001>
module attributes {stable_mosaic.version = 11 : i64} {
  func.func @_classifier_kernel(%arg0: memref<2x200xf32, #tpu.memory_space<vmem>>, %arg1: memref<32x3xf32, #tpu.memory_space<vmem>>, %arg2: memref<64x96xf32, #tpu.memory_space<vmem>>, %arg3: memref<128x192xf32, #tpu.memory_space<vmem>>, %arg4: memref<6x128x25xf32, #tpu.memory_space<vmem>>, %arg5: memref<1x6xf32, #tpu.memory_space<vmem>>, %arg6: memref<2x6xf32, #tpu.memory_space<vmem>>) attributes {dimension_semantics = [], scalar_prefetch = 0 : i64, scratch_operands = 0 : i64, tpu.core_type = #tpu.core_type<tc>} {
    %c0 = arith.constant 0 : index
    %c0_0 = arith.constant 0 : index
    %0 = vector.load %arg0[%c0, %c0_0] : memref<2x200xf32, #tpu.memory_space<vmem>>, vector<2x200xf32>
    %c0_1 = arith.constant 0 : index
    %c0_2 = arith.constant 0 : index
    %1 = vector.load %arg1[%c0_1, %c0_2] : memref<32x3xf32, #tpu.memory_space<vmem>>, vector<32x3xf32>
    %2 = tpu.iota {dimensions = array<i32: 0>} : vector<200x100xi32>
    %3 = tpu.iota {dimensions = array<i32: 1>} : vector<200x100xi32>
    %c2_i32 = arith.constant 2 : i32
    %4 = vector.broadcast %c2_i32 : i32 to vector<200x100xi32>
    %5 = arith.muli %4, %3 : vector<200x100xi32>
    %c-1_i32 = arith.constant -1 : i32
    %6 = vector.broadcast %c-1_i32 : i32 to vector<200x100xi32>
    %7 = arith.addi %5, %6 : vector<200x100xi32>
    %8 = arith.cmpi eq, %2, %7 : vector<200x100xi32>
    %cst = arith.constant 1.000000e+00 : f32
    %cst_3 = arith.constant 0.000000e+00 : f32
    %9 = vector.broadcast %cst : f32 to vector<200x100xf32>
    %10 = vector.broadcast %cst_3 : f32 to vector<200x100xf32>
    %11 = arith.select %8, %9, %10 : vector<200x100xi1>, vector<200x100xf32>
    %cst_4 = arith.constant dense<0.000000e+00> : vector<2x100xf32>
    %12 = tpu.matmul %0, %11, %cst_4 {dimension_numbers = #tpu.dot_dimension_numbers<[1], [0], [0], [1], [0, 0, 1, 1], [], []>} : vector<2x200xf32>, vector<200x100xf32>, vector<2x100xf32> -> vector<2x100xf32>
    %c2_i32_5 = arith.constant 2 : i32
    %13 = vector.broadcast %c2_i32_5 : i32 to vector<200x100xi32>
    %14 = arith.muli %13, %3 : vector<200x100xi32>
    %c0_i32 = arith.constant 0 : i32
    %15 = vector.broadcast %c0_i32 : i32 to vector<200x100xi32>
    %16 = arith.addi %14, %15 : vector<200x100xi32>
    %17 = arith.cmpi eq, %2, %16 : vector<200x100xi32>
    %cst_6 = arith.constant 1.000000e+00 : f32
    %cst_7 = arith.constant 0.000000e+00 : f32
    %18 = vector.broadcast %cst_6 : f32 to vector<200x100xf32>
    %19 = vector.broadcast %cst_7 : f32 to vector<200x100xf32>
    %20 = arith.select %17, %18, %19 : vector<200x100xi1>, vector<200x100xf32>
    %cst_8 = arith.constant dense<0.000000e+00> : vector<2x100xf32>
    %21 = tpu.matmul %0, %20, %cst_8 {dimension_numbers = #tpu.dot_dimension_numbers<[1], [0], [0], [1], [0, 0, 1, 1], [], []>} : vector<2x200xf32>, vector<200x100xf32>, vector<2x100xf32> -> vector<2x100xf32>
    %c2_i32_9 = arith.constant 2 : i32
    %22 = vector.broadcast %c2_i32_9 : i32 to vector<200x100xi32>
    %23 = arith.muli %22, %3 : vector<200x100xi32>
    %c1_i32 = arith.constant 1 : i32
    %24 = vector.broadcast %c1_i32 : i32 to vector<200x100xi32>
    %25 = arith.addi %23, %24 : vector<200x100xi32>
    %26 = arith.cmpi eq, %2, %25 : vector<200x100xi32>
    %cst_10 = arith.constant 1.000000e+00 : f32
    %cst_11 = arith.constant 0.000000e+00 : f32
    %27 = vector.broadcast %cst_10 : f32 to vector<200x100xf32>
    %28 = vector.broadcast %cst_11 : f32 to vector<200x100xf32>
    %29 = arith.select %26, %27, %28 : vector<200x100xi1>, vector<200x100xf32>
    %cst_12 = arith.constant dense<0.000000e+00> : vector<2x100xf32>
    %30 = tpu.matmul %0, %29, %cst_12 {dimension_numbers = #tpu.dot_dimension_numbers<[1], [0], [0], [1], [0, 0, 1, 1], [], []>} : vector<2x200xf32>, vector<200x100xf32>, vector<2x100xf32> -> vector<2x100xf32>
    %c2_i32_13 = arith.constant 2 : i32
    %31 = vector.broadcast %c2_i32_13 : i32 to vector<200x100xi32>
    %32 = arith.muli %31, %3 : vector<200x100xi32>
    %c2_i32_14 = arith.constant 2 : i32
    %33 = vector.broadcast %c2_i32_14 : i32 to vector<200x100xi32>
    %34 = arith.addi %32, %33 : vector<200x100xi32>
    %35 = arith.cmpi eq, %2, %34 : vector<200x100xi32>
    %cst_15 = arith.constant 1.000000e+00 : f32
    %cst_16 = arith.constant 0.000000e+00 : f32
    %36 = vector.broadcast %cst_15 : f32 to vector<200x100xf32>
    %37 = vector.broadcast %cst_16 : f32 to vector<200x100xf32>
    %38 = arith.select %35, %36, %37 : vector<200x100xi1>, vector<200x100xf32>
    %cst_17 = arith.constant dense<0.000000e+00> : vector<2x100xf32>
    %39 = tpu.matmul %0, %38, %cst_17 {dimension_numbers = #tpu.dot_dimension_numbers<[1], [0], [0], [1], [0, 0, 1, 1], [], []>} : vector<2x200xf32>, vector<200x100xf32>, vector<2x100xf32> -> vector<2x100xf32>
    %40 = vector.extract_strided_slice %12 {offsets = [0, 0], sizes = [1, 100], strides = [1, 1]} : vector<2x100xf32> to vector<1x100xf32>
    %41 = vector.extract_strided_slice %21 {offsets = [0, 0], sizes = [1, 100], strides = [1, 1]} : vector<2x100xf32> to vector<1x100xf32>
    %42 = vector.extract_strided_slice %30 {offsets = [0, 0], sizes = [1, 100], strides = [1, 1]} : vector<2x100xf32> to vector<1x100xf32>
    %43 = tpu.concatenate %40, %41, %42 in 0 : vector<1x100xf32>, vector<1x100xf32>, vector<1x100xf32> -> vector<3x100xf32>
    %44 = vector.extract_strided_slice %21 {offsets = [0, 0], sizes = [1, 100], strides = [1, 1]} : vector<2x100xf32> to vector<1x100xf32>
    %45 = vector.extract_strided_slice %30 {offsets = [0, 0], sizes = [1, 100], strides = [1, 1]} : vector<2x100xf32> to vector<1x100xf32>
    %46 = vector.extract_strided_slice %39 {offsets = [0, 0], sizes = [1, 100], strides = [1, 1]} : vector<2x100xf32> to vector<1x100xf32>
    %47 = tpu.concatenate %44, %45, %46 in 0 : vector<1x100xf32>, vector<1x100xf32>, vector<1x100xf32> -> vector<3x100xf32>
    %48 = vector.extract_strided_slice %12 {offsets = [1, 0], sizes = [1, 100], strides = [1, 1]} : vector<2x100xf32> to vector<1x100xf32>
    %49 = vector.extract_strided_slice %21 {offsets = [1, 0], sizes = [1, 100], strides = [1, 1]} : vector<2x100xf32> to vector<1x100xf32>
    %50 = vector.extract_strided_slice %30 {offsets = [1, 0], sizes = [1, 100], strides = [1, 1]} : vector<2x100xf32> to vector<1x100xf32>
    %51 = tpu.concatenate %48, %49, %50 in 0 : vector<1x100xf32>, vector<1x100xf32>, vector<1x100xf32> -> vector<3x100xf32>
    %52 = vector.extract_strided_slice %21 {offsets = [1, 0], sizes = [1, 100], strides = [1, 1]} : vector<2x100xf32> to vector<1x100xf32>
    %53 = vector.extract_strided_slice %30 {offsets = [1, 0], sizes = [1, 100], strides = [1, 1]} : vector<2x100xf32> to vector<1x100xf32>
    %54 = vector.extract_strided_slice %39 {offsets = [1, 0], sizes = [1, 100], strides = [1, 1]} : vector<2x100xf32> to vector<1x100xf32>
    %55 = tpu.concatenate %52, %53, %54 in 0 : vector<1x100xf32>, vector<1x100xf32>, vector<1x100xf32> -> vector<3x100xf32>
    %56 = tpu.concatenate %43, %47, %51, %55 in 1 : vector<3x100xf32>, vector<3x100xf32>, vector<3x100xf32>, vector<3x100xf32> -> vector<3x400xf32>
    %cst_18 = arith.constant dense<0.000000e+00> : vector<32x400xf32>
    %57 = tpu.matmul %1, %56, %cst_18 {dimension_numbers = #tpu.dot_dimension_numbers<[1], [0], [0], [1], [0, 0, 1, 1], [], []>} : vector<32x3xf32>, vector<3x400xf32>, vector<32x400xf32> -> vector<32x400xf32>
    %58 = vector.extract_strided_slice %57 {offsets = [0, 0], sizes = [32, 100], strides = [1, 1]} : vector<32x400xf32> to vector<32x100xf32>
    %59 = vector.extract_strided_slice %57 {offsets = [0, 100], sizes = [32, 100], strides = [1, 1]} : vector<32x400xf32> to vector<32x100xf32>
    %60 = arith.maximumf %58, %59 : vector<32x100xf32>
    %cst_19 = arith.constant 0.000000e+00 : f32
    %61 = vector.broadcast %cst_19 : f32 to vector<32x100xf32>
    %62 = arith.maximumf %60, %61 : vector<32x100xf32>
    %63 = vector.extract_strided_slice %57 {offsets = [0, 200], sizes = [32, 100], strides = [1, 1]} : vector<32x400xf32> to vector<32x100xf32>
    %64 = vector.extract_strided_slice %57 {offsets = [0, 300], sizes = [32, 100], strides = [1, 1]} : vector<32x400xf32> to vector<32x100xf32>
    %65 = arith.maximumf %63, %64 : vector<32x100xf32>
    %cst_20 = arith.constant 0.000000e+00 : f32
    %66 = vector.broadcast %cst_20 : f32 to vector<32x100xf32>
    %67 = arith.maximumf %65, %66 : vector<32x100xf32>
    %68 = tpu.concatenate %62, %67 in 0 : vector<32x100xf32>, vector<32x100xf32> -> vector<64x100xf32>
    %c0_21 = arith.constant 0 : index
    %c0_22 = arith.constant 0 : index
    %69 = vector.load %arg2[%c0_21, %c0_22] : memref<64x96xf32, #tpu.memory_space<vmem>>, vector<64x96xf32>
    %70 = tpu.iota {dimensions = array<i32: 0>} : vector<100x50xi32>
    %71 = tpu.iota {dimensions = array<i32: 1>} : vector<100x50xi32>
    %c2_i32_23 = arith.constant 2 : i32
    %72 = vector.broadcast %c2_i32_23 : i32 to vector<100x50xi32>
    %73 = arith.muli %72, %71 : vector<100x50xi32>
    %c-1_i32_24 = arith.constant -1 : i32
    %74 = vector.broadcast %c-1_i32_24 : i32 to vector<100x50xi32>
    %75 = arith.addi %73, %74 : vector<100x50xi32>
    %76 = arith.cmpi eq, %70, %75 : vector<100x50xi32>
    %cst_25 = arith.constant 1.000000e+00 : f32
    %cst_26 = arith.constant 0.000000e+00 : f32
    %77 = vector.broadcast %cst_25 : f32 to vector<100x50xf32>
    %78 = vector.broadcast %cst_26 : f32 to vector<100x50xf32>
    %79 = arith.select %76, %77, %78 : vector<100x50xi1>, vector<100x50xf32>
    %c2_i32_27 = arith.constant 2 : i32
    %80 = vector.broadcast %c2_i32_27 : i32 to vector<100x50xi32>
    %81 = arith.muli %80, %71 : vector<100x50xi32>
    %c0_i32_28 = arith.constant 0 : i32
    %82 = vector.broadcast %c0_i32_28 : i32 to vector<100x50xi32>
    %83 = arith.addi %81, %82 : vector<100x50xi32>
    %84 = arith.cmpi eq, %70, %83 : vector<100x50xi32>
    %cst_29 = arith.constant 1.000000e+00 : f32
    %cst_30 = arith.constant 0.000000e+00 : f32
    %85 = vector.broadcast %cst_29 : f32 to vector<100x50xf32>
    %86 = vector.broadcast %cst_30 : f32 to vector<100x50xf32>
    %87 = arith.select %84, %85, %86 : vector<100x50xi1>, vector<100x50xf32>
    %c2_i32_31 = arith.constant 2 : i32
    %88 = vector.broadcast %c2_i32_31 : i32 to vector<100x50xi32>
    %89 = arith.muli %88, %71 : vector<100x50xi32>
    %c1_i32_32 = arith.constant 1 : i32
    %90 = vector.broadcast %c1_i32_32 : i32 to vector<100x50xi32>
    %91 = arith.addi %89, %90 : vector<100x50xi32>
    %92 = arith.cmpi eq, %70, %91 : vector<100x50xi32>
    %cst_33 = arith.constant 1.000000e+00 : f32
    %cst_34 = arith.constant 0.000000e+00 : f32
    %93 = vector.broadcast %cst_33 : f32 to vector<100x50xf32>
    %94 = vector.broadcast %cst_34 : f32 to vector<100x50xf32>
    %95 = arith.select %92, %93, %94 : vector<100x50xi1>, vector<100x50xf32>
    %c2_i32_35 = arith.constant 2 : i32
    %96 = vector.broadcast %c2_i32_35 : i32 to vector<100x50xi32>
    %97 = arith.muli %96, %71 : vector<100x50xi32>
    %c2_i32_36 = arith.constant 2 : i32
    %98 = vector.broadcast %c2_i32_36 : i32 to vector<100x50xi32>
    %99 = arith.addi %97, %98 : vector<100x50xi32>
    %100 = arith.cmpi eq, %70, %99 : vector<100x50xi32>
    %cst_37 = arith.constant 1.000000e+00 : f32
    %cst_38 = arith.constant 0.000000e+00 : f32
    %101 = vector.broadcast %cst_37 : f32 to vector<100x50xf32>
    %102 = vector.broadcast %cst_38 : f32 to vector<100x50xf32>
    %103 = arith.select %100, %101, %102 : vector<100x50xi1>, vector<100x50xf32>
    %104 = tpu.concatenate %79, %87, %95, %103 in 1 : vector<100x50xf32>, vector<100x50xf32>, vector<100x50xf32>, vector<100x50xf32> -> vector<100x200xf32>
    %cst_39 = arith.constant dense<0.000000e+00> : vector<64x200xf32>
    %105 = tpu.matmul %68, %104, %cst_39 {dimension_numbers = #tpu.dot_dimension_numbers<[1], [0], [0], [1], [0, 0, 1, 1], [], []>} : vector<64x100xf32>, vector<100x200xf32>, vector<64x200xf32> -> vector<64x200xf32>
    %106 = vector.extract_strided_slice %105 {offsets = [0, 0], sizes = [64, 50], strides = [1, 1]} : vector<64x200xf32> to vector<64x50xf32>
    %107 = vector.extract_strided_slice %105 {offsets = [0, 50], sizes = [64, 50], strides = [1, 1]} : vector<64x200xf32> to vector<64x50xf32>
    %108 = vector.extract_strided_slice %105 {offsets = [0, 100], sizes = [64, 50], strides = [1, 1]} : vector<64x200xf32> to vector<64x50xf32>
    %109 = vector.extract_strided_slice %105 {offsets = [0, 150], sizes = [64, 50], strides = [1, 1]} : vector<64x200xf32> to vector<64x50xf32>
    %110 = vector.extract_strided_slice %106 {offsets = [0, 0], sizes = [32, 50], strides = [1, 1]} : vector<64x50xf32> to vector<32x50xf32>
    %111 = vector.extract_strided_slice %107 {offsets = [0, 0], sizes = [32, 50], strides = [1, 1]} : vector<64x50xf32> to vector<32x50xf32>
    %112 = vector.extract_strided_slice %108 {offsets = [0, 0], sizes = [32, 50], strides = [1, 1]} : vector<64x50xf32> to vector<32x50xf32>
    %113 = tpu.concatenate %110, %111, %112 in 0 : vector<32x50xf32>, vector<32x50xf32>, vector<32x50xf32> -> vector<96x50xf32>
    %114 = vector.extract_strided_slice %107 {offsets = [0, 0], sizes = [32, 50], strides = [1, 1]} : vector<64x50xf32> to vector<32x50xf32>
    %115 = vector.extract_strided_slice %108 {offsets = [0, 0], sizes = [32, 50], strides = [1, 1]} : vector<64x50xf32> to vector<32x50xf32>
    %116 = vector.extract_strided_slice %109 {offsets = [0, 0], sizes = [32, 50], strides = [1, 1]} : vector<64x50xf32> to vector<32x50xf32>
    %117 = tpu.concatenate %114, %115, %116 in 0 : vector<32x50xf32>, vector<32x50xf32>, vector<32x50xf32> -> vector<96x50xf32>
    %118 = vector.extract_strided_slice %106 {offsets = [32, 0], sizes = [32, 50], strides = [1, 1]} : vector<64x50xf32> to vector<32x50xf32>
    %119 = vector.extract_strided_slice %107 {offsets = [32, 0], sizes = [32, 50], strides = [1, 1]} : vector<64x50xf32> to vector<32x50xf32>
    %120 = vector.extract_strided_slice %108 {offsets = [32, 0], sizes = [32, 50], strides = [1, 1]} : vector<64x50xf32> to vector<32x50xf32>
    %121 = tpu.concatenate %118, %119, %120 in 0 : vector<32x50xf32>, vector<32x50xf32>, vector<32x50xf32> -> vector<96x50xf32>
    %122 = vector.extract_strided_slice %107 {offsets = [32, 0], sizes = [32, 50], strides = [1, 1]} : vector<64x50xf32> to vector<32x50xf32>
    %123 = vector.extract_strided_slice %108 {offsets = [32, 0], sizes = [32, 50], strides = [1, 1]} : vector<64x50xf32> to vector<32x50xf32>
    %124 = vector.extract_strided_slice %109 {offsets = [32, 0], sizes = [32, 50], strides = [1, 1]} : vector<64x50xf32> to vector<32x50xf32>
    %125 = tpu.concatenate %122, %123, %124 in 0 : vector<32x50xf32>, vector<32x50xf32>, vector<32x50xf32> -> vector<96x50xf32>
    %126 = tpu.concatenate %113, %117, %121, %125 in 1 : vector<96x50xf32>, vector<96x50xf32>, vector<96x50xf32>, vector<96x50xf32> -> vector<96x200xf32>
    %cst_40 = arith.constant dense<0.000000e+00> : vector<64x200xf32>
    %127 = tpu.matmul %69, %126, %cst_40 {dimension_numbers = #tpu.dot_dimension_numbers<[1], [0], [0], [1], [0, 0, 1, 1], [], []>} : vector<64x96xf32>, vector<96x200xf32>, vector<64x200xf32> -> vector<64x200xf32>
    %128 = vector.extract_strided_slice %127 {offsets = [0, 0], sizes = [64, 50], strides = [1, 1]} : vector<64x200xf32> to vector<64x50xf32>
    %129 = vector.extract_strided_slice %127 {offsets = [0, 50], sizes = [64, 50], strides = [1, 1]} : vector<64x200xf32> to vector<64x50xf32>
    %130 = arith.maximumf %128, %129 : vector<64x50xf32>
    %cst_41 = arith.constant 0.000000e+00 : f32
    %131 = vector.broadcast %cst_41 : f32 to vector<64x50xf32>
    %132 = arith.maximumf %130, %131 : vector<64x50xf32>
    %133 = vector.extract_strided_slice %127 {offsets = [0, 100], sizes = [64, 50], strides = [1, 1]} : vector<64x200xf32> to vector<64x50xf32>
    %134 = vector.extract_strided_slice %127 {offsets = [0, 150], sizes = [64, 50], strides = [1, 1]} : vector<64x200xf32> to vector<64x50xf32>
    %135 = arith.maximumf %133, %134 : vector<64x50xf32>
    %cst_42 = arith.constant 0.000000e+00 : f32
    %136 = vector.broadcast %cst_42 : f32 to vector<64x50xf32>
    %137 = arith.maximumf %135, %136 : vector<64x50xf32>
    %138 = tpu.concatenate %132, %137 in 0 : vector<64x50xf32>, vector<64x50xf32> -> vector<128x50xf32>
    %c0_43 = arith.constant 0 : index
    %c0_44 = arith.constant 0 : index
    %139 = vector.load %arg3[%c0_43, %c0_44] : memref<128x192xf32, #tpu.memory_space<vmem>>, vector<128x192xf32>
    %140 = tpu.iota {dimensions = array<i32: 0>} : vector<50x25xi32>
    %141 = tpu.iota {dimensions = array<i32: 1>} : vector<50x25xi32>
    %c2_i32_45 = arith.constant 2 : i32
    %142 = vector.broadcast %c2_i32_45 : i32 to vector<50x25xi32>
    %143 = arith.muli %142, %141 : vector<50x25xi32>
    %c-1_i32_46 = arith.constant -1 : i32
    %144 = vector.broadcast %c-1_i32_46 : i32 to vector<50x25xi32>
    %145 = arith.addi %143, %144 : vector<50x25xi32>
    %146 = arith.cmpi eq, %140, %145 : vector<50x25xi32>
    %cst_47 = arith.constant 1.000000e+00 : f32
    %cst_48 = arith.constant 0.000000e+00 : f32
    %147 = vector.broadcast %cst_47 : f32 to vector<50x25xf32>
    %148 = vector.broadcast %cst_48 : f32 to vector<50x25xf32>
    %149 = arith.select %146, %147, %148 : vector<50x25xi1>, vector<50x25xf32>
    %c2_i32_49 = arith.constant 2 : i32
    %150 = vector.broadcast %c2_i32_49 : i32 to vector<50x25xi32>
    %151 = arith.muli %150, %141 : vector<50x25xi32>
    %c0_i32_50 = arith.constant 0 : i32
    %152 = vector.broadcast %c0_i32_50 : i32 to vector<50x25xi32>
    %153 = arith.addi %151, %152 : vector<50x25xi32>
    %154 = arith.cmpi eq, %140, %153 : vector<50x25xi32>
    %cst_51 = arith.constant 1.000000e+00 : f32
    %cst_52 = arith.constant 0.000000e+00 : f32
    %155 = vector.broadcast %cst_51 : f32 to vector<50x25xf32>
    %156 = vector.broadcast %cst_52 : f32 to vector<50x25xf32>
    %157 = arith.select %154, %155, %156 : vector<50x25xi1>, vector<50x25xf32>
    %c2_i32_53 = arith.constant 2 : i32
    %158 = vector.broadcast %c2_i32_53 : i32 to vector<50x25xi32>
    %159 = arith.muli %158, %141 : vector<50x25xi32>
    %c1_i32_54 = arith.constant 1 : i32
    %160 = vector.broadcast %c1_i32_54 : i32 to vector<50x25xi32>
    %161 = arith.addi %159, %160 : vector<50x25xi32>
    %162 = arith.cmpi eq, %140, %161 : vector<50x25xi32>
    %cst_55 = arith.constant 1.000000e+00 : f32
    %cst_56 = arith.constant 0.000000e+00 : f32
    %163 = vector.broadcast %cst_55 : f32 to vector<50x25xf32>
    %164 = vector.broadcast %cst_56 : f32 to vector<50x25xf32>
    %165 = arith.select %162, %163, %164 : vector<50x25xi1>, vector<50x25xf32>
    %c2_i32_57 = arith.constant 2 : i32
    %166 = vector.broadcast %c2_i32_57 : i32 to vector<50x25xi32>
    %167 = arith.muli %166, %141 : vector<50x25xi32>
    %c2_i32_58 = arith.constant 2 : i32
    %168 = vector.broadcast %c2_i32_58 : i32 to vector<50x25xi32>
    %169 = arith.addi %167, %168 : vector<50x25xi32>
    %170 = arith.cmpi eq, %140, %169 : vector<50x25xi32>
    %cst_59 = arith.constant 1.000000e+00 : f32
    %cst_60 = arith.constant 0.000000e+00 : f32
    %171 = vector.broadcast %cst_59 : f32 to vector<50x25xf32>
    %172 = vector.broadcast %cst_60 : f32 to vector<50x25xf32>
    %173 = arith.select %170, %171, %172 : vector<50x25xi1>, vector<50x25xf32>
    %174 = tpu.concatenate %149, %157, %165, %173 in 1 : vector<50x25xf32>, vector<50x25xf32>, vector<50x25xf32>, vector<50x25xf32> -> vector<50x100xf32>
    %cst_61 = arith.constant dense<0.000000e+00> : vector<128x100xf32>
    %175 = tpu.matmul %138, %174, %cst_61 {dimension_numbers = #tpu.dot_dimension_numbers<[1], [0], [0], [1], [0, 0, 1, 1], [], []>} : vector<128x50xf32>, vector<50x100xf32>, vector<128x100xf32> -> vector<128x100xf32>
    %176 = vector.extract_strided_slice %175 {offsets = [0, 0], sizes = [128, 25], strides = [1, 1]} : vector<128x100xf32> to vector<128x25xf32>
    %177 = vector.extract_strided_slice %175 {offsets = [0, 25], sizes = [128, 25], strides = [1, 1]} : vector<128x100xf32> to vector<128x25xf32>
    %178 = vector.extract_strided_slice %175 {offsets = [0, 50], sizes = [128, 25], strides = [1, 1]} : vector<128x100xf32> to vector<128x25xf32>
    %179 = vector.extract_strided_slice %175 {offsets = [0, 75], sizes = [128, 25], strides = [1, 1]} : vector<128x100xf32> to vector<128x25xf32>
    %180 = vector.extract_strided_slice %176 {offsets = [0, 0], sizes = [64, 25], strides = [1, 1]} : vector<128x25xf32> to vector<64x25xf32>
    %181 = vector.extract_strided_slice %177 {offsets = [0, 0], sizes = [64, 25], strides = [1, 1]} : vector<128x25xf32> to vector<64x25xf32>
    %182 = vector.extract_strided_slice %178 {offsets = [0, 0], sizes = [64, 25], strides = [1, 1]} : vector<128x25xf32> to vector<64x25xf32>
    %183 = tpu.concatenate %180, %181, %182 in 0 : vector<64x25xf32>, vector<64x25xf32>, vector<64x25xf32> -> vector<192x25xf32>
    %184 = vector.extract_strided_slice %177 {offsets = [0, 0], sizes = [64, 25], strides = [1, 1]} : vector<128x25xf32> to vector<64x25xf32>
    %185 = vector.extract_strided_slice %178 {offsets = [0, 0], sizes = [64, 25], strides = [1, 1]} : vector<128x25xf32> to vector<64x25xf32>
    %186 = vector.extract_strided_slice %179 {offsets = [0, 0], sizes = [64, 25], strides = [1, 1]} : vector<128x25xf32> to vector<64x25xf32>
    %187 = tpu.concatenate %184, %185, %186 in 0 : vector<64x25xf32>, vector<64x25xf32>, vector<64x25xf32> -> vector<192x25xf32>
    %188 = vector.extract_strided_slice %176 {offsets = [64, 0], sizes = [64, 25], strides = [1, 1]} : vector<128x25xf32> to vector<64x25xf32>
    %189 = vector.extract_strided_slice %177 {offsets = [64, 0], sizes = [64, 25], strides = [1, 1]} : vector<128x25xf32> to vector<64x25xf32>
    %190 = vector.extract_strided_slice %178 {offsets = [64, 0], sizes = [64, 25], strides = [1, 1]} : vector<128x25xf32> to vector<64x25xf32>
    %191 = tpu.concatenate %188, %189, %190 in 0 : vector<64x25xf32>, vector<64x25xf32>, vector<64x25xf32> -> vector<192x25xf32>
    %192 = vector.extract_strided_slice %177 {offsets = [64, 0], sizes = [64, 25], strides = [1, 1]} : vector<128x25xf32> to vector<64x25xf32>
    %193 = vector.extract_strided_slice %178 {offsets = [64, 0], sizes = [64, 25], strides = [1, 1]} : vector<128x25xf32> to vector<64x25xf32>
    %194 = vector.extract_strided_slice %179 {offsets = [64, 0], sizes = [64, 25], strides = [1, 1]} : vector<128x25xf32> to vector<64x25xf32>
    %195 = tpu.concatenate %192, %193, %194 in 0 : vector<64x25xf32>, vector<64x25xf32>, vector<64x25xf32> -> vector<192x25xf32>
    %196 = tpu.concatenate %183, %187, %191, %195 in 1 : vector<192x25xf32>, vector<192x25xf32>, vector<192x25xf32>, vector<192x25xf32> -> vector<192x100xf32>
    %cst_62 = arith.constant dense<0.000000e+00> : vector<128x100xf32>
    %197 = tpu.matmul %139, %196, %cst_62 {dimension_numbers = #tpu.dot_dimension_numbers<[1], [0], [0], [1], [0, 0, 1, 1], [], []>} : vector<128x192xf32>, vector<192x100xf32>, vector<128x100xf32> -> vector<128x100xf32>
    %198 = vector.extract_strided_slice %197 {offsets = [0, 0], sizes = [128, 25], strides = [1, 1]} : vector<128x100xf32> to vector<128x25xf32>
    %199 = vector.extract_strided_slice %197 {offsets = [0, 25], sizes = [128, 25], strides = [1, 1]} : vector<128x100xf32> to vector<128x25xf32>
    %200 = arith.maximumf %198, %199 : vector<128x25xf32>
    %cst_63 = arith.constant 0.000000e+00 : f32
    %201 = vector.broadcast %cst_63 : f32 to vector<128x25xf32>
    %202 = arith.maximumf %200, %201 : vector<128x25xf32>
    %203 = vector.extract_strided_slice %197 {offsets = [0, 50], sizes = [128, 25], strides = [1, 1]} : vector<128x100xf32> to vector<128x25xf32>
    %204 = vector.extract_strided_slice %197 {offsets = [0, 75], sizes = [128, 25], strides = [1, 1]} : vector<128x100xf32> to vector<128x25xf32>
    %205 = arith.maximumf %203, %204 : vector<128x25xf32>
    %cst_64 = arith.constant 0.000000e+00 : f32
    %206 = vector.broadcast %cst_64 : f32 to vector<128x25xf32>
    %207 = arith.maximumf %205, %206 : vector<128x25xf32>
    %208 = tpu.concatenate %202, %207 in 0 : vector<128x25xf32>, vector<128x25xf32> -> vector<256x25xf32>
    %c0_65 = arith.constant 0 : index
    %c0_66 = arith.constant 0 : index
    %c0_67 = arith.constant 0 : index
    %209 = vector.load %arg4[%c0_65, %c0_66, %c0_67] : memref<6x128x25xf32, #tpu.memory_space<vmem>>, vector<6x128x25xf32>
    %210 = vector.extract_strided_slice %208 {offsets = [0, 0], sizes = [128, 25], strides = [1, 1]} : vector<256x25xf32> to vector<128x25xf32>
    %211 = vector.extract_strided_slice %209 {offsets = [0, 0, 0], sizes = [1, 128, 25], strides = [1, 1, 1]} : vector<6x128x25xf32> to vector<1x128x25xf32>
    %212 = vector.shape_cast %211 : vector<1x128x25xf32> to vector<128x25xf32>
    %213 = arith.mulf %210, %212 : vector<128x25xf32>
    %cst_68 = arith.constant dense<0.000000e+00> : vector<128xf32>
    %214 = vector.multi_reduction <add>, %213, %cst_68 [1] : vector<128x25xf32> to vector<128xf32>
    %215 = vector.shape_cast %214 : vector<128xf32> to vector<128x1xf32>
    %cst_69 = arith.constant dense<0.000000e+00> : vector<1xf32>
    %216 = vector.multi_reduction <add>, %215, %cst_69 [0] : vector<128x1xf32> to vector<1xf32>
    %217 = vector.shape_cast %216 : vector<1xf32> to vector<1x1xf32>
    %218 = vector.extract_strided_slice %208 {offsets = [128, 0], sizes = [128, 25], strides = [1, 1]} : vector<256x25xf32> to vector<128x25xf32>
    %219 = vector.extract_strided_slice %209 {offsets = [0, 0, 0], sizes = [1, 128, 25], strides = [1, 1, 1]} : vector<6x128x25xf32> to vector<1x128x25xf32>
    %220 = vector.shape_cast %219 : vector<1x128x25xf32> to vector<128x25xf32>
    %221 = arith.mulf %218, %220 : vector<128x25xf32>
    %cst_70 = arith.constant dense<0.000000e+00> : vector<128xf32>
    %222 = vector.multi_reduction <add>, %221, %cst_70 [1] : vector<128x25xf32> to vector<128xf32>
    %223 = vector.shape_cast %222 : vector<128xf32> to vector<128x1xf32>
    %cst_71 = arith.constant dense<0.000000e+00> : vector<1xf32>
    %224 = vector.multi_reduction <add>, %223, %cst_71 [0] : vector<128x1xf32> to vector<1xf32>
    %225 = vector.shape_cast %224 : vector<1xf32> to vector<1x1xf32>
    %226 = tpu.concatenate %217, %225 in 0 : vector<1x1xf32>, vector<1x1xf32> -> vector<2x1xf32>
    %227 = vector.extract_strided_slice %208 {offsets = [0, 0], sizes = [128, 25], strides = [1, 1]} : vector<256x25xf32> to vector<128x25xf32>
    %228 = vector.extract_strided_slice %209 {offsets = [1, 0, 0], sizes = [1, 128, 25], strides = [1, 1, 1]} : vector<6x128x25xf32> to vector<1x128x25xf32>
    %229 = vector.shape_cast %228 : vector<1x128x25xf32> to vector<128x25xf32>
    %230 = arith.mulf %227, %229 : vector<128x25xf32>
    %cst_72 = arith.constant dense<0.000000e+00> : vector<128xf32>
    %231 = vector.multi_reduction <add>, %230, %cst_72 [1] : vector<128x25xf32> to vector<128xf32>
    %232 = vector.shape_cast %231 : vector<128xf32> to vector<128x1xf32>
    %cst_73 = arith.constant dense<0.000000e+00> : vector<1xf32>
    %233 = vector.multi_reduction <add>, %232, %cst_73 [0] : vector<128x1xf32> to vector<1xf32>
    %234 = vector.shape_cast %233 : vector<1xf32> to vector<1x1xf32>
    %235 = vector.extract_strided_slice %208 {offsets = [128, 0], sizes = [128, 25], strides = [1, 1]} : vector<256x25xf32> to vector<128x25xf32>
    %236 = vector.extract_strided_slice %209 {offsets = [1, 0, 0], sizes = [1, 128, 25], strides = [1, 1, 1]} : vector<6x128x25xf32> to vector<1x128x25xf32>
    %237 = vector.shape_cast %236 : vector<1x128x25xf32> to vector<128x25xf32>
    %238 = arith.mulf %235, %237 : vector<128x25xf32>
    %cst_74 = arith.constant dense<0.000000e+00> : vector<128xf32>
    %239 = vector.multi_reduction <add>, %238, %cst_74 [1] : vector<128x25xf32> to vector<128xf32>
    %240 = vector.shape_cast %239 : vector<128xf32> to vector<128x1xf32>
    %cst_75 = arith.constant dense<0.000000e+00> : vector<1xf32>
    %241 = vector.multi_reduction <add>, %240, %cst_75 [0] : vector<128x1xf32> to vector<1xf32>
    %242 = vector.shape_cast %241 : vector<1xf32> to vector<1x1xf32>
    %243 = tpu.concatenate %234, %242 in 0 : vector<1x1xf32>, vector<1x1xf32> -> vector<2x1xf32>
    %244 = vector.extract_strided_slice %208 {offsets = [0, 0], sizes = [128, 25], strides = [1, 1]} : vector<256x25xf32> to vector<128x25xf32>
    %245 = vector.extract_strided_slice %209 {offsets = [2, 0, 0], sizes = [1, 128, 25], strides = [1, 1, 1]} : vector<6x128x25xf32> to vector<1x128x25xf32>
    %246 = vector.shape_cast %245 : vector<1x128x25xf32> to vector<128x25xf32>
    %247 = arith.mulf %244, %246 : vector<128x25xf32>
    %cst_76 = arith.constant dense<0.000000e+00> : vector<128xf32>
    %248 = vector.multi_reduction <add>, %247, %cst_76 [1] : vector<128x25xf32> to vector<128xf32>
    %249 = vector.shape_cast %248 : vector<128xf32> to vector<128x1xf32>
    %cst_77 = arith.constant dense<0.000000e+00> : vector<1xf32>
    %250 = vector.multi_reduction <add>, %249, %cst_77 [0] : vector<128x1xf32> to vector<1xf32>
    %251 = vector.shape_cast %250 : vector<1xf32> to vector<1x1xf32>
    %252 = vector.extract_strided_slice %208 {offsets = [128, 0], sizes = [128, 25], strides = [1, 1]} : vector<256x25xf32> to vector<128x25xf32>
    %253 = vector.extract_strided_slice %209 {offsets = [2, 0, 0], sizes = [1, 128, 25], strides = [1, 1, 1]} : vector<6x128x25xf32> to vector<1x128x25xf32>
    %254 = vector.shape_cast %253 : vector<1x128x25xf32> to vector<128x25xf32>
    %255 = arith.mulf %252, %254 : vector<128x25xf32>
    %cst_78 = arith.constant dense<0.000000e+00> : vector<128xf32>
    %256 = vector.multi_reduction <add>, %255, %cst_78 [1] : vector<128x25xf32> to vector<128xf32>
    %257 = vector.shape_cast %256 : vector<128xf32> to vector<128x1xf32>
    %cst_79 = arith.constant dense<0.000000e+00> : vector<1xf32>
    %258 = vector.multi_reduction <add>, %257, %cst_79 [0] : vector<128x1xf32> to vector<1xf32>
    %259 = vector.shape_cast %258 : vector<1xf32> to vector<1x1xf32>
    %260 = tpu.concatenate %251, %259 in 0 : vector<1x1xf32>, vector<1x1xf32> -> vector<2x1xf32>
    %261 = vector.extract_strided_slice %208 {offsets = [0, 0], sizes = [128, 25], strides = [1, 1]} : vector<256x25xf32> to vector<128x25xf32>
    %262 = vector.extract_strided_slice %209 {offsets = [3, 0, 0], sizes = [1, 128, 25], strides = [1, 1, 1]} : vector<6x128x25xf32> to vector<1x128x25xf32>
    %263 = vector.shape_cast %262 : vector<1x128x25xf32> to vector<128x25xf32>
    %264 = arith.mulf %261, %263 : vector<128x25xf32>
    %cst_80 = arith.constant dense<0.000000e+00> : vector<128xf32>
    %265 = vector.multi_reduction <add>, %264, %cst_80 [1] : vector<128x25xf32> to vector<128xf32>
    %266 = vector.shape_cast %265 : vector<128xf32> to vector<128x1xf32>
    %cst_81 = arith.constant dense<0.000000e+00> : vector<1xf32>
    %267 = vector.multi_reduction <add>, %266, %cst_81 [0] : vector<128x1xf32> to vector<1xf32>
    %268 = vector.shape_cast %267 : vector<1xf32> to vector<1x1xf32>
    %269 = vector.extract_strided_slice %208 {offsets = [128, 0], sizes = [128, 25], strides = [1, 1]} : vector<256x25xf32> to vector<128x25xf32>
    %270 = vector.extract_strided_slice %209 {offsets = [3, 0, 0], sizes = [1, 128, 25], strides = [1, 1, 1]} : vector<6x128x25xf32> to vector<1x128x25xf32>
    %271 = vector.shape_cast %270 : vector<1x128x25xf32> to vector<128x25xf32>
    %272 = arith.mulf %269, %271 : vector<128x25xf32>
    %cst_82 = arith.constant dense<0.000000e+00> : vector<128xf32>
    %273 = vector.multi_reduction <add>, %272, %cst_82 [1] : vector<128x25xf32> to vector<128xf32>
    %274 = vector.shape_cast %273 : vector<128xf32> to vector<128x1xf32>
    %cst_83 = arith.constant dense<0.000000e+00> : vector<1xf32>
    %275 = vector.multi_reduction <add>, %274, %cst_83 [0] : vector<128x1xf32> to vector<1xf32>
    %276 = vector.shape_cast %275 : vector<1xf32> to vector<1x1xf32>
    %277 = tpu.concatenate %268, %276 in 0 : vector<1x1xf32>, vector<1x1xf32> -> vector<2x1xf32>
    %278 = vector.extract_strided_slice %208 {offsets = [0, 0], sizes = [128, 25], strides = [1, 1]} : vector<256x25xf32> to vector<128x25xf32>
    %279 = vector.extract_strided_slice %209 {offsets = [4, 0, 0], sizes = [1, 128, 25], strides = [1, 1, 1]} : vector<6x128x25xf32> to vector<1x128x25xf32>
    %280 = vector.shape_cast %279 : vector<1x128x25xf32> to vector<128x25xf32>
    %281 = arith.mulf %278, %280 : vector<128x25xf32>
    %cst_84 = arith.constant dense<0.000000e+00> : vector<128xf32>
    %282 = vector.multi_reduction <add>, %281, %cst_84 [1] : vector<128x25xf32> to vector<128xf32>
    %283 = vector.shape_cast %282 : vector<128xf32> to vector<128x1xf32>
    %cst_85 = arith.constant dense<0.000000e+00> : vector<1xf32>
    %284 = vector.multi_reduction <add>, %283, %cst_85 [0] : vector<128x1xf32> to vector<1xf32>
    %285 = vector.shape_cast %284 : vector<1xf32> to vector<1x1xf32>
    %286 = vector.extract_strided_slice %208 {offsets = [128, 0], sizes = [128, 25], strides = [1, 1]} : vector<256x25xf32> to vector<128x25xf32>
    %287 = vector.extract_strided_slice %209 {offsets = [4, 0, 0], sizes = [1, 128, 25], strides = [1, 1, 1]} : vector<6x128x25xf32> to vector<1x128x25xf32>
    %288 = vector.shape_cast %287 : vector<1x128x25xf32> to vector<128x25xf32>
    %289 = arith.mulf %286, %288 : vector<128x25xf32>
    %cst_86 = arith.constant dense<0.000000e+00> : vector<128xf32>
    %290 = vector.multi_reduction <add>, %289, %cst_86 [1] : vector<128x25xf32> to vector<128xf32>
    %291 = vector.shape_cast %290 : vector<128xf32> to vector<128x1xf32>
    %cst_87 = arith.constant dense<0.000000e+00> : vector<1xf32>
    %292 = vector.multi_reduction <add>, %291, %cst_87 [0] : vector<128x1xf32> to vector<1xf32>
    %293 = vector.shape_cast %292 : vector<1xf32> to vector<1x1xf32>
    %294 = tpu.concatenate %285, %293 in 0 : vector<1x1xf32>, vector<1x1xf32> -> vector<2x1xf32>
    %295 = vector.extract_strided_slice %208 {offsets = [0, 0], sizes = [128, 25], strides = [1, 1]} : vector<256x25xf32> to vector<128x25xf32>
    %296 = vector.extract_strided_slice %209 {offsets = [5, 0, 0], sizes = [1, 128, 25], strides = [1, 1, 1]} : vector<6x128x25xf32> to vector<1x128x25xf32>
    %297 = vector.shape_cast %296 : vector<1x128x25xf32> to vector<128x25xf32>
    %298 = arith.mulf %295, %297 : vector<128x25xf32>
    %cst_88 = arith.constant dense<0.000000e+00> : vector<128xf32>
    %299 = vector.multi_reduction <add>, %298, %cst_88 [1] : vector<128x25xf32> to vector<128xf32>
    %300 = vector.shape_cast %299 : vector<128xf32> to vector<128x1xf32>
    %cst_89 = arith.constant dense<0.000000e+00> : vector<1xf32>
    %301 = vector.multi_reduction <add>, %300, %cst_89 [0] : vector<128x1xf32> to vector<1xf32>
    %302 = vector.shape_cast %301 : vector<1xf32> to vector<1x1xf32>
    %303 = vector.extract_strided_slice %208 {offsets = [128, 0], sizes = [128, 25], strides = [1, 1]} : vector<256x25xf32> to vector<128x25xf32>
    %304 = vector.extract_strided_slice %209 {offsets = [5, 0, 0], sizes = [1, 128, 25], strides = [1, 1, 1]} : vector<6x128x25xf32> to vector<1x128x25xf32>
    %305 = vector.shape_cast %304 : vector<1x128x25xf32> to vector<128x25xf32>
    %306 = arith.mulf %303, %305 : vector<128x25xf32>
    %cst_90 = arith.constant dense<0.000000e+00> : vector<128xf32>
    %307 = vector.multi_reduction <add>, %306, %cst_90 [1] : vector<128x25xf32> to vector<128xf32>
    %308 = vector.shape_cast %307 : vector<128xf32> to vector<128x1xf32>
    %cst_91 = arith.constant dense<0.000000e+00> : vector<1xf32>
    %309 = vector.multi_reduction <add>, %308, %cst_91 [0] : vector<128x1xf32> to vector<1xf32>
    %310 = vector.shape_cast %309 : vector<1xf32> to vector<1x1xf32>
    %311 = tpu.concatenate %302, %310 in 0 : vector<1x1xf32>, vector<1x1xf32> -> vector<2x1xf32>
    %312 = tpu.concatenate %226, %243, %260, %277, %294, %311 in 1 : vector<2x1xf32>, vector<2x1xf32>, vector<2x1xf32>, vector<2x1xf32>, vector<2x1xf32>, vector<2x1xf32> -> vector<2x6xf32>
    %c0_92 = arith.constant 0 : index
    %c0_93 = arith.constant 0 : index
    %313 = vector.load %arg5[%c0_92, %c0_93] : memref<1x6xf32, #tpu.memory_space<vmem>>, vector<1x6xf32>
    %314 = vector.broadcast %313 : vector<1x6xf32> to vector<2x6xf32>
    %315 = arith.addf %312, %314 : vector<2x6xf32>
    %c0_94 = arith.constant 0 : index
    %c0_95 = arith.constant 0 : index
    %316 = vector.load %arg6[%c0_94, %c0_95] : memref<2x6xf32, #tpu.memory_space<vmem>>, vector<2x6xf32>
    tpu.vector_store %arg6[%c0_94, %c0_95], %315 {strides = array<i32>} : memref<2x6xf32, #tpu.memory_space<vmem>>, vector<2x6xf32>,
    return
  }
}

</mosaic_0001>

<bundles_post_ra>
// kernel: classifier_forward.1
= control target key start
LH: loop header
LB: loop body
LE: loop exit
PB: predicated region body
PF: predicated region fallthrough
CT: control target
= control target key end

     0   :  { %v29_v0 = vlaneseq  ;;  %v4241_v2 = vmov 0.0   ;;  %vm119_vm0 = vcmask 588800   ;;  %s7626_s0 = inlined_call_operand.vmem [shape: f32[2,200], index: 0, kind: input, shape index: {}]   ;;  %s7627_s1 = inlined_call_operand.vmem [shape: f32[32,3], index: 1, kind: input, shape index: {}]   ;;  %s7628_s2 = inlined_call_operand.vmem [shape: f32[64,96], index: 2, kind: input, shape index: {}]   ;;  %s7629_s3 = inlined_call_operand.vmem [shape: f32[128,192], index: 3, kind: input, shape index: {}]   ;;  %s7630_s4 = inlined_call_operand.vmem [shape: f32[6,128,25], index: 4, kind: input, shape index: {}]   ;;  %s7631_s5 = inlined_call_operand.vmem [shape: f32[1,6], index: 5, kind: input, shape index: {}]   ;;  %s7632_s6 = inlined_call_operand.hbm [shape: f32[2,6], index: 6, kind: output, shape index: {}]  }
   0x1   :  { %v4298_v1 = vld.sshfl [vmem:[%s7626_s0] sm:$0x33 pattern:$0x76325410]  ;;  %242 = vmatprep.subr.mxu1 %v4241_v2  ;;  %122 = vmatprep.subr.mxu0 %v4241_v2 }
   0x2   :  { %v4304_v3 = vcombine.high %v4298_v1, %v4298_v1 }
   0x3   :  { %11 = vsyncpa [#allocation3], 0  ;;  %v4306_v4 = vshrl.u32 %v29_v0, 7  ;;  %v56_v5 = vand.u32 127, %v29_v0  ;;  %v4242_v12 = vmov 1.0   ;;  %s4243_s0 = smov 72  }
   0x4   :  { %3879 = vmatprep.mubr.msk.f32.mxu1 %vm119_vm0, %v4304_v3  ;;  %3853 = vmatprep.mubr.msk.f32.mxu0 %vm119_vm0, %v4304_v3  ;;  %s4244_s23 = smov 100   ;;  %s4245_s24 = smov 44  }
   0x5   :  { %v4313_v6 = vadd.s32 120, %v4306_v4  ;;  %v4315_v7 = vmul.u32 2, %v56_v5  ;;  %v4318_v8 = vadd.s32 112, %v4306_v4  ;;  %v4321_v9 = vadd.s32 104, %v4306_v4  ;;  %s4246_s25 = smov 50   ;;  %s4247_s26 = smov 22  }
   0x6   :  { %v4331_v11 = vadd.s32 96, %v4306_v4  ;;  %v4342_v13 = vadd.s32 88, %v4306_v4  ;;  %v4353_v14 = vadd.s32 80, %v4306_v4  ;;  %v4364_v15 = vadd.s32 72, %v4306_v4  ;;  %s4249_s11 = smov 56   ;;  %s4250_s12 = smov 78  }
   0x7   :  { %vm207_vm1 = vcmp.eq.s32.totalorder %v4313_v6, %v4315_v7  ;;  %v4326_v10 = vadd.s32 4294967295, %v4315_v7  ;;  %vm206_vm2 = vcmp.eq.s32.totalorder %v4318_v8, %v4315_v7  ;;  %vm205_vm5 = vcmp.eq.s32.totalorder %v4321_v9, %v4315_v7  ;;  %s4251_s13 = smov 25   ;;  %s4252_s14 = smov 75  }
   0x8   :  { %3854 = vmatpush1.msk.msra.mxu1 %vm207_vm1, %v4242_v12  ;;  %vm204_vm7 = vcmp.eq.s32.totalorder %v4331_v11, %v4315_v7  ;;  %vm203_vm9 = vcmp.eq.s32.totalorder %v4342_v13, %v4315_v7  ;;  %vm202_vm11 = vcmp.eq.s32.totalorder %v4353_v14, %v4315_v7  ;;  %v4378_v16 = vadd.s32 64, %v4306_v4  ;;  %s4259_s16 = smov [#allocation2]  }
   0x9   :  { %vm74_vm3 = vcmp.eq.s32.totalorder %v4313_v6, %v4326_v10  ;;  %244 = vmatprep.subr.mxu1 %v4241_v2  ;;  %vm73_vm4 = vcmp.eq.s32.totalorder %v4318_v8, %v4326_v10  ;;  %vm72_vm6 = vcmp.eq.s32.totalorder %v4321_v9, %v4326_v10  ;;  %vm7652_vm8 = vcmp.eq.s32.totalorder %v4331_v11, %v4326_v10  ;;  %s3819_s17 = sshll.u32 %s4259_s16, 4  ;;  %s3820_s17 = int_to_ptr.vmem [resolvable:$true] %s3819_s17 }
   0xa   :  { %3828 = vmatpush1.msk.msra.mxu0 %vm74_vm3, %v4242_v12  ;;  %3855 = vmatpush1.msk.msra.mxu1 %vm206_vm2, %v4242_v12  ;;  %vm7651_vm10 = vcmp.eq.s32.totalorder %v4342_v13, %v4326_v10  ;;  %vm7650_vm12 = vcmp.eq.s32.totalorder %v4353_v14, %v4326_v10  ;;  %vm201_vm13 = vcmp.eq.s32.totalorder %v4364_v15, %v4315_v7  ;;  %v4395_v17 = vadd.s32 56, %v4306_v4  ;;  %s4219_s18 = scalar_lea.vmem %s3820_s17, 32  ;;  %p4224_p1 = scmp.lt.s32.totalorder %s3820_s17, %s3820_s17 }
   0xb   :  { %124 = vmatprep.subr.mxu0 %v4241_v2  ;;  %246 = vmatprep.subr.mxu1 %v4241_v2  ;;  %vm7634_vm14 = vcmp.eq.s32.totalorder %v4364_v15, %v4326_v10  ;;  %vm200_vm15 = vcmp.eq.s32.totalorder %v4378_v16, %v4315_v7  ;;  %v4412_v18 = vadd.s32 48, %v4306_v4  ;;  %vm7633_vm1 = vcmp.eq.s32.totalorder %v4378_v16, %v4326_v10  ;;  %p4220_p0 = scmp.ne.s32.totalorder %s3820_s17, %s4219_s18  ;;  %p4225_p2 = scmp.lt.s32.totalorder %s4219_s18, %s4219_s18 }
   0xc   :  { %3829 = vmatpush1.msk.msra.mxu0 %vm73_vm4, %v4242_v12  ;;  %3856 = vmatpush1.msk.msra.mxu1 %vm205_vm5, %v4242_v12  ;;  %vm199_vm2 = vcmp.eq.s32.totalorder %v4395_v17, %v4315_v7  ;;  %v4429_v19 = vadd.s32 40, %v4306_v4  ;;  %vm7635_vm3 = vcmp.eq.s32.totalorder %v4395_v17, %v4326_v10  ;;  %v4446_v20 = vadd.s32 32, %v4306_v4 }
   0xd   :  { %126 = vmatprep.subr.mxu0 %v4241_v2  ;;  %248 = vmatprep.subr.mxu1 %v4241_v2  ;;  %vm7636_vm4 = vcmp.eq.s32.totalorder %v4412_v18, %v4315_v7  ;;  %vm7637_vm5 = vcmp.eq.s32.totalorder %v4412_v18, %v4326_v10  ;;  %v4463_v21 = vadd.s32 24, %v4306_v4  ;;  %v4480_v22 = vadd.s32 16, %v4306_v4  ;;  %p4226_p3 = por %p4225_p2, %p4224_p1 }
   0xe   :  { %3830 = vmatpush1.msk.msra.mxu0 %vm72_vm6, %v4242_v12  ;;  %3857 = vmatpush1.msk.msra.mxu1 %vm204_vm7, %v4242_v12  ;;  %vm7638_vm6 = vcmp.eq.s32.totalorder %v4429_v19, %v4315_v7  ;;  %v4497_v23 = vadd.s32 8, %v4306_v4  ;;  %v4528_v24 = vadd.s32 192, %v4306_v4  ;;  %v4545_v25 = vadd.s32 184, %v4306_v4 }
   0xf   :  { %128 = vmatprep.subr.mxu0 %v4241_v2  ;;  %250 = vmatprep.subr.mxu1 %v4241_v2  ;;  %v4562_v26 = vadd.s32 176, %v4306_v4  ;;  %v4579_v27 = vadd.s32 168, %v4306_v4  ;;  %v4593_v28 = vadd.s32 160, %v4306_v4  ;;  %v4604_v29 = vadd.s32 152, %v4306_v4  ;;  %p4227_p4 = pnand %p4226_p3, %p4220_p0 }
  0x10   :  { %3831 = vmatpush1.msk.msra.mxu0 %vm7652_vm8, %v4242_v12  ;;  %3858 = vmatpush1.msk.msra.mxu1 %vm203_vm9, %v4242_v12  ;;  %v4615_v30 = vadd.s32 144, %v4306_v4  ;;  %v4626_v31 = vadd.s32 136, %v4306_v4  ;;  %v4637_v32 = vadd.s32 128, %v4306_v4  ;;  %v4656_v33 = vadd.s32 2, %v4315_v7 }
  0x11   :  { %130 = vmatprep.subr.mxu0 %v4241_v2  ;;  %252 = vmatprep.subr.mxu1 %v4241_v2  ;;  %v4659_v34 = vadd.s32 1, %v4315_v7  ;;  %v229_v57 = vsel %vm204_vm7, 1.0, %v4241_v2  ;;  %v228_v58 = vsel %vm203_vm9, 1.0, %v4241_v2  ;;  %v227_v59 = vsel %vm202_vm11, 1.0, %v4241_v2 }
  0x12   :  { %3832 = vmatpush1.msk.msra.mxu0 %vm7651_vm10, %v4242_v12  ;;  %3859 = vmatpush1.msk.msra.mxu1 %vm202_vm11, %v4242_v12  ;;  %vm7659_vm8 = vcmp.eq.s32.totalorder %v4378_v16, %v4656_v33  ;;  %v226_v60 = vsel %vm201_vm13, 1.0, %v4241_v2  ;;  %v225_v62 = vsel %vm200_vm15, 1.0, %v4241_v2  ;;  %v224_v63 = vsel %vm199_vm2, 1.0, %v4241_v2 }
  0x13   :  { %132 = vmatprep.subr.mxu0 %v4241_v2  ;;  %254 = vmatprep.subr.mxu1 %v4241_v2  ;;  %vm7657_vm10 = vcmp.eq.s32.totalorder %v4364_v15, %v4659_v34  ;;  %v4076_v0 = vpack.i.bf16 %v228_v58, %v229_v57  ;;  %vm7717_vm7 = vcmp.eq.s32.totalorder %v4331_v11, %v4656_v33 }
  0x14   :  { %3833 = vmatpush1.msk.msra.mxu0 %vm7650_vm12, %v4242_v12  ;;  %3860 = vmatpush1.msk.msra.mxu1 %vm201_vm13, %v4242_v12  ;;  %vm7656_vm12 = vcmp.eq.s32.totalorder %v4364_v15, %v4656_v33  ;;  %vm7718_vm9 = vcmp.eq.s32.totalorder %v4364_v15, %v4659_v34  ;;  %vm7719_vm11 = vcmp.eq.s32.totalorder %v4353_v14, %v4659_v34 }
  0x15   :  { %134 = vmatprep.subr.mxu0 %v4241_v2  ;;  %256 = vmatprep.subr.mxu1 %v4241_v2  ;;  %vm7720_vm13 = vcmp.eq.s32.totalorder %v4364_v15, %v4656_v33 }
  0x16   :  { %3834 = vmatpush1.msk.msra.mxu0 %vm7634_vm14, %v4242_v12  ;;  %3861 = vmatpush1.msk.msra.mxu1 %vm200_vm15, %v4242_v12  ;;  %vm7640_vm14 = vcmp.eq.s32.totalorder %v4446_v20, %v4315_v7  ;;  %vm7721_vm15 = vcmp.eq.s32.totalorder %v4353_v14, %v4656_v33 }
  0x17   :  { %136 = vmatprep.subr.mxu0 %v4241_v2  ;;  %258 = vmatprep.subr.mxu1 %v4241_v2 }
  0x18   :  { %3835 = vmatpush1.msk.msra.mxu0 %vm7633_vm1, %v4242_v12  ;;  %3862 = vmatpush1.msk.msra.mxu1 %vm199_vm2, %v4242_v12  ;;  %vm7639_vm1 = vcmp.eq.s32.totalorder %v4429_v19, %v4326_v10  ;;  %vm594_vm2 = vcmask 818176  }
  0x19   :  { %138 = vmatprep.subr.mxu0 %v4241_v2  ;;  %260 = vmatprep.subr.mxu1 %v4241_v2 }
  0x1a   :  { %3836 = vmatpush1.msk.msra.mxu0 %vm7635_vm3, %v4242_v12  ;;  %3863 = vmatpush1.msk.msra.mxu1 %vm7636_vm4, %v4242_v12  ;;  %vm7641_vm3 = vcmp.eq.s32.totalorder %v4446_v20, %v4326_v10  ;;  %vm7642_vm4 = vcmp.eq.s32.totalorder %v4463_v21, %v4315_v7 }
  0x1b   :  { %140 = vmatprep.subr.mxu0 %v4241_v2  ;;  %262 = vmatprep.subr.mxu1 %v4241_v2 }
  0x1c   :  { %3837 = vmatpush1.msk.msra.mxu0 %vm7637_vm5, %v4242_v12  ;;  %3864 = vmatpush1.msk.msra.mxu1 %vm7638_vm6, %v4242_v12  ;;  %vm7643_vm5 = vcmp.eq.s32.totalorder %v4463_v21, %v4326_v10  ;;  %vm7644_vm6 = vcmp.eq.s32.totalorder %v4480_v22, %v4315_v7 }
  0x1d   :  { %142 = vmatprep.subr.mxu0 %v4241_v2  ;;  %264 = vmatprep.subr.mxu1 %v4241_v2 }
  0x1e   :  { %3838 = vmatpush1.msk.msra.mxu0 %vm7639_vm1, %v4242_v12  ;;  %3865 = vmatpush1.msk.msra.mxu1 %vm7640_vm14, %v4242_v12  ;;  %vm7645_vm1 = vcmp.eq.s32.totalorder %v4480_v22, %v4326_v10  ;;  %vm7646_vm14 = vcmp.eq.s32.totalorder %v4497_v23, %v4315_v7 }
  0x1f   :  { %144 = vmatprep.subr.mxu0 %v4241_v2  ;;  %266 = vmatprep.subr.mxu1 %v4241_v2 }
  0x20   :  { %3839 = vmatpush1.msk.msra.mxu0 %vm7641_vm3, %v4242_v12  ;;  %3866 = vmatpush1.msk.msra.mxu1 %vm7642_vm4, %v4242_v12  ;;  %vm7647_vm3 = vcmp.eq.s32.totalorder %v4497_v23, %v4326_v10  ;;  %vm7648_vm4 = vcmp.eq.s32.totalorder %v4306_v4, %v4315_v7 }
  0x21   :  { %146 = vmatprep.subr.mxu0 %v4241_v2  ;;  %268 = vmatprep.subr.mxu1 %v4241_v2 }
  0x22   :  { %3840 = vmatpush1.msk.msra.mxu0 %vm7643_vm5, %v4242_v12  ;;  %3867 = vmatpush1.msk.msra.mxu1 %vm7644_vm6, %v4242_v12  ;;  %vm7649_vm5 = vcmp.eq.s32.totalorder %v4306_v4, %v4326_v10  ;;  %vm216_vm6 = vcmp.eq.s32.totalorder %v4528_v24, %v4315_v7 }
  0x23   :  { %148 = vmatprep.subr.mxu0 %v4241_v2  ;;  %270 = vmatprep.subr.mxu1 %v4241_v2 }
  0x24   :  { %3841 = vmatpush1.msk.msra.mxu0 %vm7645_vm1, %v4242_v12  ;;  %3868 = vmatpush1.msk.msra.mxu1 %vm7646_vm14, %v4242_v12  ;;  %vm83_vm1 = vcmp.eq.s32.totalorder %v4528_v24, %v4326_v10  ;;  %vm215_vm14 = vcmp.eq.s32.totalorder %v4545_v25, %v4315_v7 }
  0x25   :  { %150 = vmatprep.subr.mxu0 %v4241_v2  ;;  %272 = vmatprep.subr.mxu1 %v4241_v2 }
  0x26   :  { %3842 = vmatpush1.msk.msra.mxu0 %vm7647_vm3, %v4242_v12  ;;  %3869 = vmatpush1.msk.msra.mxu1 %vm7648_vm4, %v4242_v12  ;;  %vm82_vm3 = vcmp.eq.s32.totalorder %v4545_v25, %v4326_v10  ;;  %vm214_vm4 = vcmp.eq.s32.totalorder %v4562_v26, %v4315_v7 }
  0x27   :  { %152 = vmatprep.subr.mxu0 %v4241_v2  ;;  %288 = vmatprep.subr.mxu1 %v4241_v2 }
  0x28   :  { %3843 = vmatpush1.msk.msra.mxu0 %vm7649_vm5, %v4242_v12  ;;  %3870 = vmatpush2.msk.msra.mxu1 %vm216_vm6, %v4242_v12  ;;  %vm81_vm6 = vcmp.eq.s32.totalorder %v4562_v26, %v4326_v10  ;;  %vm213_vm5 = vcmp.eq.s32.totalorder %v4579_v27, %v4315_v7 }
  0x29   :  { %168 = vmatprep.subr.mxu0 %v4241_v2  ;;  %290 = vmatprep.subr.mxu1 %v4241_v2 }
  0x2a   :  { %3844 = vmatpush2.msk.msra.mxu0 %vm83_vm1, %v4242_v12  ;;  %3871 = vmatpush2.msk.msra.mxu1 %vm215_vm14, %v4242_v12  ;;  %vm80_vm14 = vcmp.eq.s32.totalorder %v4579_v27, %v4326_v10  ;;  %vm212_vm1 = vcmp.eq.s32.totalorder %v4593_v28, %v4315_v7 }
  0x2b   :  { %170 = vmatprep.subr.mxu0 %v4241_v2  ;;  %292 = vmatprep.subr.mxu1 %v4241_v2 }
  0x2c   :  { %3845 = vmatpush2.msk.msra.mxu0 %vm82_vm3, %v4242_v12  ;;  %3872 = vmatpush2.msk.msra.mxu1 %vm214_vm4, %v4242_v12  ;;  %vm79_vm3 = vcmp.eq.s32.totalorder %v4593_v28, %v4326_v10  ;;  %vm211_vm4 = vcmp.eq.s32.totalorder %v4604_v29, %v4315_v7 }
  0x2d   :  { %172 = vmatprep.subr.mxu0 %v4241_v2  ;;  %294 = vmatprep.subr.mxu1 %v4241_v2 }
  0x2e   :  { %3846 = vmatpush2.msk.msra.mxu0 %vm81_vm6, %v4242_v12  ;;  %3873 = vmatpush2.msk.msra.mxu1 %vm213_vm5, %v4242_v12  ;;  %vm78_vm5 = vcmp.eq.s32.totalorder %v4604_v29, %v4326_v10  ;;  %vm210_vm6 = vcmp.eq.s32.totalorder %v4615_v30, %v4315_v7 }
  0x2f   :  { %174 = vmatprep.subr.mxu0 %v4241_v2  ;;  %296 = vmatprep.subr.mxu1 %v4241_v2 }
  0x30   :  { %3847 = vmatpush2.msk.msra.mxu0 %vm80_vm14, %v4242_v12  ;;  %3874 = vmatpush2.msk.msra.mxu1 %vm212_vm1, %v4242_v12  ;;  %vm77_vm14 = vcmp.eq.s32.totalorder %v4615_v30, %v4326_v10  ;;  %vm209_vm1 = vcmp.eq.s32.totalorder %v4626_v31, %v4315_v7 }
  0x31   :  { %176 = vmatprep.subr.mxu0 %v4241_v2  ;;  %298 = vmatprep.subr.mxu1 %v4241_v2 }
  0x32   :  { %3848 = vmatpush2.msk.msra.mxu0 %vm79_vm3, %v4242_v12  ;;  %3875 = vmatpush2.msk.msra.mxu1 %vm211_vm4, %v4242_v12  ;;  %vm76_vm3 = vcmp.eq.s32.totalorder %v4626_v31, %v4326_v10  ;;  %vm208_vm4 = vcmp.eq.s32.totalorder %v4637_v32, %v4315_v7 }
  0x33   :  { %178 = vmatprep.subr.mxu0 %v4241_v2  ;;  %300 = vmatprep.subr.mxu1 %v4241_v2 }
  0x34   :  { %3849 = vmatpush2.msk.msra.mxu0 %vm78_vm5, %v4242_v12  ;;  %3876 = vmatpush2.msk.msra.mxu1 %vm210_vm6, %v4242_v12  ;;  %vm75_vm5 = vcmp.eq.s32.totalorder %v4637_v32, %v4326_v10  ;;  %vm449_vm6 = vcmp.eq.s32.totalorder %v4313_v6, %v4656_v33 }
  0x35   :  { %180 = vmatprep.subr.mxu0 %v4241_v2  ;;  %302 = vmatprep.subr.mxu1 %v4241_v2 }
  0x36   :  { %3850 = vmatpush2.msk.msra.mxu0 %vm77_vm14, %v4242_v12  ;;  %3877 = vmatpush2.msk.msra.mxu1 %vm209_vm1, %v4242_v12  ;;  %vm328_vm14 = vcmp.eq.s32.totalorder %v4313_v6, %v4659_v34  ;;  %vm448_vm1 = vcmp.eq.s32.totalorder %v4318_v8, %v4656_v33 }
  0x37   :  { %182 = vmatprep.subr.mxu0 %v4241_v2  ;;  %304 = vmatprep.subr.mxu1 %v4241_v2 }
  0x38   :  { %3851 = vmatpush2.msk.msra.mxu0 %vm76_vm3, %v4242_v12  ;;  %3878 = vmatpush2.msk.msra.mxu1 %vm208_vm4, %v4242_v12  ;;  %vm327_vm3 = vcmp.eq.s32.totalorder %v4318_v8, %v4659_v34  ;;  %vm447_vm4 = vcmp.eq.s32.totalorder %v4321_v9, %v4656_v33  ;;  %v471_v8 = vsel %vm7717_vm7, 1.0, %v4241_v2  ;;  %vm7727_vm7 = vcmp.eq.s32.totalorder %v4446_v20, %v4659_v34 }
  0x39   :  { %184 = vmatprep.subr.mxu0 %v4241_v2  ;;  %307 = vmatmul.mubr.f32.vlgmr.msra.gmra.mxu1 %v4298_v1 }
  0x3a   :  { %3852 = vmatpush2.msk.msra.mxu0 %vm75_vm5, %v4242_v12  ;;  %484 = vmatprep.subr.mxu1 %v4241_v2  ;;  %vm326_vm5 = vcmp.eq.s32.totalorder %v4321_v9, %v4659_v34  ;;  %v4091_v9 = vpack.i.bf16 %v226_v60, %v227_v59 }
  0x3b   :  { %187 = vmatmul.mubr.f32.vlgmr.msra.gmra.mxu0 %v4298_v1  ;;  %363 = vmatprep.subr.mxu0 %v4241_v2 }
  0x3c   :  { %3906 = vmatpush1.msk.msra.mxu1 %vm449_vm6, %v4242_v12  ;;  %3880 = vmatpush1.msk.msra.mxu0 %vm328_vm14, %v4242_v12  ;;  %vm7653_vm6 = vcmp.eq.s32.totalorder %v4331_v11, %v4656_v33  ;;  %vm325_vm14 = vcmp.eq.s32.totalorder %v4331_v11, %v4659_v34 }
  0x3d   :  { %486 = vmatprep.subr.mxu1 %v4241_v2  ;;  %365 = vmatprep.subr.mxu0 %v4241_v2 }
  0x3e   :  { %3907 = vmatpush1.msk.msra.mxu1 %vm448_vm1, %v4242_v12  ;;  %3881 = vmatpush1.msk.msra.mxu0 %vm327_vm3, %v4242_v12  ;;  %vm445_vm1 = vcmp.eq.s32.totalorder %v4342_v13, %v4656_v33  ;;  %vm324_vm3 = vcmp.eq.s32.totalorder %v4342_v13, %v4659_v34 }
  0x3f   :  { %488 = vmatprep.subr.mxu1 %v4241_v2  ;;  %367 = vmatprep.subr.mxu0 %v4241_v2  ;;  %v470_v5 = vsel %vm445_vm1, 1.0, %v4241_v2 }
  0x40   :  { %3908 = vmatpush1.msk.msra.mxu1 %vm447_vm4, %v4242_v12  ;;  %3882 = vmatpush1.msk.msra.mxu0 %vm326_vm5, %v4242_v12  ;;  %vm7654_vm4 = vcmp.eq.s32.totalorder %v4353_v14, %v4656_v33  ;;  %vm7655_vm5 = vcmp.eq.s32.totalorder %v4353_v14, %v4659_v34 }
  0x41   :  { %490 = vmatprep.subr.mxu1 %v4241_v2  ;;  %369 = vmatprep.subr.mxu0 %v4241_v2 }
  0x42   :  { %3909 = vmatpush1.msk.msra.mxu1 %vm7653_vm6, %v4242_v12  ;;  %3883 = vmatpush1.msk.msra.mxu0 %vm325_vm14, %v4242_v12  ;;  %vm7658_vm6 = vcmp.eq.s32.totalorder %v4378_v16, %v4659_v34 }
  0x43   :  { %492 = vmatprep.subr.mxu1 %v4241_v2  ;;  %371 = vmatprep.subr.mxu0 %v4241_v2 }
  0x44   :  { %3910 = vmatpush1.msk.msra.mxu1 %vm445_vm1, %v4242_v12  ;;  %3884 = vmatpush1.msk.msra.mxu0 %vm324_vm3, %v4242_v12  ;;  %vm597_vm1 = vcmask 359424  }
  0x45   :  { %494 = vmatprep.subr.mxu1 %v4241_v2  ;;  %373 = vmatprep.subr.mxu0 %v4241_v2 }
  0x46   :  { %3911 = vmatpush1.msk.msra.mxu1 %vm7654_vm4, %v4242_v12  ;;  %3885 = vmatpush1.msk.msra.mxu0 %vm7655_vm5, %v4242_v12  ;;  %vm7661_vm4 = vcmp.eq.s32.totalorder %v4395_v17, %v4656_v33  ;;  %vm7660_vm5 = vcmp.eq.s32.totalorder %v4395_v17, %v4659_v34 }
  0x47   :  { %496 = vmatprep.subr.mxu1 %v4241_v2  ;;  %375 = vmatprep.subr.mxu0 %v4241_v2 }
  0x48   :  { %3912 = vmatpush1.msk.msra.mxu1 %vm7656_vm12, %v4242_v12  ;;  %3886 = vmatpush1.msk.msra.mxu0 %vm7657_vm10, %v4242_v12  ;;  %vm7662_vm12 = vcmp.eq.s32.totalorder %v4412_v18, %v4656_v33  ;;  %vm7663_vm10 = vcmp.eq.s32.totalorder %v4412_v18, %v4659_v34 }
  0x49   :  { %498 = vmatprep.subr.mxu1 %v4241_v2  ;;  %377 = vmatprep.subr.mxu0 %v4241_v2 }
  0x4a   :  { %3913 = vmatpush1.msk.msra.mxu1 %vm7659_vm8, %v4242_v12  ;;  %3887 = vmatpush1.msk.msra.mxu0 %vm7658_vm6, %v4242_v12  ;;  %vm7664_vm6 = vcmp.eq.s32.totalorder %v4429_v19, %v4656_v33  ;;  %vm7665_vm8 = vcmp.eq.s32.totalorder %v4429_v19, %v4659_v34 }
  0x4b   :  { %500 = vmatprep.subr.mxu1 %v4241_v2  ;;  %379 = vmatprep.subr.mxu0 %v4241_v2 }
  0x4c   :  { %3914 = vmatpush1.msk.msra.mxu1 %vm7661_vm4, %v4242_v12  ;;  %3888 = vmatpush1.msk.msra.mxu0 %vm7660_vm5, %v4242_v12  ;;  %vm7666_vm5 = vcmp.eq.s32.totalorder %v4446_v20, %v4656_v33  ;;  %vm7667_vm4 = vcmp.eq.s32.totalorder %v4446_v20, %v4659_v34 }
  0x4d   :  { %502 = vmatprep.subr.mxu1 %v4241_v2  ;;  %381 = vmatprep.subr.mxu0 %v4241_v2 }
  0x4e   :  { %3915 = vmatpush1.msk.msra.mxu1 %vm7662_vm12, %v4242_v12  ;;  %3889 = vmatpush1.msk.msra.mxu0 %vm7663_vm10, %v4242_v12  ;;  %vm7668_vm12 = vcmp.eq.s32.totalorder %v4463_v21, %v4656_v33  ;;  %vm7669_vm10 = vcmp.eq.s32.totalorder %v4463_v21, %v4659_v34 }
  0x4f   :  { %504 = vmatprep.subr.mxu1 %v4241_v2  ;;  %383 = vmatprep.subr.mxu0 %v4241_v2 }
  0x50   :  { %3916 = vmatpush1.msk.msra.mxu1 %vm7664_vm6, %v4242_v12  ;;  %3890 = vmatpush1.msk.msra.mxu0 %vm7665_vm8, %v4242_v12  ;;  %vm7670_vm6 = vcmp.eq.s32.totalorder %v4480_v22, %v4656_v33  ;;  %vm7671_vm8 = vcmp.eq.s32.totalorder %v4480_v22, %v4659_v34 }
  0x51   :  { %506 = vmatprep.subr.mxu1 %v4241_v2  ;;  %385 = vmatprep.subr.mxu0 %v4241_v2 }
  0x52   :  { %3917 = vmatpush1.msk.msra.mxu1 %vm7666_vm5, %v4242_v12  ;;  %3891 = vmatpush1.msk.msra.mxu0 %vm7667_vm4, %v4242_v12  ;;  %vm7672_vm5 = vcmp.eq.s32.totalorder %v4497_v23, %v4656_v33  ;;  %vm7673_vm4 = vcmp.eq.s32.totalorder %v4497_v23, %v4659_v34 }
  0x53   :  { %508 = vmatprep.subr.mxu1 %v4241_v2  ;;  %387 = vmatprep.subr.mxu0 %v4241_v2 }
  0x54   :  { %3918 = vmatpush1.msk.msra.mxu1 %vm7668_vm12, %v4242_v12  ;;  %3892 = vmatpush1.msk.msra.mxu0 %vm7669_vm10, %v4242_v12  ;;  %vm7675_vm12 = vcmp.eq.s32.totalorder %v4306_v4, %v4656_v33  ;;  %vm7674_vm10 = vcmp.eq.s32.totalorder %v4306_v4, %v4659_v34 }
  0x55   :  { %510 = vmatprep.subr.mxu1 %v4241_v2  ;;  %389 = vmatprep.subr.mxu0 %v4241_v2 }
  0x56   :  { %3919 = vmatpush1.msk.msra.mxu1 %vm7670_vm6, %v4242_v12  ;;  %3893 = vmatpush1.msk.msra.mxu0 %vm7671_vm8, %v4242_v12  ;;  %vm458_vm6 = vcmp.eq.s32.totalorder %v4528_v24, %v4656_v33  ;;  %vm337_vm8 = vcmp.eq.s32.totalorder %v4528_v24, %v4659_v34  ;;  %v347_v24 = vsel %vm7718_vm9, 1.0, %v4241_v2  ;;  %vm7728_vm9 = vcmp.eq.s32.totalorder %v4463_v21, %v4656_v33 }
  0x57   :  { %512 = vmatprep.subr.mxu1 %v4241_v2  ;;  %391 = vmatprep.subr.mxu0 %v4241_v2 }
  0x58   :  { %3920 = vmatpush1.msk.msra.mxu1 %vm7672_vm5, %v4242_v12  ;;  %3894 = vmatpush1.msk.msra.mxu0 %vm7673_vm4, %v4242_v12  ;;  %vm457_vm5 = vcmp.eq.s32.totalorder %v4545_v25, %v4656_v33  ;;  %vm336_vm4 = vcmp.eq.s32.totalorder %v4545_v25, %v4659_v34  ;;  %v348_v25 = vsel %vm7719_vm11, 1.0, %v4241_v2  ;;  %vm7729_vm11 = vcmp.eq.s32.totalorder %v4446_v20, %v4656_v33 }
  0x59   :  { %514 = vmatprep.subr.mxu1 %v4241_v2  ;;  %393 = vmatprep.subr.mxu0 %v4241_v2 }
  0x5a   :  { %3921 = vmatpush1.msk.msra.mxu1 %vm7675_vm12, %v4242_v12  ;;  %3895 = vmatpush1.msk.msra.mxu0 %vm7674_vm10, %v4242_v12  ;;  %vm456_vm10 = vcmp.eq.s32.totalorder %v4562_v26, %v4656_v33  ;;  %vm335_vm12 = vcmp.eq.s32.totalorder %v4562_v26, %v4659_v34  ;;  %v4106_v26 = vpack.i.bf16 %v224_v63, %v225_v62 }
  0x5b   :  { %530 = vmatprep.subr.mxu1 %v4241_v2  ;;  %409 = vmatprep.subr.mxu0 %v4241_v2 }
  0x5c   :  { %3922 = vmatpush2.msk.msra.mxu1 %vm458_vm6, %v4242_v12  ;;  %3896 = vmatpush2.msk.msra.mxu0 %vm337_vm8, %v4242_v12  ;;  %vm455_vm8 = vcmp.eq.s32.totalorder %v4579_v27, %v4656_v33  ;;  %vm334_vm6 = vcmp.eq.s32.totalorder %v4579_v27, %v4659_v34  ;;  %v468_v27 = vsel %vm7720_vm13, 1.0, %v4241_v2  ;;  %vm7730_vm13 = vcmp.eq.s32.totalorder %v4497_v23, %v4659_v34 }
  0x5d   :  { %532 = vmatprep.subr.mxu1 %v4241_v2  ;;  %411 = vmatprep.subr.mxu0 %v4241_v2 }
  0x5e   :  { %3923 = vmatpush2.msk.msra.mxu1 %vm457_vm5, %v4242_v12  ;;  %3897 = vmatpush2.msk.msra.mxu0 %vm336_vm4, %v4242_v12  ;;  %vm454_vm4 = vcmp.eq.s32.totalorder %v4593_v28, %v4656_v33  ;;  %vm333_vm5 = vcmp.eq.s32.totalorder %v4593_v28, %v4659_v34  ;;  %v469_v28 = vsel %vm7721_vm15, 1.0, %v4241_v2  ;;  %vm7731_vm15 = vcmp.eq.s32.totalorder %v4480_v22, %v4659_v34 }
  0x5f   :  { %534 = vmatprep.subr.mxu1 %v4241_v2  ;;  %413 = vmatprep.subr.mxu0 %v4241_v2 }
  0x60   :  { %3924 = vmatpush2.msk.msra.mxu1 %vm456_vm10, %v4242_v12  ;;  %3898 = vmatpush2.msk.msra.mxu0 %vm335_vm12, %v4242_v12  ;;  %vm453_vm10 = vcmp.eq.s32.totalorder %v4604_v29, %v4656_v33  ;;  %vm332_vm12 = vcmp.eq.s32.totalorder %v4604_v29, %v4659_v34  ;;  %v4096_v29 = vpack.i.bf16 %v347_v24, %v348_v25 }
  0x61   :  { %536 = vmatprep.subr.mxu1 %v4241_v2  ;;  %415 = vmatprep.subr.mxu0 %v4241_v2 }
  0x62   :  { %3925 = vmatpush2.msk.msra.mxu1 %vm455_vm8, %v4242_v12  ;;  %3899 = vmatpush2.msk.msra.mxu0 %vm334_vm6, %v4242_v12  ;;  %vm452_vm8 = vcmp.eq.s32.totalorder %v4615_v30, %v4656_v33  ;;  %vm331_vm6 = vcmp.eq.s32.totalorder %v4615_v30, %v4659_v34  ;;  %v4101_v30 = vpack.i.bf16 %v468_v27, %v469_v28 }
  0x63   :  { %538 = vmatprep.subr.mxu1 %v4241_v2  ;;  %417 = vmatprep.subr.mxu0 %v4241_v2 }
  0x64   :  { %3926 = vmatpush2.msk.msra.mxu1 %vm454_vm4, %v4242_v12  ;;  %3900 = vmatpush2.msk.msra.mxu0 %vm333_vm5, %v4242_v12  ;;  %vm451_vm4 = vcmp.eq.s32.totalorder %v4626_v31, %v4656_v33  ;;  %vm330_vm5 = vcmp.eq.s32.totalorder %v4626_v31, %v4659_v34 }
  0x65   :  { %540 = vmatprep.subr.mxu1 %v4241_v2  ;;  %419 = vmatprep.subr.mxu0 %v4241_v2 }
  0x66   :  { %3927 = vmatpush2.msk.msra.mxu1 %vm453_vm10, %v4242_v12  ;;  %3901 = vmatpush2.msk.msra.mxu0 %vm332_vm12, %v4242_v12  ;;  %vm450_vm10 = vcmp.eq.s32.totalorder %v4637_v32, %v4656_v33  ;;  %vm329_vm12 = vcmp.eq.s32.totalorder %v4637_v32, %v4659_v34 }
  0x67   :  { %542 = vmatprep.subr.mxu1 %v4241_v2  ;;  %421 = vmatprep.subr.mxu0 %v4241_v2 }
  0x68   :  { %3928 = vmatpush2.msk.msra.mxu1 %vm452_vm8, %v4242_v12  ;;  %3902 = vmatpush2.msk.msra.mxu0 %vm331_vm6, %v4242_v12  ;;  %vm560_vm8 = vcmask 1040384   ;;  %vm562_vm6 = vcmask 1041408  }
  0x69   :  { %544 = vmatprep.subr.mxu1 %v4241_v2  ;;  %423 = vmatprep.subr.mxu0 %v4241_v2 }
  0x6a   :  { %3929 = vmatpush2.msk.msra.mxu1 %vm451_vm4, %v4242_v12  ;;  %3903 = vmatpush2.msk.msra.mxu0 %vm330_vm5, %v4242_v12  ;;  %vm7723_vm4 = vcmp.eq.s32.totalorder %v4412_v18, %v4659_v34  ;;  %vm7724_vm5 = vcmp.eq.s32.totalorder %v4429_v19, %v4656_v33 }
  0x6b   :  { %546 = vmatprep.subr.mxu1 %v4241_v2  ;;  %425 = vmatprep.subr.mxu0 %v4241_v2 }
  0x6c   :  { %3930 = vmatpush2.msk.msra.mxu1 %vm450_vm10, %v4242_v12  ;;  %3931 = vmatprep.mubr.msk.f32.mxu1 %vm119_vm0, %v4304_v3  ;;  %vm7725_vm10 = vcmp.eq.s32.totalorder %v4412_v18, %v4656_v33 }
  0x6d   :  { %3904 = vmatpush2.msk.msra.mxu0 %vm329_vm12, %v4242_v12  ;;  %3905 = vmatprep.mubr.msk.f32.mxu0 %vm119_vm0, %v4304_v3  ;;  %v350_v3 = vsel %vm325_vm14, 1.0, %v4241_v2  ;;  %v4086_v12 = vpack.i.bf16 %v470_v5, %v471_v8  ;;  %vm612_vm14 = vcmask 1042432   ;;  %vm7726_vm12 = vcmp.eq.s32.totalorder %v4463_v21, %v4659_v34 }
  0x6e   :  { %549 = vmatmul.mubr.f32.vlgmr.msra.gmra.mxu1 %v4298_v1  ;;  %428 = vmatmul.mubr.f32.vlgmr.msra.gmra.mxu0 %v4298_v1  ;;  %v349_v1 = vsel %vm324_vm3, 1.0, %v4241_v2  ;;  %vm599_vm3 = vcmask 23552  }
  0x6f   :  { %777 = vmatprep.mubr.f32.mxu1 %v4241_v2  ;;  %688 = vmatprep.mubr.f32.mxu0 %v4241_v2  ;;  %v4081_v6 = vpack.i.bf16 %v349_v1, %v350_v3 }
  0xf9   :  { %v308_v35 = vpop.f32.mrf.mxu1 }
  0xfa   :  { %v555_v36 = vrot.slane %v308_v35, 7  ;;  %v576_v47 = vrot.slane %v308_v35, 1 }
  0xfb   :  { %v188_v37 = vpop.f32.mrf.mxu0  ;;  %v310_v38 = vpop.f32.mrf.mxu1 }
  0xfc   :  { %v561_v39 = vsel %vm560_vm8, %v188_v37, %v555_v36  ;;  %v572_v41 = vrot.slane %v188_v37, 1  ;;  %v25_v38 = vld [vmem:[%s7627_s1] sm:$0xff] }
  0xfd   :  { %v190_v40 = vpop.f32.mrf.mxu0 }
  0xfe   :  { %v574_v50 = vsel %vm560_vm8, %v572_v41, %v308_v35  ;;  %v26_v40 = vld [vmem:[%s7627_s1 + $0x8] sm:$0xff]  ;;  %v27_v41 = vld [vmem:[%s7627_s1 + $0x10] sm:$0xff] }
 0x12e   :  { %v550_v42 = vpop.f32.mrf.mxu1  ;;  %v429_v43 = vpop.f32.mrf.mxu0 }
 0x12f   :  { %v567_v44 = vrot.slane %v550_v42, 6  ;;  %v558_v45 = vrot.slane %v429_v43, 6  ;;  %v564_v46 = vrot.slane %v429_v43, 7  ;;  %v578_v51 = vrot.slane %v550_v42, 7  ;;  %v28_v42 = vld [vmem:[%s7627_s1 + $0x18] sm:$0xff]  ;;  %s4248_s1 = smov 28  }
 0x130   :  { %v431_v48 = vpop.f32.mrf.mxu0  ;;  %v552_v49 = vpop.f32.mrf.mxu1  ;;  %v580_v55 = vsel %vm560_vm8, %v576_v47, %v429_v43  ;;  %v465_v47 = vsel %vm7725_vm10, 1.0, %v4241_v2  ;;  %vm7736_vm10 = vcmp.eq.s32.totalorder %v4353_v14, %v4326_v10 }
 0x131   :  { %v575_v52 = vsel %vm562_vm6, %v574_v50, %v564_v46  ;;  %v569_v53 = vsel %vm560_vm8, %v308_v35, %v564_v46  ;;  %v563_v54 = vsel %vm562_vm6, %v561_v39, %v558_v45  ;;  %v581_v61 = vsel %vm562_vm6, %v580_v55, %v578_v51 }
 0x132   :  { %587 = vrot.lane.b32.xlu0 %v575_v52, %s4243_s0  ;;  %v570_v56 = vsel %vm562_vm6, %v569_v53, %v567_v44  ;;  %v344_v44 = vsel %vm7723_vm4, 1.0, %v4241_v2  ;;  %v464_v46 = vsel %vm7724_vm5, 1.0, %v4241_v2  ;;  %v341_v49 = vsel %vm7726_vm12, 1.0, %v4241_v2 }
 0x133   :  { %583 = vrot.lane.b32.xlu1 %v570_v56, %s4244_s23  ;;  %v5079_v48 = vpack.i.bf16 %v464_v46, %v465_v47  ;;  %v342_v50 = vsel %vm7727_vm7, 1.0, %v4241_v2  ;;  %v462_v52 = vsel %vm7728_vm9, 1.0, %v4241_v2  ;;  %v463_v53 = vsel %vm7729_vm11, 1.0, %v4241_v2 }
 0x134   :  { %v5089_v51 = vpack.i.bf16 %v341_v49, %v342_v50  ;;  %v339_v55 = vsel %vm7730_vm13, 1.0, %v4241_v2  ;;  %v340_v56 = vsel %vm7731_vm15, 1.0, %v4241_v2  ;;  %vm1088_vm4 = vcmask 408576  }
 0x135   :  { %v5109_v57 = vpack.i.bf16 %v339_v55, %v340_v56  ;;  %vm7735_vm5 = vcmp.eq.s32.totalorder %v4342_v13, %v4326_v10  ;;  %vm7737_vm12 = vcmp.eq.s32.totalorder %v4364_v15, %v4326_v10  ;;  %vm1115_vm7 = vcmask 179200  }
 0x136   :  { %591 = vrot.lane.b32.xlu0 %v581_v61, %s4245_s24  ;;  %vm1149_vm9 = vcmask 1043456   ;;  %vm7738_vm11 = vcmp.eq.s32.totalorder %v4395_v17, %v4656_v33  ;;  %vm7739_vm13 = vcmp.eq.s32.totalorder %v4378_v16, %v4656_v33  ;;  %vm7740_vm15 = vcmp.eq.s32.totalorder %v4395_v17, %v4659_v34 }
 0x137   :  { %4077 = vrot.lane.b32.xlu1 %v4076_v0, %s4246_s25  ;;  %v95_v0 = vsel %vm7735_vm5, 1.0, %v4241_v2  ;;  %v466_v55 = vsel %vm7738_vm11, 1.0, %v4241_v2  ;;  %v467_v56 = vsel %vm7739_vm13, 1.0, %v4241_v2  ;;  %vm7744_vm5 = vcmp.eq.s32.totalorder %v4446_v20, %v4315_v7 }
 0x138   :  { %vm7748_vm11 = vcmp.eq.s32.totalorder %v4306_v4, %v4315_v7  ;;  %vm7749_vm13 = vcmp.eq.s32.totalorder %v4306_v4, %v4656_v33 }
 0x13a   :  { %4082 = vrot.lane.b32.xlu0 %v4081_v6, %s4244_s23  ;;  %v94_v6 = vsel %vm7736_vm10, 1.0, %v4241_v2  ;;  %vm7745_vm10 = vcmp.eq.s32.totalorder %v4463_v21, %v4315_v7 }
 0x13b   :  { %4087 = vrot.lane.b32.xlu1 %v4086_v12, %s4247_s26 }
 0x13e   :  { %4092 = vrot.lane.b32.xlu0 %v4091_v9, %s4246_s25  ;;  %v93_v9 = vsel %vm7737_vm12, 1.0, %v4241_v2  ;;  %vm7746_vm12 = vcmp.eq.s32.totalorder %v4480_v22, %v4315_v7 }
 0x13f   :  { %4097 = vrot.lane.b32.xlu1 %v4096_v29, %s4244_s23 }
 0x142   :  { %4102 = vrot.lane.b32.xlu0 %v4101_v30, %s4247_s26 }
 0x143   :  { %4107 = vrot.lane.b32.xlu1 %v4106_v26, %s4246_s25 }
 0x1a4   :  { %v588_v31 = vpop.permute.xlu0 %587 }
 0x1a5   :  { %v584_v32 = vpop.permute.xlu1 %583 }
 0x1a6   :  { %v595_v35 = vsel %vm594_vm2, %v563_v54, %v584_v32  ;;  %v596_v36 = vsel %vm119_vm0, %v584_v32, %v588_v31  ;;  %vm7722_vm0 = vcmp.eq.s32.totalorder %v4429_v19, %v4659_v34  ;;  %v5099_v54 = vpack.i.bf16 %v462_v52, %v463_v53 }
 0x1a7   :  { %3932 = vmatprep.subr.msk.mxu0 %vm612_vm14, %v596_v36  ;;  %v343_v43 = vsel %vm7722_vm0, 1.0, %v4241_v2  ;;  %vm7734_vm0 = vcmp.eq.s32.totalorder %v4331_v11, %v4326_v10 }
 0x1a8   :  { %v592_v37 = vpop.permute.xlu0 %591  ;;  %3933 = vmatpush1.msk.msra.mxu0 %vm612_vm14, %v595_v35  ;;  %v5069_v45 = vpack.i.bf16 %v343_v43, %v344_v44  ;;  %v96_v61 = vsel %vm7734_vm0, 1.0, %v4241_v2  ;;  %vm7743_vm0 = vcmp.eq.s32.totalorder %v4429_v19, %v4315_v7 }
 0x1a9   :  { %v598_v39 = vsel %vm597_vm1, %v588_v31, %v592_v37  ;;  %3938 = vmatprep.subr.msk.mxu1 %vm612_vm14, %v592_v37  ;;  %3934 = vmatmul.mubr.msk.f32.vlgmr.msra.gmra.mxu0 %vm599_vm3, %v25_v38  ;;  %vm7733_vm1 = vcmp.eq.s32.totalorder %v4480_v22, %v4656_v33  ;;  %v4078_v62 = vpop.permute.xlu1 %4077 }
 0x1aa   :  { %3939 = vmatpush1.msk.msra.mxu1 %vm612_vm14, %v598_v39  ;;  %694 = vmatprep.mubr.f32.mxu0 %v4241_v2  ;;  %vm7732_vm14 = vcmp.eq.s32.totalorder %v4497_v23, %v4656_v33  ;;  %v461_v59 = vsel %vm7733_vm1, 1.0, %v4241_v2  ;;  %v4080_v1 = vunpack.i.h.bf16 %v4078_v62  ;;  %v4079_v3 = vunpack.i.l.bf16 %v4078_v62 }
 0x1ab   :  { %3940 = vmatmul.mubr.msk.f32.vlgmr.msra.gmra.mxu1 %vm599_vm3, %v25_v38  ;;  %2347 = vmatprep.subr.mxu0 %v4241_v2  ;;  %v460_v58 = vsel %vm7732_vm14, 1.0, %v4241_v2  ;;  %vm7741_vm14 = vcmp.eq.s32.totalorder %v4378_v16, %v4659_v34  ;;  %v4116_v62 = vpack.i.bf16 %v466_v55, %v467_v56  ;;  %vm7742_vm1 = vcmp.eq.s32.totalorder %v4412_v18, %v4315_v7 }
 0x1ac   :  { %783 = vmatprep.mubr.f32.mxu1 %v4241_v2  ;;  %v5119_v60 = vpack.i.bf16 %v460_v58, %v461_v59  ;;  %v4083_v63 = vpop.permute.xlu0 %4082  ;;  %v1101_v11 = vsel %vm1088_vm4, %v96_v61, %v4079_v3  ;;  %v1100_v13 = vsel %vm1088_vm4, %v95_v0, %v4080_v1  ;;  %v345_v59 = vsel %vm7740_vm15, 1.0, %v4241_v2 }
 0x1ad   :  { %3935 = vmatmul.mubr.msk.f32.gmra.mxu0 %vm599_vm3, %v26_v40  ;;  %v4084_v5 = vunpack.i.l.bf16 %v4083_v63  ;;  %v4085_v8 = vunpack.i.h.bf16 %v4083_v63  ;;  %v4088_v12 = vpop.permute.xlu1 %4087  ;;  %v346_v61 = vsel %vm7741_vm14, 1.0, %v4241_v2  ;;  %v223_v1 = vsel %vm7742_vm1, 1.0, %v4241_v2 }
 0x1ae   :  { %700 = vmatprep.mubr.f32.mxu0 %v4241_v2  ;;  %v4090_v25 = vunpack.i.h.bf16 %v4088_v12  ;;  %v4089_v26 = vunpack.i.l.bf16 %v4088_v12  ;;  %v4111_v0 = vpack.i.bf16 %v345_v59, %v346_v61  ;;  %v222_v3 = vsel %vm7743_vm0, 1.0, %v4241_v2 }
 0x1af   :  { %3941 = vmatmul.mubr.msk.f32.gmra.mxu1 %vm599_vm3, %v26_v40  ;;  %v1114_v14 = vsel %vm594_vm2, %v1101_v11, %v4084_v5  ;;  %v1113_v32 = vsel %vm594_vm2, %v1100_v13, %v4085_v8  ;;  %vm7750_vm15 = vcmp.eq.s32.totalorder %v4306_v4, %v4659_v34  ;;  %vm826_vm14 = vcmask 228352  }
 0x1b0   :  { %789 = vmatprep.mubr.f32.mxu1 %v4241_v2  ;;  %v4093_v24 = vpop.permute.xlu0 %4092  ;;  %v1128_v29 = vsel %vm1115_vm7, %v4084_v5, %v4089_v26  ;;  %v1127_v30 = vsel %vm1115_vm7, %v4085_v8, %v4090_v25  ;;  %v221_v5 = vsel %vm7744_vm5, 1.0, %v4241_v2  ;;  %v5203_v8 = vpack.i.bf16 %v222_v3, %v223_v1 }
 0x1b1   :  { %3936 = vmatmul.mubr.msk.f32.gmra.mxu0 %vm599_vm3, %v27_v41  ;;  %v4095_v27 = vunpack.i.h.bf16 %v4093_v24  ;;  %v4094_v28 = vunpack.i.l.bf16 %v4093_v24  ;;  %3944 = vmatprep.subr.msk.mxu1 %vm1149_vm9, %v1128_v29  ;;  %v4098_v15 = vpop.permute.xlu1 %4097  ;;  %vm7751_vm1 = vcmp.eq.s32.totalorder %v4378_v16, %v4326_v10  ;;  %vm7752_vm0 = vcmp.eq.s32.totalorder %v4395_v17, %v4326_v10 }
 0x1b2   :  { %706 = vmatprep.mubr.f32.mxu0 %v4241_v2  ;;  %3945 = vmatpush1.msk.msra.mxu1 %vm1149_vm9, %v1114_v14  ;;  %v4100_v39 = vunpack.i.h.bf16 %v4098_v15  ;;  %v4099_v40 = vunpack.i.l.bf16 %v4098_v15  ;;  %vm7747_vm9 = vcmp.eq.s32.totalorder %v4497_v23, %v4315_v7  ;;  %v5253_v14 = vsel %vm7749_vm13, 1.0, %v4241_v2 }
 0x1b3   :  { %3942 = vmatmul.mubr.msk.f32.gmra.mxu1 %vm599_vm3, %v27_v41  ;;  %v1099_v35 = vsel %vm1088_vm4, %v94_v6, %v4094_v28  ;;  %v1098_v36 = vsel %vm1088_vm4, %v93_v9, %v4095_v27  ;;  %1164 = vmatprep.subr.mxu1 %v1127_v30  ;;  %v220_v6 = vsel %vm7745_vm10, 1.0, %v4241_v2  ;;  %v219_v9 = vsel %vm7746_vm12, 1.0, %v4241_v2 }
 0x1b4   :  { %795 = vmatprep.mubr.f32.mxu1 %v4241_v2  ;;  %v4103_v31 = vpop.permute.xlu0 %4102  ;;  %1165 = vmatpush1.msra.mxu1 %v1113_v32  ;;  %v1111_v44 = vsel %vm594_vm2, %v1098_v36, %v4100_v39  ;;  %v5207_v11 = vpack.i.bf16 %v220_v6, %v221_v5  ;;  %v218_v12 = vsel %vm7747_vm9, 1.0, %v4241_v2  ;;  %v5243_v27 = vsel %vm7748_vm11, 1.0, %v4241_v2 }
 0x1b5   :  { %3937 = vmatmul.mubr.msk.f32.gmra.mxu0 %vm599_vm3, %v28_v42  ;;  %v4105_v37 = vunpack.i.h.bf16 %v4103_v31  ;;  %v4104_v38 = vunpack.i.l.bf16 %v4103_v31  ;;  %v5229_v13 = vpack.i.bf16 %v218_v12, %v219_v9  ;;  %v5262_v7 = vsel %vm7750_vm15, 1.0, %v4241_v2  ;;  %v4108_v34 = vpop.permute.xlu1 %4107 }
 0x1b6   :  { %v4109_v5 = vunpack.i.l.bf16 %v4108_v34  ;;  %vm7753_vm5 = vcmp.eq.s32.totalorder %v4412_v18, %v4326_v10  ;;  %vm7754_vm10 = vcmp.eq.s32.totalorder %v4429_v19, %v4326_v10  ;;  %vm7755_vm12 = vcmp.eq.s32.totalorder %v4446_v20, %v4326_v10 }
 0x1b7   :  { %3943 = vmatmul.mubr.msk.f32.gmra.mxu1 %vm599_vm3, %v28_v42  ;;  %v1126_v41 = vsel %vm1115_vm7, %v4099_v40, %v4104_v38  ;;  %v1112_v42 = vsel %vm594_vm2, %v1099_v35, %v4099_v40  ;;  %v1125_v43 = vsel %vm1115_vm7, %v4100_v39, %v4105_v37  ;;  %vm7756_vm9 = vcmp.eq.s32.totalorder %v4463_v21, %v4326_v10 }
 0x1b8   :  { %1220 = vmatprep.mubr.f32.mxu1 %v4241_v2  ;;  %1166 = vmatprep.subr.mxu1 %v1126_v41  ;;  %vm7757_vm11 = vcmp.eq.s32.totalorder %v4480_v22, %v4326_v10  ;;  %vm7758_vm13 = vcmp.eq.s32.totalorder %v4497_v23, %v4326_v10  ;;  %vm7759_vm15 = vcmp.eq.s32.totalorder %v4306_v4, %v4326_v10 }
 0x1b9   :  { %1167 = vmatpush1.msra.mxu1 %v1112_v42  ;;  %v5370_v23 = vsel %vm7759_vm15, 1.0, %v4241_v2 }
 0x1ba   :  { %1168 = vmatprep.subr.mxu1 %v1125_v43 }
 0x1bb   :  { %1169 = vmatpush1.msra.mxu1 %v1111_v44 }
 0x269   :  { %v5225_v24 = vpop.f32.mrf.mxu0 }
 0x26b   :  { %v5149_v46 = vpop.f32.mrf.mxu1  ;;  %v692_v25 = vpop.f32.mrf.mxu0 }
 0x26c   :  { %851 = vrot.lane.b32.xlu1 %v5149_v46, %s4248_s1 }
 0x26d   :  { %v781_v47 = vpop.f32.mrf.mxu1  ;;  %v5233_v26 = vpop.f32.mrf.mxu0 }
 0x26e   :  { %853 = vrot.lane.b32.xlu0 %v781_v47, %s4248_s1 }
 0x26f   :  { %v5154_v49 = vpop.f32.mrf.mxu1  ;;  %v698_v28 = vpop.f32.mrf.mxu0 }
 0x270   :  { %855 = vrot.lane.b32.xlu1 %v5154_v49, %s4248_s1 }
 0x271   :  { %v787_v50 = vpop.f32.mrf.mxu1  ;;  %v5255_v29 = vpop.f32.mrf.mxu0 }
 0x272   :  { %857 = vrot.lane.b32.xlu0 %v787_v50, %s4248_s1 }
 0x273   :  { %v5159_v52 = vpop.f32.mrf.mxu1  ;;  %v704_v30 = vpop.f32.mrf.mxu0 }
 0x274   :  { %859 = vrot.lane.b32.xlu1 %v5159_v52, %s4248_s1 }
 0x275   :  { %v793_v53 = vpop.f32.mrf.mxu1  ;;  %v5269_v33 = vpop.f32.mrf.mxu0 }
 0x276   :  { %861 = vrot.lane.b32.xlu0 %v793_v53, %s4248_s1 }
 0x277   :  { %v5172_v58 = vpop.f32.mrf.mxu1  ;;  %v710_v31 = vpop.f32.mrf.mxu0 }
 0x278   :  { %863 = vrot.lane.b32.xlu1 %v5172_v58, %s4248_s1 }
 0x279   :  { %v799_v63 = vpop.f32.mrf.mxu1 }
 0x27a   :  { %865 = vrot.lane.b32.xlu0 %v799_v63, %s4248_s1 }
 0x27c   :  { %4117 = vrot.lane.b32.xlu1 %v4116_v62, %s4247_s26 }
 0x27e   :  { %4112 = vrot.lane.b32.xlu0 %v4111_v0, %s4244_s23 }
 0x280   :  { %4127 = vrot.lane.b32.xlu1 %v5069_v45, %s4244_s23 }
 0x282   :  { %4122 = vrot.lane.b32.xlu0 %v5203_v8, %s4246_s25 }
 0x284   :  { %4137 = vrot.lane.b32.xlu1 %v5207_v11, %s4246_s25 }
 0x286   :  { %4132 = vrot.lane.b32.xlu0 %v5079_v48, %s4247_s26 }
 0x288   :  { %4147 = vrot.lane.b32.xlu1 %v5099_v54, %s4247_s26 }
 0x28a   :  { %4142 = vrot.lane.b32.xlu0 %v5089_v51, %s4244_s23 }
 0x28c   :  { %4157 = vrot.lane.b32.xlu1 %v5109_v57, %s4244_s23 }
 0x28e   :  { %4152 = vrot.lane.b32.xlu0 %v5229_v13, %s4246_s25 }
 0x290   :  { %810 = vrot.lane.b32.xlu1 %v5225_v24, %s4248_s1 }
 0x292   :  { %4162 = vrot.lane.b32.xlu0 %v5119_v60, %s4247_s26 }
 0x294   :  { %945 = vrot.lane.b32.xlu1 %v5243_v27, %s4246_s25 }
 0x296   :  { %812 = vrot.lane.b32.xlu0 %v692_v25, %s4248_s1 }
 0x298   :  { %1049 = vrot.lane.b32.xlu1 %v5253_v14, %s4247_s26 }
 0x29a   :  { %997 = vrot.lane.b32.xlu0 %v5262_v7, %s4244_s23 }
 0x29c   :  { %816 = vrot.lane.b32.xlu1 %v698_v28, %s4248_s1 }
 0x29e   :  { %814 = vrot.lane.b32.xlu0 %v5233_v26, %s4248_s1 }
 0x2a0   :  { %820 = vrot.lane.b32.xlu1 %v704_v30, %s4248_s1 }
 0x2a2   :  { %818 = vrot.lane.b32.xlu0 %v5255_v29, %s4248_s1 }
 0x2a4   :  { %824 = vrot.lane.b32.xlu1 %v710_v31, %s4248_s1 }
 0x2a6   :  { %822 = vrot.lane.b32.xlu0 %v5269_v33, %s4248_s1 }
 0x2de   :  { %v852_v15 = vpop.permute.xlu1 %851 }
 0x2df   :  { %v879_v32 = vmax.f32 %v692_v25, %v852_v15 }
 0x2e0   :  { %v854_v35 = vpop.permute.xlu0 %853 }
 0x2e1   :  { %v867_v36 = vsel %vm826_vm14, %v852_v15, %v854_v35  ;;  %v887_v37 = vmax.f32 %v879_v32, 0.0 }
 0x2e2   :  { %v880_v38 = vmax.f32 %v5149_v46, %v867_v36  ;;  %v856_v39 = vpop.permute.xlu1 %855 }
 0x2e3   :  { %v881_v40 = vmax.f32 %v698_v28, %v856_v39  ;;  %903 = vrot.lane.b32.xlu0 %v887_v37, %s4249_s11 }
 0x2e4   :  { %v888_v41 = vmax.f32 %v880_v38, 0.0  ;;  %v858_v42 = vpop.permute.xlu0 %857 }
 0x2e5   :  { %v868_v43 = vsel %vm826_vm14, %v856_v39, %v858_v42  ;;  %v889_v44 = vmax.f32 %v881_v40, 0.0  ;;  %v5318_v42 = vsel %vm7754_vm10, 1.0, %v4241_v2  ;;  %vm3799_vm10 = vcmask 31744  }
 0x2e6   :  { %v882_v47 = vmax.f32 %v5154_v49, %v868_v43  ;;  %v860_v50 = vpop.permute.xlu1 %859  ;;  %905 = vrot.lane.b32.xlu1 %v888_v41, %s4249_s11 }
 0x2e7   :  { %v883_v53 = vmax.f32 %v704_v30, %v860_v50  ;;  %907 = vrot.lane.b32.xlu0 %v889_v44, %s4249_s11 }
 0x2e8   :  { %v890_v55 = vmax.f32 %v882_v47, 0.0  ;;  %v862_v46 = vpop.permute.xlu0 %861 }
 0x2e9   :  { %v869_v56 = vsel %vm826_vm14, %v860_v50, %v862_v46  ;;  %v891_v59 = vmax.f32 %v883_v53, 0.0  ;;  %v5327_v53 = vsel %vm7755_vm12, 1.0, %v4241_v2  ;;  %vm3801_vm12 = vcmask 39936  }
 0x2ea   :  { %v884_v61 = vmax.f32 %v5159_v52, %v869_v56  ;;  %v864_v62 = vpop.permute.xlu1 %863  ;;  %909 = vrot.lane.b32.xlu1 %v890_v55, %s4249_s11  ;;  %v92_v52 = vsel %vm7751_vm1, 1.0, %v4241_v2  ;;  %vm919_vm1 = vcmask 457728  }
 0x2eb   :  { %v885_v63 = vmax.f32 %v710_v31, %v864_v62  ;;  %911 = vrot.lane.b32.xlu0 %v891_v59, %s4249_s11  ;;  %v4110_v31 = vunpack.i.h.bf16 %v4108_v34  ;;  %v1097_v16 = vsel %vm1088_vm4, %v92_v52, %v4109_v5  ;;  %v5310_v34 = vsel %vm7753_vm5, 1.0, %v4241_v2 }
 0x2ec   :  { %v892_v49 = vmax.f32 %v884_v61, 0.0  ;;  %v866_v0 = vpop.permute.xlu0 %865  ;;  %vm1886_vm5 = vcmask 613376  }
 0x2ed   :  { %v870_v1 = vsel %vm826_vm14, %v864_v62, %v866_v0  ;;  %v893_v3 = vmax.f32 %v885_v63, 0.0  ;;  %v5335_v62 = vsel %vm7756_vm9, 1.0, %v4241_v2 }
 0x2ee   :  { %v886_v6 = vmax.f32 %v5172_v58, %v870_v1  ;;  %913 = vrot.lane.b32.xlu1 %v892_v49, %s4249_s11  ;;  %v4118_v9 = vpop.permute.xlu1 %4117  ;;  %v91_v58 = vsel %vm7752_vm0, 1.0, %v4241_v2  ;;  %vm1321_vm0 = vcmask 637952  }
 0x2ef   :  { %915 = vrot.lane.b32.xlu0 %v893_v3, %s4249_s11  ;;  %v4119_v12 = vunpack.i.l.bf16 %v4118_v9  ;;  %v4120_v30 = vunpack.i.h.bf16 %v4118_v9  ;;  %v1096_v41 = vsel %vm1088_vm4, %v91_v58, %v4110_v31  ;;  %v5351_v31 = vsel %vm7757_vm11, 1.0, %v4241_v2 }
 0x2f0   :  { %v894_v25 = vmax.f32 %v886_v6, 0.0  ;;  %v4113_v28 = vpop.permute.xlu0 %4112 }
 0x2f1   :  { %v4114_v15 = vunpack.i.l.bf16 %v4113_v28  ;;  %v4115_v32 = vunpack.i.h.bf16 %v4113_v28 }
 0x2f2   :  { %917 = vrot.lane.b32.xlu1 %v894_v25, %s4249_s11  ;;  %v4128_v35 = vpop.permute.xlu1 %4127  ;;  %s4256_s11 = smov 3  }
 0x2f3   :  { %v1124_v36 = vsel %vm1115_vm7, %v4114_v15, %v4119_v12  ;;  %v1110_v37 = vsel %vm594_vm2, %v1097_v16, %v4114_v15  ;;  %v1123_v17 = vsel %vm1115_vm7, %v4115_v32, %v4120_v30  ;;  %v4129_v43 = vunpack.i.l.bf16 %v4128_v35 }
 0x2f4   :  { %v4123_v38 = vpop.permute.xlu0 %4122  ;;  %1170 = vmatprep.subr.mxu1 %v1124_v36  ;;  %v1109_v18 = vsel %vm594_vm2, %v1096_v41, %v4115_v32  ;;  %v4130_v47 = vunpack.i.h.bf16 %v4128_v35  ;;  %v5359_v36 = vsel %vm7758_vm13, 1.0, %v4241_v2 }
 0x2f5   :  { %v4125_v39 = vunpack.i.h.bf16 %v4123_v38  ;;  %v4124_v40 = vunpack.i.l.bf16 %v4123_v38  ;;  %1171 = vmatpush1.msra.mxu1 %v1110_v37 }
 0x2f6   :  { %1172 = vmatprep.subr.mxu1 %v1123_v17  ;;  %v4138_v44 = vpop.permute.xlu1 %4137 }
 0x2f7   :  { %1173 = vmatpush1.msra.mxu1 %v1109_v18  ;;  %v1095_v50 = vsel %vm1088_vm4, %v5310_v34, %v4124_v40  ;;  %v4139_v19 = vunpack.i.l.bf16 %v4138_v44  ;;  %v4140_v59 = vunpack.i.h.bf16 %v4138_v44  ;;  %v1094_v61 = vsel %vm1088_vm4, %v5318_v42, %v4125_v39 }
 0x2f8   :  { %v4133_v55 = vpop.permute.xlu0 %4132  ;;  %v1108_v49 = vsel %vm594_vm2, %v1095_v50, %v4129_v43  ;;  %v1107_v6 = vsel %vm594_vm2, %v1094_v61, %v4130_v47 }
 0x2f9   :  { %v4135_v46 = vunpack.i.h.bf16 %v4133_v55  ;;  %v4134_v56 = vunpack.i.l.bf16 %v4133_v55  ;;  %v1093_v9 = vsel %vm1088_vm4, %v5327_v53, %v4139_v19  ;;  %v1092_v12 = vsel %vm1088_vm4, %v5335_v62, %v4140_v59 }
 0x2fa   :  { %v4148_v63 = vpop.permute.xlu1 %4147 }
 0x2fb   :  { %v4149_v20 = vunpack.i.l.bf16 %v4148_v63  ;;  %v1122_v0 = vsel %vm1115_vm7, %v4129_v43, %v4134_v56  ;;  %v1121_v1 = vsel %vm1115_vm7, %v4130_v47, %v4135_v46  ;;  %v4150_v5 = vunpack.i.h.bf16 %v4148_v63 }
 0x2fc   :  { %v4143_v3 = vpop.permute.xlu0 %4142  ;;  %1174 = vmatprep.subr.mxu1 %v1122_v0 }
 0x2fd   :  { %v4145_v52 = vunpack.i.h.bf16 %v4143_v3  ;;  %v4144_v21 = vunpack.i.l.bf16 %v4143_v3  ;;  %1175 = vmatpush1.msra.mxu1 %v1108_v49 }
 0x2fe   :  { %v4158_v25 = vpop.permute.xlu1 %4157  ;;  %1176 = vmatprep.subr.mxu1 %v1121_v1 }
 0x2ff   :  { %1177 = vmatpush1.msra.mxu1 %v1107_v6  ;;  %v1120_v28 = vsel %vm1115_vm7, %v4144_v21, %v4149_v20  ;;  %v1106_v30 = vsel %vm594_vm2, %v1093_v9, %v4144_v21  ;;  %v1119_v58 = vsel %vm1115_vm7, %v4145_v52, %v4150_v5  ;;  %v1105_v32 = vsel %vm594_vm2, %v1092_v12, %v4145_v52 }
 0x300   :  { %v4153_v15 = vpop.permute.xlu0 %4152  ;;  %1178 = vmatprep.subr.mxu1 %v1120_v28  ;;  %v4159_v37 = vunpack.i.l.bf16 %v4158_v25  ;;  %v4160_v22 = vunpack.i.h.bf16 %v4158_v25 }
 0x301   :  { %v4155_v35 = vunpack.i.h.bf16 %v4153_v15  ;;  %v4154_v16 = vunpack.i.l.bf16 %v4153_v15  ;;  %1179 = vmatpush1.msra.mxu1 %v1106_v30 }
 0x302   :  { %v811_v38 = vpop.permute.xlu1 %810  ;;  %1180 = vmatprep.subr.mxu1 %v1119_v58 }
 0x303   :  { %1181 = vmatpush1.msra.mxu1 %v1105_v32  ;;  %v1091_v17 = vsel %vm1088_vm4, %v5351_v31, %v4154_v16  ;;  %v1090_v43 = vsel %vm1088_vm4, %v5359_v36, %v4155_v35 }
 0x304   :  { %v4163_v39 = vpop.permute.xlu0 %4162  ;;  %v1104_v44 = vsel %vm594_vm2, %v1091_v17, %v4159_v37  ;;  %v1103_v19 = vsel %vm594_vm2, %v1090_v43, %v4160_v22 }
 0x305   :  { %v4165_v40 = vunpack.i.h.bf16 %v4163_v39  ;;  %v4164_v41 = vunpack.i.l.bf16 %v4163_v39 }
 0x306   :  { %v946_v18 = vpop.permute.xlu1 %945 }
 0x307   :  { %v1118_v47 = vsel %vm1115_vm7, %v4159_v37, %v4164_v41  ;;  %v1117_v50 = vsel %vm1115_vm7, %v4160_v22, %v4165_v40  ;;  %v1089_v56 = vsel %vm1088_vm4, %v5370_v23, %v946_v18 }
 0x308   :  { %v813_v55 = vpop.permute.xlu0 %812  ;;  %1182 = vmatprep.subr.mxu1 %v1118_v47 }
 0x309   :  { %v827_v46 = vsel %vm826_vm14, %v811_v38, %v813_v55  ;;  %1183 = vmatpush1.msra.mxu1 %v1104_v44 }
 0x30a   :  { %v835_v59 = vmax.f32 %v5225_v24, %v827_v46  ;;  %1184 = vmatprep.subr.mxu1 %v1117_v50  ;;  %v1050_v4 = vpop.permute.xlu1 %1049 }
 0x30b   :  { %1185 = vmatpush1.msra.mxu1 %v1103_v19 }
 0x30c   :  { %v998_v10 = vpop.permute.xlu0 %997  ;;  %v839_v49 = vmax.f32 %v835_v59, 0.0 }
 0x30d   :  { %v1116_v61 = vsel %vm1115_vm7, %v998_v10, %v1050_v4  ;;  %v1102_v63 = vsel %vm594_vm2, %v1089_v56, %v998_v10 }
 0x30e   :  { %1186 = vmatprep.subr.mxu1 %v1116_v61  ;;  %v817_v20 = vpop.permute.xlu1 %816 }
 0x30f   :  { %1187 = vmatpush1.msra.mxu1 %v1102_v63 }
 0x310   :  { %3946 = vmatmul.mubr.msk.f32.vlgmr.msra.gmra.mxu1 %vm594_vm2, %v839_v49  ;;  %v815_v0 = vpop.permute.xlu0 %814 }
 0x311   :  { %v828_v1 = vsel %vm826_vm14, %v815_v0, %v817_v20  ;;  %1226 = vmatprep.mubr.f32.mxu1 %v4241_v2 }
 0x312   :  { %v836_v24 = vmax.f32 %v5233_v26, %v828_v1  ;;  %v821_v3 = vpop.permute.xlu1 %820 }
 0x314   :  { %v840_v5 = vmax.f32 %v836_v24, 0.0  ;;  %v819_v6 = vpop.permute.xlu0 %818 }
 0x315   :  { %v829_v9 = vsel %vm826_vm14, %v819_v6, %v821_v3 }
 0x316   :  { %v837_v52 = vmax.f32 %v5255_v29, %v829_v9  ;;  %3947 = vmatmul.mubr.msk.f32.gmra.mxu1 %vm594_vm2, %v840_v5  ;;  %v825_v21 = vpop.permute.xlu1 %824 }
 0x317   :  { %1232 = vmatprep.mubr.f32.mxu1 %v4241_v2 }
 0x318   :  { %v841_v12 = vmax.f32 %v837_v52, 0.0  ;;  %v823_v25 = vpop.permute.xlu0 %822 }
 0x319   :  { %v830_v28 = vsel %vm826_vm14, %v823_v25, %v825_v21 }
 0x31a   :  { %v838_v30 = vmax.f32 %v5269_v33, %v830_v28  ;;  %3948 = vmatmul.mubr.msk.f32.gmra.mxu1 %vm594_vm2, %v841_v12 }
 0x31b   :  { %1238 = vmatprep.mubr.f32.mxu1 %v4241_v2 }
 0x31c   :  { %v842_v26 = vmax.f32 %v838_v30, 0.0 }
 0x31e   :  { %3949 = vmatmul.mubr.msk.f32.gmra.mxu1 %vm594_vm2, %v842_v26 }
 0x31f   :  { %1244 = vmatprep.mubr.f32.mxu1 %v4241_v2 }
 0x355   :  { %v904_v29 = vpop.permute.xlu0 %903 }
 0x358   :  { %v906_v15 = vpop.permute.xlu1 %905 }
 0x359   :  { %v920_v58 = vsel %vm919_vm1, %v904_v29, %v906_v15  ;;  %v908_v32 = vpop.permute.xlu0 %907 }
 0x35a   :  { %3950 = vmatmul.mubr.msk.f32.gmra.mxu1 %vm594_vm2, %v920_v58 }
 0x35b   :  { %1250 = vmatprep.mubr.f32.mxu1 %v4241_v2 }
 0x35c   :  { %v910_v33 = vpop.permute.xlu1 %909 }
 0x35d   :  { %v921_v35 = vsel %vm919_vm1, %v908_v32, %v910_v33  ;;  %v912_v16 = vpop.permute.xlu0 %911 }
 0x35e   :  { %3951 = vmatmul.mubr.msk.f32.gmra.mxu1 %vm594_vm2, %v921_v35 }
 0x35f   :  { %1256 = vmatprep.mubr.f32.mxu1 %v4241_v2 }
 0x360   :  { %v914_v37 = vpop.permute.xlu1 %913 }
 0x361   :  { %v922_v38 = vsel %vm919_vm1, %v912_v16, %v914_v37  ;;  %v916_v22 = vpop.permute.xlu0 %915 }
 0x362   :  { %3952 = vmatmul.mubr.msk.f32.gmra.mxu1 %vm594_vm2, %v922_v38 }
 0x363   :  { %1262 = vmatprep.mubr.f32.mxu1 %v4241_v2 }
 0x364   :  { %v918_v17 = vpop.permute.xlu1 %917 }
 0x365   :  { %v923_v39 = vsel %vm919_vm1, %v916_v22, %v918_v17 }
 0x366   :  { %3953 = vmatmul.mubr.msk.f32.gmra.mxu1 %vm594_vm2, %v923_v39 }
 0x367   :  { %1559 = vmatprep.mubr.f32.mxu1 %v4241_v2 }
 0x3d0   :  { %v5407_v40 = vpop.f32.mrf.mxu1 }
 0x3d2   :  { %v5409_v41 = vpop.f32.mrf.mxu1 }
 0x3d6   :  { %v5411_v43 = vpop.f32.mrf.mxu1 }
 0x3d8   :  { %v5413_v18 = vpop.f32.mrf.mxu1 }
 0x3da   :  { %v5415_v44 = vpop.f32.mrf.mxu1 }
 0x3dc   :  { %v1236_v47 = vpop.f32.mrf.mxu1 }
 0x3de   :  { %v5417_v50 = vpop.f32.mrf.mxu1 }
 0x3e0   :  { %v1242_v55 = vpop.f32.mrf.mxu1 }
 0x41a   :  { %v5419_v19 = vpop.f32.mrf.mxu1 }
 0x41b   :  { %1350 = vrot.lane.b32.xlu0 %v5419_v19, %s4248_s1 }
 0x41c   :  { %v1248_v46 = vpop.f32.mrf.mxu1 }
 0x41d   :  { %1352 = vrot.lane.b32.xlu1 %v1248_v46, %s4248_s1 }
 0x41e   :  { %v5424_v56 = vpop.f32.mrf.mxu1 }
 0x41f   :  { %1354 = vrot.lane.b32.xlu0 %v5424_v56, %s4248_s1 }
 0x420   :  { %v1254_v59 = vpop.f32.mrf.mxu1 }
 0x421   :  { %1356 = vrot.lane.b32.xlu1 %v1254_v59, %s4248_s1 }
 0x422   :  { %v5429_v4 = vpop.f32.mrf.mxu1 }
 0x423   :  { %1340 = vrot.lane.b32.xlu0 %v5424_v56, %s4250_s12 }
 0x424   :  { %v1260_v10 = vpop.f32.mrf.mxu1 }
 0x425   :  { %1360 = vrot.lane.b32.xlu1 %v1260_v10, %s4248_s1 }
 0x426   :  { %v5436_v61 = vpop.f32.mrf.mxu1 }
 0x427   :  { %1358 = vrot.lane.b32.xlu0 %v5429_v4, %s4248_s1 }
 0x428   :  { %v1266_v63 = vpop.f32.mrf.mxu1 }
 0x429   :  { %1374 = vrot.lane.b32.xlu1 %v1260_v10, %s4250_s12 }
 0x42b   :  { %1342 = vrot.lane.b32.xlu0 %v5429_v4, %s4250_s12 }
 0x42d   :  { %1364 = vrot.lane.b32.xlu1 %v1266_v63, %s4248_s1 }
 0x42f   :  { %1362 = vrot.lane.b32.xlu0 %v5436_v61, %s4248_s1 }
 0x431   :  { %1372 = vrot.lane.b32.xlu1 %v1254_v59, %s4250_s12 }
 0x433   :  { %1344 = vrot.lane.b32.xlu0 %v5436_v61, %s4250_s12 }
 0x435   :  { %1376 = vrot.lane.b32.xlu1 %v1266_v63, %s4250_s12 }
 0x437   :  { %1338 = vrot.lane.b32.xlu0 %v5419_v19, %s4250_s12 }
 0x439   :  { %1370 = vrot.lane.b32.xlu1 %v1248_v46, %s4250_s12 }
 0x43b   :  { %1301 = vrot.lane.b32.xlu0 %v5417_v50, %s4248_s1 }
 0x43d   :  { %1303 = vrot.lane.b32.xlu1 %v1242_v55, %s4248_s1 }
 0x43f   :  { %1297 = vrot.lane.b32.xlu0 %v5415_v44, %s4248_s1 }
 0x441   :  { %1299 = vrot.lane.b32.xlu1 %v1236_v47, %s4248_s1 }
 0x443   :  { %1293 = vrot.lane.b32.xlu0 %v5411_v43, %s4248_s1 }
 0x445   :  { %1295 = vrot.lane.b32.xlu1 %v5413_v18, %s4248_s1 }
 0x447   :  { %1289 = vrot.lane.b32.xlu0 %v5407_v40, %s4248_s1 }
 0x449   :  { %1291 = vrot.lane.b32.xlu1 %v5409_v41, %s4248_s1 }
 0x44b   :  { %1279 = vrot.lane.b32.xlu0 %v5417_v50, %s4250_s12 }
 0x44d   :  { %1319 = vrot.lane.b32.xlu1 %v1242_v55, %s4250_s12 }
 0x44f   :  { %1277 = vrot.lane.b32.xlu0 %v5415_v44, %s4250_s12 }
 0x451   :  { %1317 = vrot.lane.b32.xlu1 %v1236_v47, %s4250_s12 }
 0x48d   :  { %v1351_v49 = vpop.permute.xlu0 %1350 }
 0x48f   :  { %v1353_v20 = vpop.permute.xlu1 %1352 }
 0x490   :  { %1426 = vrot.lane.b32.xlu1 %v1353_v20, %s4244_s23  ;;  %v1366_v0 = vsel %vm826_vm14, %v1351_v49, %v1353_v20 }
 0x491   :  { %1398 = vrot.lane.b32.xlu0 %v1366_v0, %s4244_s23  ;;  %v1355_v1 = vpop.permute.xlu0 %1354 }
 0x493   :  { %v1357_v24 = vpop.permute.xlu1 %1356 }
 0x494   :  { %1428 = vrot.lane.b32.xlu1 %v1357_v24, %s4244_s23  ;;  %v1367_v3 = vsel %vm826_vm14, %v1355_v1, %v1357_v24 }
 0x495   :  { %1400 = vrot.lane.b32.xlu0 %v1367_v3, %s4244_s23  ;;  %v1341_v5 = vpop.permute.xlu0 %1340 }
 0x497   :  { %v1361_v6 = vpop.permute.xlu1 %1360 }
 0x498   :  { %1430 = vrot.lane.b32.xlu1 %v1361_v6, %s4244_s23 }
 0x499   :  { %v1359_v9 = vpop.permute.xlu0 %1358 }
 0x49a   :  { %v1368_v30 = vsel %vm826_vm14, %v1359_v9, %v1361_v6 }
 0x49b   :  { %v1375_v52 = vpop.permute.xlu1 %1374 }
 0x49d   :  { %v1343_v21 = vpop.permute.xlu0 %1342 }
 0x49e   :  { %1394 = vrot.lane.b32.xlu0 %v1343_v21, %s4244_s23  ;;  %v1380_v12 = vsel %vm1321_vm0, %v1343_v21, %v1375_v52 }
 0x49f   :  { %v1365_v25 = vpop.permute.xlu1 %1364  ;;  %1422 = vrot.lane.b32.xlu1 %v1380_v12, %s4244_s23 }
 0x4a1   :  { %v1363_v28 = vpop.permute.xlu0 %1362 }
 0x4a2   :  { %1402 = vrot.lane.b32.xlu0 %v1368_v30, %s4244_s23  ;;  %v1369_v15 = vsel %vm826_vm14, %v1363_v28, %v1365_v25 }
 0x4a3   :  { %1432 = vrot.lane.b32.xlu1 %v1365_v25, %s4244_s23  ;;  %v1373_v26 = vpop.permute.xlu1 %1372 }
 0x4a4   :  { %v1379_v58 = vsel %vm1321_vm0, %v1341_v5, %v1373_v26 }
 0x4a5   :  { %v1345_v29 = vpop.permute.xlu0 %1344 }
 0x4a6   :  { %1396 = vrot.lane.b32.xlu0 %v1345_v29, %s4244_s23 }
 0x4a7   :  { %1315 = vrot.lane.b32.xlu1 %v5413_v18, %s4250_s12  ;;  %v1377_v32 = vpop.permute.xlu1 %1376 }
 0x4a8   :  { %v1381_v33 = vsel %vm1321_vm0, %v1345_v29, %v1377_v32 }
 0x4a9   :  { %v1339_v16 = vpop.permute.xlu0 %1338 }
 0x4aa   :  { %1404 = vrot.lane.b32.xlu0 %v1369_v15, %s4244_s23 }
 0x4ab   :  { %1420 = vrot.lane.b32.xlu1 %v1379_v58, %s4244_s23  ;;  %v1371_v35 = vpop.permute.xlu1 %1370 }
 0x4ac   :  { %v1378_v37 = vsel %vm1321_vm0, %v1339_v16, %v1371_v35 }
 0x4ae   :  { %1275 = vrot.lane.b32.xlu0 %v5411_v43, %s4250_s12 }
 0x4af   :  { %1424 = vrot.lane.b32.xlu1 %v1381_v33, %s4244_s23  ;;  %v1304_v38 = vpop.permute.xlu1 %1303 }
 0x4b2   :  { %1392 = vrot.lane.b32.xlu0 %v1341_v5, %s4244_s23 }
 0x4b3   :  { %1313 = vrot.lane.b32.xlu1 %v5409_v41, %s4250_s12 }
 0x4b6   :  { %1273 = vrot.lane.b32.xlu0 %v5407_v40, %s4250_s12 }
 0x4b7   :  { %1418 = vrot.lane.b32.xlu1 %v1378_v37, %s4244_s23 }
 0x4ba   :  { %1390 = vrot.lane.b32.xlu0 %v1339_v16, %s4244_s23 }
 0x4bb   :  { %1386 = vrot.lane.b32.xlu1 %v5429_v4, %s4244_s23 }
 0x4be   :  { %1388 = vrot.lane.b32.xlu0 %v5436_v61, %s4244_s23 }
 0x4bf   :  { %1382 = vrot.lane.b32.xlu1 %v5419_v19, %s4244_s23 }
 0x4c2   :  { %1384 = vrot.lane.b32.xlu0 %v5424_v56, %s4244_s23 }
 0x4c3   :  { %4172 = vrot.lane.b32.xlu1 %v5069_v45, %s4246_s25  ;;  %v1302_v45 = vpop.permute.xlu0 %1301 }
 0x4c4   :  { %v1308_v59 = vsel %vm826_vm14, %v1302_v45, %v1304_v38 }
 0x4c5   :  { %v1449_v4 = vsel %vm1088_vm4, %v1308_v59, %v1304_v38  ;;  %v930_v59 = vld [vmem:[%s7628_s2 + $0x30] sm:$0xff] }
 0x4c6   :  { %4167 = vrot.lane.b32.xlu0 %v5203_v8, %s4251_s13  ;;  %v1300_v8 = vpop.permute.xlu1 %1299 }
 0x4c7   :  { %4182 = vrot.lane.b32.xlu1 %v5207_v11, %s4251_s13  ;;  %v1298_v11 = vpop.permute.xlu0 %1297 }
 0x4c8   :  { %v1307_v10 = vsel %vm826_vm14, %v1298_v11, %v1300_v8 }
 0x4c9   :  { %v1448_v1 = vsel %vm1088_vm4, %v1307_v10, %v1300_v8 }
 0x4ca   :  { %4177 = vrot.lane.b32.xlu0 %v5079_v48, %s4252_s14  ;;  %v1296_v48 = vpop.permute.xlu1 %1295 }
 0x4cb   :  { %4192 = vrot.lane.b32.xlu1 %v5099_v54, %s4252_s14 }
 0x4ce   :  { %4187 = vrot.lane.b32.xlu0 %v5089_v51, %s4246_s25  ;;  %v1294_v51 = vpop.permute.xlu0 %1293  ;;  %v1292_v54 = vpop.permute.xlu1 %1291 }
 0x4cf   :  { %4202 = vrot.lane.b32.xlu1 %v5109_v57, %s4246_s25  ;;  %v1306_v0 = vsel %vm826_vm14, %v1294_v51, %v1296_v48 }
 0x4d0   :  { %v1447_v9 = vsel %vm1088_vm4, %v1306_v0, %v1296_v48 }
 0x4d2   :  { %4197 = vrot.lane.b32.xlu0 %v5229_v13, %s4251_s13  ;;  %v1290_v22 = vpop.permute.xlu0 %1289  ;;  %v1320_v57 = vpop.permute.xlu1 %1319 }
 0x4d3   :  { %1850 = vrot.lane.b32.xlu1 %v5253_v14, %s4252_s14  ;;  %v1305_v3 = vsel %vm826_vm14, %v1290_v22, %v1292_v54 }
 0x4d4   :  { %v1446_v28 = vsel %vm1088_vm4, %v1305_v3, %v1292_v54 }
 0x4d6   :  { %4207 = vrot.lane.b32.xlu0 %v5119_v60, %s4252_s14  ;;  %v1280_v17 = vpop.permute.xlu0 %1279  ;;  %v1318_v39 = vpop.permute.xlu1 %1317  ;;  %s4258_s14 = smov 5  }
 0x4d7   :  { %v1325_v12 = vsel %vm1321_vm0, %v1280_v17, %v1320_v57 }
 0x4d8   :  { %v1445_v58 = vsel %vm1088_vm4, %v1280_v17, %v1325_v12 }
 0x4da   :  { %1808 = vrot.lane.b32.xlu0 %v5243_v27, %s4251_s13  ;;  %v1278_v13 = vpop.permute.xlu0 %1277  ;;  %s4257_s13 = smov 4  }
 0x4db   :  { %v1324_v26 = vsel %vm1321_vm0, %v1278_v13, %v1318_v39 }
 0x4dc   :  { %v1444_v37 = vsel %vm1088_vm4, %v1278_v13, %v1324_v26 }
 0x4de   :  { %1829 = vrot.lane.b32.xlu0 %v5262_v7, %s4246_s25 }
 0x502   :  { %v1427_v41 = vpop.permute.xlu1 %1426 }
 0x503   :  { %v1399_v14 = vpop.permute.xlu0 %1398 }
 0x504   :  { %v1466_v30 = vsel %vm1115_vm7, %v1399_v14, %v1427_v41  ;;  %v1458_v15 = vsel %vm594_vm2, %v1446_v28, %v1399_v14 }
 0x506   :  { %v1429_v18 = vpop.permute.xlu1 %1428 }
 0x507   :  { %v1401_v47 = vpop.permute.xlu0 %1400 }
 0x508   :  { %v1467_v21 = vsel %vm1115_vm7, %v1401_v47, %v1429_v18  ;;  %v1459_v25 = vsel %vm594_vm2, %v1447_v9, %v1401_v47 }
 0x50a   :  { %v1431_v55 = vpop.permute.xlu1 %1430 }
 0x510   :  { %v1395_v60 = vpop.permute.xlu0 %1394 }
 0x511   :  { %v1423_v19 = vpop.permute.xlu1 %1422  ;;  %v1456_v8 = vsel %vm594_vm2, %v1444_v37, %v1395_v60 }
 0x512   :  { %v1464_v38 = vsel %vm1115_vm7, %v1395_v60, %v1423_v19 }
 0x514   :  { %v1403_v46 = vpop.permute.xlu0 %1402 }
 0x515   :  { %v1433_v27 = vpop.permute.xlu1 %1432  ;;  %v1468_v24 = vsel %vm1115_vm7, %v1403_v46, %v1431_v55  ;;  %v1460_v6 = vsel %vm594_vm2, %v1448_v1, %v1403_v46  ;;  %v924_v46 = vld [vmem:[%s7628_s2] sm:$0xff] }
 0x518   :  { %v1397_v56 = vpop.permute.xlu0 %1396 }
 0x519   :  { %v1316_v7 = vpop.permute.xlu1 %1315  ;;  %v1457_v16 = vsel %vm594_vm2, %v1445_v58, %v1397_v56 }
 0x51c   :  { %v1405_v61 = vpop.permute.xlu0 %1404 }
 0x51d   :  { %v1421_v63 = vpop.permute.xlu1 %1420  ;;  %v1469_v49 = vsel %vm1115_vm7, %v1405_v61, %v1433_v27  ;;  %v1461_v20 = vsel %vm594_vm2, %v1449_v4, %v1405_v61  ;;  %v928_v27 = vld [vmem:[%s7628_s2 + $0x20] sm:$0xff] }
 0x51e   :  { %1503 = vmatprep.subr.mxu1 %v1469_v49 }
 0x51f   :  { %1504 = vmatpush1.msra.mxu1 %v1461_v20 }
 0x520   :  { %1505 = vmatprep.subr.mxu1 %v1468_v24  ;;  %v1276_v5 = vpop.permute.xlu0 %1275 }
 0x521   :  { %v1425_v52 = vpop.permute.xlu1 %1424  ;;  %1506 = vmatpush1.msra.mxu1 %v1460_v6  ;;  %v1323_v35 = vsel %vm1321_vm0, %v1276_v5, %v1316_v7  ;;  %v931_v7 = vld [vmem:[%s7628_s2 + $0x38] sm:$0xff] }
 0x522   :  { %1507 = vmatprep.subr.mxu1 %v1467_v21  ;;  %v1465_v33 = vsel %vm1115_vm7, %v1397_v56, %v1425_v52  ;;  %v1443_v11 = vsel %vm1088_vm4, %v1276_v5, %v1323_v35  ;;  %v929_v56 = vld [vmem:[%s7628_s2 + $0x28] sm:$0xff] }
 0x523   :  { %1508 = vmatpush1.msra.mxu1 %v1459_v25 }
 0x524   :  { %1509 = vmatprep.subr.mxu1 %v1466_v30  ;;  %v1393_v29 = vpop.permute.xlu0 %1392 }
 0x525   :  { %v1314_v32 = vpop.permute.xlu1 %1313  ;;  %1510 = vmatpush1.msra.mxu1 %v1458_v15  ;;  %v1463_v54 = vsel %vm1115_vm7, %v1393_v29, %v1421_v63  ;;  %v1455_v22 = vsel %vm594_vm2, %v1443_v11, %v1393_v29 }
 0x526   :  { %1511 = vmatprep.subr.mxu1 %v1465_v33 }
 0x527   :  { %1512 = vmatpush1.msra.mxu1 %v1457_v16 }
 0x528   :  { %1513 = vmatprep.subr.mxu1 %v1464_v38  ;;  %v1274_v45 = vpop.permute.xlu0 %1273 }
 0x529   :  { %v1322_v48 = vsel %vm1321_vm0, %v1274_v45, %v1314_v32  ;;  %v1419_v51 = vpop.permute.xlu1 %1418  ;;  %1514 = vmatpush1.msra.mxu1 %v1456_v8 }
 0x52a   :  { %1515 = vmatprep.subr.mxu1 %v1463_v54  ;;  %v1442_v57 = vsel %vm1088_vm4, %v1274_v45, %v1322_v48 }
 0x52b   :  { %1516 = vmatpush1.msra.mxu1 %v1455_v22 }
 0x52c   :  { %v1391_v17 = vpop.permute.xlu0 %1390 }
 0x52d   :  { %v1462_v39 = vsel %vm1115_vm7, %v1391_v17, %v1419_v51  ;;  %v1454_v13 = vsel %vm594_vm2, %v1442_v57, %v1391_v17  ;;  %v1387_v41 = vpop.permute.xlu1 %1386  ;;  %vm1470_vm7 = vcmask 785408  }
 0x52e   :  { %1517 = vmatprep.subr.mxu1 %v1462_v39  ;;  %v1452_v47 = vsel %vm594_vm2, %v5415_v44, %v1387_v41  ;;  %v925_v44 = vld [vmem:[%s7628_s2 + $0x8] sm:$0xff] }
 0x52f   :  { %1518 = vmatpush1.msra.mxu1 %v1454_v13 }
 0x530   :  { %v1389_v14 = vpop.permute.xlu0 %1388 }
 0x531   :  { %1519 = vmatprep.subr.mxu1 %v1389_v14  ;;  %v1453_v18 = vsel %vm594_vm2, %v5417_v50, %v1389_v14  ;;  %v1383_v55 = vpop.permute.xlu1 %1382 }
 0x532   :  { %1520 = vmatpush1.msra.mxu1 %v1453_v18  ;;  %v1450_v50 = vsel %vm594_vm2, %v5407_v40, %v1383_v55  ;;  %v927_v40 = vld [vmem:[%s7628_s2 + $0x18] sm:$0xff] }
 0x533   :  { %1521 = vmatprep.subr.mxu1 %v1387_v41 }
 0x534   :  { %1522 = vmatpush1.msra.mxu1 %v1452_v47  ;;  %v1385_v60 = vpop.permute.xlu0 %1384 }
 0x535   :  { %1523 = vmatprep.subr.mxu1 %v1385_v60  ;;  %v1451_v19 = vsel %vm594_vm2, %v5411_v43, %v1385_v60  ;;  %v926_v43 = vld [vmem:[%s7628_s2 + $0x10] sm:$0xff]  ;;  %v4173_v10 = vpop.permute.xlu1 %4172  ;;  %vm1871_vm2 = vcmask 203776   ;;  %s4253_s2 = smov 103  }
 0x536   :  { %1524 = vmatpush1.msra.mxu1 %v1451_v19  ;;  %v4175_v49 = vunpack.i.h.bf16 %v4173_v10  ;;  %v4174_v20 = vunpack.i.l.bf16 %v4173_v10 }
 0x537   :  { %1525 = vmatprep.subr.mxu1 %v1383_v55 }
 0x538   :  { %1526 = vmatpush1.msra.mxu1 %v1450_v50  ;;  %v4168_v4 = vpop.permute.xlu0 %4167 }
 0x539   :  { %3954 = vmatmul.mubr.msk.f32.vlgmr.msra.gmra.mxu1 %vm1470_vm7, %v924_v46  ;;  %v4170_v61 = vunpack.i.h.bf16 %v4168_v4  ;;  %v4169_v63 = vunpack.i.l.bf16 %v4168_v4  ;;  %v4183_v3 = vpop.permute.xlu1 %4182 }
 0x53a   :  { %1565 = vmatprep.mubr.f32.mxu1 %v4241_v2  ;;  %v4185_v21 = vunpack.i.h.bf16 %v4183_v3  ;;  %v4184_v12 = vunpack.i.l.bf16 %v4183_v3 }
 0x53b   :  { %v1878_v0 = vsel %vm1871_vm2, %v5310_v34, %v4169_v63  ;;  %v1877_v1 = vsel %vm1871_vm2, %v5318_v42, %v4170_v61 }
 0x53c   :  { %v4178_v24 = vpop.permute.xlu0 %4177  ;;  %v1885_v5 = vsel %vm1088_vm4, %v1878_v0, %v4174_v20  ;;  %v1884_v6 = vsel %vm1088_vm4, %v1877_v1, %v4175_v49  ;;  %v1876_v42 = vsel %vm1871_vm2, %v5327_v53, %v4184_v12  ;;  %v1875_v26 = vsel %vm1871_vm2, %v5335_v62, %v4185_v21 }
 0x53d   :  { %3955 = vmatmul.mubr.msk.f32.gmra.mxu1 %vm1470_vm7, %v925_v44  ;;  %v4180_v9 = vunpack.i.h.bf16 %v4178_v24  ;;  %v4179_v52 = vunpack.i.l.bf16 %v4178_v24  ;;  %v4193_v34 = vpop.permute.xlu1 %4192 }
 0x53e   :  { %1571 = vmatprep.mubr.f32.mxu1 %v4241_v2  ;;  %v4195_v58 = vunpack.i.h.bf16 %v4193_v34  ;;  %v4194_v32 = vunpack.i.l.bf16 %v4193_v34 }
 0x53f   :  { %v1893_v25 = vsel %vm1886_vm5, %v1885_v5, %v4179_v52  ;;  %v1892_v28 = vsel %vm1886_vm5, %v1884_v6, %v4180_v9 }
 0x540   :  { %v4188_v30 = vpop.permute.xlu0 %4187  ;;  %4019 = vmatprep.subr.msk.mxu1 %vm562_vm6, %v1893_v25 }
 0x541   :  { %3956 = vmatmul.mubr.msk.f32.gmra.mxu1 %vm1470_vm7, %v926_v43  ;;  %v4190_v29 = vunpack.i.h.bf16 %v4188_v30  ;;  %v4189_v15 = vunpack.i.l.bf16 %v4188_v30  ;;  %v4203_v37 = vpop.permute.xlu1 %4202 }
 0x542   :  { %1577 = vmatprep.mubr.f32.mxu1 %v4241_v2  ;;  %4020 = vmatpush3.msk.msra.mxu1 %vm562_vm6, %v1893_v25  ;;  %v4205_v8 = vunpack.i.h.bf16 %v4203_v37  ;;  %v4204_v11 = vunpack.i.l.bf16 %v4203_v37  ;;  %vm2298_vm6 = vcmask 523264  }
 0x543   :  { %4021 = vmatprep.subr.mxu1 %v1892_v28  ;;  %v1883_v33 = vsel %vm1088_vm4, %v1876_v42, %v4189_v15  ;;  %v1882_v35 = vsel %vm1088_vm4, %v1875_v26, %v4190_v29 }
 0x544   :  { %4022 = vmatpush3.msra.mxu1 %v1892_v28  ;;  %v4198_v16 = vpop.permute.xlu0 %4197  ;;  %v1891_v38 = vsel %vm1886_vm5, %v1883_v33, %v4194_v32  ;;  %v1890_v53 = vsel %vm1886_vm5, %v1882_v35, %v4195_v58 }
 0x545   :  { %3957 = vmatmul.mubr.msk.f32.gmra.mxu1 %vm1470_vm7, %v927_v40  ;;  %v4200_v45 = vunpack.i.h.bf16 %v4198_v16  ;;  %v4199_v62 = vunpack.i.l.bf16 %v4198_v16  ;;  %4023 = vmatprep.subr.mxu1 %v1891_v38  ;;  %v1851_v18 = vpop.permute.xlu1 %1850 }
 0x546   :  { %1583 = vmatprep.mubr.f32.mxu1 %v4241_v2  ;;  %4024 = vmatpush3.msra.mxu1 %v1891_v38 }
 0x547   :  { %4025 = vmatprep.subr.mxu1 %v1890_v53  ;;  %v1874_v48 = vsel %vm1871_vm2, %v5351_v31, %v4199_v62  ;;  %v1873_v51 = vsel %vm1871_vm2, %v5359_v36, %v4200_v45 }
 0x548   :  { %v4208_v54 = vpop.permute.xlu0 %4207  ;;  %4026 = vmatpush3.msra.mxu1 %v1890_v53  ;;  %v1881_v22 = vsel %vm1088_vm4, %v1874_v48, %v4204_v11  ;;  %v1880_v57 = vsel %vm1088_vm4, %v1873_v51, %v4205_v8 }
 0x549   :  { %3958 = vmatmul.mubr.msk.f32.gmra.mxu1 %vm1470_vm7, %v928_v27  ;;  %v4210_v17 = vunpack.i.h.bf16 %v4208_v54  ;;  %v4209_v39 = vunpack.i.l.bf16 %v4208_v54 }
 0x54a   :  { %1589 = vmatprep.mubr.f32.mxu1 %v4241_v2 }
 0x54b   :  { %v1889_v13 = vsel %vm1886_vm5, %v1881_v22, %v4209_v39  ;;  %v1888_v41 = vsel %vm1886_vm5, %v1880_v57, %v4210_v17 }
 0x54c   :  { %4027 = vmatprep.subr.mxu1 %v1889_v13  ;;  %v1809_v31 = vpop.permute.xlu0 %1808 }
 0x54d   :  { %3959 = vmatmul.mubr.msk.f32.gmra.mxu1 %vm1470_vm7, %v929_v56  ;;  %v1872_v36 = vsel %vm1871_vm2, %v5370_v23, %v1809_v31 }
 0x54e   :  { %1595 = vmatprep.mubr.f32.mxu1 %v4241_v2  ;;  %4028 = vmatpush3.msra.mxu1 %v1889_v13 }
 0x54f   :  { %4029 = vmatprep.subr.mxu1 %v1888_v41 }
 0x550   :  { %4030 = vmatpush3.msra.mxu1 %v1888_v41  ;;  %v1830_v14 = vpop.permute.xlu0 %1829 }
 0x551   :  { %3960 = vmatmul.mubr.msk.f32.gmra.mxu1 %vm1470_vm7, %v930_v59  ;;  %v1879_v47 = vsel %vm1088_vm4, %v1872_v36, %v1830_v14 }
 0x552   :  { %1601 = vmatprep.mubr.f32.mxu1 %v4241_v2  ;;  %v1887_v55 = vsel %vm1886_vm5, %v1879_v47, %v1851_v18 }
 0x553   :  { %4031 = vmatprep.subr.mxu1 %v1887_v55 }
 0x554   :  { %4032 = vmatpush3.msra.mxu1 %v1887_v55 }
 0x555   :  { %3961 = vmatmul.mubr.msk.f32.gmra.mxu1 %vm1470_vm7, %v931_v7 }
 0x5f9   :  { %v1561_v60 = vpop.f32.mrf.mxu1 }
 0x5fa   :  { %1616 = vrot.lane.b32.xlu1 %v1561_v60, %s4250_s12 }
 0x5fb   :  { %v1563_v19 = vpop.f32.mrf.mxu1 }
 0x5fc   :  { %1664 = vrot.lane.b32.xlu0 %v1563_v19, %s4250_s12 }
 0x5fd   :  { %v1567_v46 = vpop.f32.mrf.mxu1 }
 0x5fe   :  { %1618 = vrot.lane.b32.xlu1 %v1567_v46, %s4250_s12 }
 0x5ff   :  { %v1569_v50 = vpop.f32.mrf.mxu1 }
 0x601   :  { %v1573_v44 = vpop.f32.mrf.mxu1 }
 0x602   :  { %1666 = vrot.lane.b32.xlu1 %v1569_v50, %s4250_s12  ;;  %1620 = vrot.lane.b32.xlu0 %v1573_v44, %s4250_s12 }
 0x603   :  { %v1575_v23 = vpop.f32.mrf.mxu1 }
 0x605   :  { %v5641_v43 = vpop.f32.mrf.mxu1 }
 0x606   :  { %1668 = vrot.lane.b32.xlu0 %v1575_v23, %s4250_s12  ;;  %1622 = vrot.lane.b32.xlu1 %v5641_v43, %s4250_s12 }
 0x607   :  { %v1581_v40 = vpop.f32.mrf.mxu1 }
 0x609   :  { %v5646_v27 = vpop.f32.mrf.mxu1 }
 0x60a   :  { %1670 = vrot.lane.b32.xlu1 %v1581_v40, %s4250_s12  ;;  %1624 = vrot.lane.b32.xlu0 %v5646_v27, %s4250_s12 }
 0x60b   :  { %v5651_v56 = vpop.f32.mrf.mxu1 }
 0x60d   :  { %v5653_v59 = vpop.f32.mrf.mxu1 }
 0x60e   :  { %1672 = vrot.lane.b32.xlu0 %v5651_v56, %s4250_s12  ;;  %1626 = vrot.lane.b32.xlu1 %v5653_v59, %s4250_s12 }
 0x60f   :  { %v5659_v7 = vpop.f32.mrf.mxu1 }
 0x611   :  { %v5661_v4 = vpop.f32.mrf.mxu1 }
 0x612   :  { %1674 = vrot.lane.b32.xlu1 %v5659_v7, %s4250_s12  ;;  %1628 = vrot.lane.b32.xlu0 %v5661_v4, %s4250_s12 }
 0x613   :  { %v5667_v10 = vpop.f32.mrf.mxu1 }
 0x615   :  { %v5669_v61 = vpop.f32.mrf.mxu1 }
 0x616   :  { %1676 = vrot.lane.b32.xlu0 %v5667_v10, %s4250_s12  ;;  %1630 = vrot.lane.b32.xlu1 %v5669_v61, %s4250_s12 }
 0x617   :  { %v5675_v63 = vpop.f32.mrf.mxu1 }
 0x61a   :  { %1678 = vrot.lane.b32.xlu1 %v5675_v63, %s4250_s12 }
 0x66c   :  { %v1617_v49 = vpop.permute.xlu1 %1616 }
 0x66d   :  { %v1640_v20 = vmax.f32 %v1561_v60, %v1617_v49 }
 0x66e   :  { %v1665_v0 = vpop.permute.xlu0 %1664 }
 0x66f   :  { %v1648_v1 = vmax.f32 %v1640_v20, 0.0  ;;  %v1688_v24 = vmax.f32 %v1561_v60, %v1665_v0  ;;  %v1689_v3 = vmax.f32 %v1563_v19, %v1665_v0 }
 0x670   :  { %v1619_v5 = vpop.permute.xlu1 %1618 }
 0x671   :  { %v1704_v6 = vmax.f32 %v1688_v24, 0.0  ;;  %v1705_v9 = vmax.f32 %v1689_v3, 0.0  ;;  %v1641_v52 = vmax.f32 %v1567_v46, %v1619_v5  ;;  %4033 = vmatprep.mubr.msk.f32.mxu1 %vm1088_vm4, %v1648_v1 }
 0x673   :  { %v1649_v21 = vmax.f32 %v1641_v52, 0.0  ;;  %1738 = vrot.lane.b32.xlu1 %v1705_v9, %s4248_s1  ;;  %1736 = vrot.lane.b32.xlu0 %v1704_v6, %s4248_s1 }
 0x674   :  { %v1667_v12 = vpop.permute.xlu1 %1666  ;;  %v1621_v25 = vpop.permute.xlu0 %1620 }
 0x675   :  { %v1690_v28 = vmax.f32 %v1567_v46, %v1667_v12  ;;  %v1691_v30 = vmax.f32 %v1569_v50, %v1667_v12  ;;  %v1642_v34 = vmax.f32 %v1573_v44, %v1621_v25  ;;  %4034 = vmatmul.mubr.msk.f32.vlgmr.msra.gmra.mxu1 %vm1088_vm4, %v1649_v21 }
 0x677   :  { %v1706_v42 = vmax.f32 %v1690_v28, 0.0  ;;  %v1707_v26 = vmax.f32 %v1691_v30, 0.0  ;;  %v1650_v29 = vmax.f32 %v1642_v34, 0.0 }
 0x678   :  { %v1623_v15 = vpop.permute.xlu1 %1622  ;;  %v1669_v58 = vpop.permute.xlu0 %1668 }
 0x679   :  { %v1643_v32 = vmax.f32 %v5641_v43, %v1623_v15  ;;  %v1692_v33 = vmax.f32 %v1573_v44, %v1669_v58  ;;  %v1693_v35 = vmax.f32 %v1575_v23, %v1669_v58  ;;  %1742 = vrot.lane.b32.xlu1 %v1707_v26, %s4248_s1  ;;  %1740 = vrot.lane.b32.xlu0 %v1706_v42, %s4248_s1 }
 0x67a   :  { %4036 = vmatprep.mubr.msk.f32.mxu1 %vm1088_vm4, %v1650_v29 }
 0x67b   :  { %v1651_v16 = vmax.f32 %v1643_v32, 0.0  ;;  %v1708_v37 = vmax.f32 %v1692_v33, 0.0  ;;  %v1709_v38 = vmax.f32 %v1693_v35, 0.0 }
 0x67c   :  { %v1671_v53 = vpop.permute.xlu1 %1670  ;;  %v1625_v45 = vpop.permute.xlu0 %1624 }
 0x67d   :  { %v1694_v62 = vmax.f32 %v5641_v43, %v1671_v53  ;;  %v1695_v8 = vmax.f32 %v1581_v40, %v1671_v53  ;;  %v1644_v11 = vmax.f32 %v5646_v27, %v1625_v45  ;;  %1746 = vrot.lane.b32.xlu1 %v1709_v38, %s4248_s1  ;;  %1744 = vrot.lane.b32.xlu0 %v1708_v37, %s4248_s1 }
 0x67e   :  { %4037 = vmatmul.mubr.msk.f32.gmra.mxu1 %vm1088_vm4, %v1651_v16 }
 0x67f   :  { %v1710_v48 = vmax.f32 %v1694_v62, 0.0  ;;  %v1711_v51 = vmax.f32 %v1695_v8, 0.0  ;;  %v1652_v54 = vmax.f32 %v1644_v11, 0.0 }
 0x680   :  { %v1627_v22 = vpop.permute.xlu1 %1626  ;;  %v1673_v57 = vpop.permute.xlu0 %1672 }
 0x681   :  { %v1645_v17 = vmax.f32 %v5653_v59, %v1627_v22  ;;  %v1696_v39 = vmax.f32 %v5646_v27, %v1673_v57  ;;  %v1697_v13 = vmax.f32 %v5651_v56, %v1673_v57  ;;  %1750 = vrot.lane.b32.xlu1 %v1711_v51, %s4248_s1  ;;  %1748 = vrot.lane.b32.xlu0 %v1710_v48, %s4248_s1 }
 0x682   :  { %4039 = vmatprep.mubr.msk.f32.mxu1 %vm1088_vm4, %v1652_v54 }
 0x683   :  { %v1653_v41 = vmax.f32 %v1645_v17, 0.0  ;;  %v1712_v31 = vmax.f32 %v1696_v39, 0.0  ;;  %v1713_v36 = vmax.f32 %v1697_v13, 0.0 }
 0x684   :  { %v1675_v14 = vpop.permute.xlu1 %1674  ;;  %v1629_v18 = vpop.permute.xlu0 %1628 }
 0x685   :  { %v1698_v47 = vmax.f32 %v5653_v59, %v1675_v14  ;;  %v1699_v55 = vmax.f32 %v5659_v7, %v1675_v14  ;;  %v1646_v60 = vmax.f32 %v5661_v4, %v1629_v18  ;;  %1754 = vrot.lane.b32.xlu1 %v1713_v36, %s4248_s1  ;;  %1752 = vrot.lane.b32.xlu0 %v1712_v31, %s4248_s1 }
 0x686   :  { %4040 = vmatmul.mubr.msk.f32.gmra.mxu1 %vm1088_vm4, %v1653_v41 }
 0x687   :  { %v1714_v19 = vmax.f32 %v1698_v47, 0.0  ;;  %v1715_v46 = vmax.f32 %v1699_v55, 0.0  ;;  %v1654_v50 = vmax.f32 %v1646_v60, 0.0 }
 0x688   :  { %v1631_v44 = vpop.permute.xlu1 %1630  ;;  %v1677_v23 = vpop.permute.xlu0 %1676 }
 0x689   :  { %v1647_v43 = vmax.f32 %v5669_v61, %v1631_v44  ;;  %v1700_v40 = vmax.f32 %v5661_v4, %v1677_v23  ;;  %v1701_v27 = vmax.f32 %v5667_v10, %v1677_v23  ;;  %1758 = vrot.lane.b32.xlu1 %v1715_v46, %s4248_s1  ;;  %1756 = vrot.lane.b32.xlu0 %v1714_v19, %s4248_s1 }
 0x68a   :  { %4042 = vmatprep.mubr.msk.f32.mxu1 %vm1088_vm4, %v1654_v50 }
 0x68b   :  { %v1655_v56 = vmax.f32 %v1647_v43, 0.0  ;;  %v1716_v59 = vmax.f32 %v1700_v40, 0.0  ;;  %v1717_v7 = vmax.f32 %v1701_v27, 0.0 }
 0x68c   :  { %v1679_v49 = vpop.permute.xlu1 %1678 }
 0x68d   :  { %v1702_v20 = vmax.f32 %v5669_v61, %v1679_v49  ;;  %v1703_v0 = vmax.f32 %v5675_v63, %v1679_v49  ;;  %1762 = vrot.lane.b32.xlu1 %v1717_v7, %s4248_s1  ;;  %1760 = vrot.lane.b32.xlu0 %v1716_v59, %s4248_s1 }
 0x68e   :  { %4043 = vmatmul.mubr.msk.f32.gmra.mxu1 %vm1088_vm4, %v1655_v56 }
 0x68f   :  { %v1718_v4 = vmax.f32 %v1702_v20, 0.0  ;;  %v1719_v10 = vmax.f32 %v1703_v0, 0.0 }
 0x691   :  { %1766 = vrot.lane.b32.xlu1 %v1719_v10, %s4248_s1  ;;  %1764 = vrot.lane.b32.xlu0 %v1718_v4, %s4248_s1  ;;  %s4255_s1 = smov 2  }
 0x6e5   :  { %v1739_v1 = vpop.permute.xlu1 %1738  ;;  %v1737_v24 = vpop.permute.xlu0 %1736 }
 0x6e6   :  { %v1768_v3 = vsel %vm826_vm14, %v1737_v24, %v1739_v1 }
 0x6e7   :  { %4045 = vmatprep.mubr.msk.f32.mxu1 %vm1088_vm4, %v1768_v3 }
 0x6eb   :  { %v1743_v61 = vpop.permute.xlu1 %1742  ;;  %v1741_v63 = vpop.permute.xlu0 %1740 }
 0x6ec   :  { %v1769_v5 = vsel %vm826_vm14, %v1741_v63, %v1743_v61 }
 0x6ed   :  { %4046 = vmatmul.mubr.msk.f32.gmra.mxu1 %vm1088_vm4, %v1769_v5 }
 0x6ef   :  { %v1747_v6 = vpop.permute.xlu1 %1746  ;;  %v1745_v9 = vpop.permute.xlu0 %1744 }
 0x6f0   :  { %v1770_v52 = vsel %vm826_vm14, %v1745_v9, %v1747_v6 }
 0x6f1   :  { %4048 = vmatprep.mubr.msk.f32.mxu1 %vm1088_vm4, %v1770_v52 }
 0x6f3   :  { %v1751_v21 = vpop.permute.xlu1 %1750  ;;  %v1749_v12 = vpop.permute.xlu0 %1748 }
 0x6f4   :  { %v1771_v25 = vsel %vm826_vm14, %v1749_v12, %v1751_v21 }
 0x6f5   :  { %4049 = vmatmul.mubr.msk.f32.gmra.mxu1 %vm1088_vm4, %v1771_v25 }
 0x6f7   :  { %v1755_v28 = vpop.permute.xlu1 %1754  ;;  %v1753_v30 = vpop.permute.xlu0 %1752 }
 0x6f8   :  { %v1772_v34 = vsel %vm826_vm14, %v1753_v30, %v1755_v28 }
 0x6f9   :  { %4051 = vmatprep.mubr.msk.f32.mxu1 %vm1088_vm4, %v1772_v34 }
 0x6fb   :  { %v1759_v42 = vpop.permute.xlu1 %1758  ;;  %v1757_v26 = vpop.permute.xlu0 %1756 }
 0x6fc   :  { %v1773_v29 = vsel %vm826_vm14, %v1757_v26, %v1759_v42  ;;  %v1777_v42 = vld [vmem:[%s7629_s3 + $0x8] sm:$0xff] }
 0x6fd   :  { %4052 = vmatmul.mubr.msk.f32.gmra.mxu1 %vm1088_vm4, %v1773_v29  ;;  %3979 = vmatprep.mubr.msk.f32.mxu0 %vm2298_vm6, %v1777_v42 }
 0x6ff   :  { %v1763_v15 = vpop.permute.xlu1 %1762  ;;  %v1761_v58 = vpop.permute.xlu0 %1760 }
 0x700   :  { %v1774_v32 = vsel %vm826_vm14, %v1761_v58, %v1763_v15 }
 0x701   :  { %4054 = vmatprep.mubr.msk.f32.mxu1 %vm1088_vm4, %v1774_v32 }
 0x703   :  { %v1767_v33 = vpop.permute.xlu1 %1766  ;;  %v1765_v35 = vpop.permute.xlu0 %1764 }
 0x704   :  { %v1775_v16 = vsel %vm826_vm14, %v1765_v35, %v1767_v33  ;;  %vm3796_vm14 = vcmask 15360  }
 0x705   :  { %4055 = vmatmul.mubr.msk.f32.gmra.mxu1 %vm1088_vm4, %v1775_v16 }
 0x735   :  { %v5733_v37 = vpop.f32.mrf.mxu1 }
 0x736   :  { %2092 = vrot.lane.b32.xlu0 %v5733_v37, %s4253_s2 }
 0x737   :  { %v5739_v38 = vpop.f32.mrf.mxu1 }
 0x73a   :  { %2116 = vrot.lane.b32.xlu0 %v5733_v37, %s4250_s12 }
 0x73e   :  { %2090 = vrot.lane.b32.xlu0 %v5739_v38, %s4253_s2  ;;  %v5745_v53 = vpop.f32.mrf.mxu1 }
 0x740   :  { %v5751_v45 = vpop.f32.mrf.mxu1 }
 0x742   :  { %2114 = vrot.lane.b32.xlu0 %v5739_v38, %s4250_s12 }
 0x746   :  { %2096 = vrot.lane.b32.xlu0 %v5745_v53, %s4253_s2  ;;  %v5757_v62 = vpop.f32.mrf.mxu1 }
 0x748   :  { %v5763_v8 = vpop.f32.mrf.mxu1 }
 0x74a   :  { %2120 = vrot.lane.b32.xlu0 %v5745_v53, %s4250_s12 }
 0x74e   :  { %2094 = vrot.lane.b32.xlu0 %v5751_v45, %s4253_s2  ;;  %v5769_v11 = vpop.f32.mrf.mxu1 }
 0x750   :  { %v5775_v48 = vpop.f32.mrf.mxu1 }
 0x752   :  { %2118 = vrot.lane.b32.xlu0 %v5751_v45, %s4250_s12 }
 0x756   :  { %2100 = vrot.lane.b32.xlu0 %v5757_v62, %s4253_s2 }
 0x75a   :  { %2124 = vrot.lane.b32.xlu0 %v5757_v62, %s4250_s12 }
 0x75e   :  { %2098 = vrot.lane.b32.xlu0 %v5763_v8, %s4253_s2 }
 0x762   :  { %2122 = vrot.lane.b32.xlu0 %v5763_v8, %s4250_s12 }
 0x766   :  { %2104 = vrot.lane.b32.xlu0 %v5769_v11, %s4253_s2 }
 0x76a   :  { %2128 = vrot.lane.b32.xlu0 %v5769_v11, %s4250_s12 }
 0x76e   :  { %2102 = vrot.lane.b32.xlu0 %v5775_v48, %s4253_s2 }
 0x772   :  { %2126 = vrot.lane.b32.xlu0 %v5775_v48, %s4250_s12 }
 0x7a8   :  { %v5791_v17 = vpop.permute.xlu0 %2092 }
 0x7ac   :  { %v5796_v41 = vpop.permute.xlu0 %2116 }
 0x7ad   :  { %v4047_v51 = vpop.f32.mrf.mxu1 }
 0x7ae   :  { %2148 = vrot.lane.b32.xlu0 %v4047_v51, %s4253_s2 }
 0x7af   :  { %v2043_v54 = vpop.f32.mrf.mxu1 }
 0x7b0   :  { %2146 = vrot.lane.b32.xlu1 %v2043_v54, %s4253_s2  ;;  %v5801_v31 = vpop.permute.xlu0 %2090 }
 0x7b2   :  { %2164 = vrot.lane.b32.xlu0 %v4047_v51, %s4250_s12 }
 0x7b4   :  { %2162 = vrot.lane.b32.xlu1 %v2043_v54, %s4250_s12  ;;  %v5806_v18 = vpop.permute.xlu0 %2114 }
 0x7b5   :  { %v4050_v22 = vpop.f32.mrf.mxu1 }
 0x7b6   :  { %2180 = vrot.lane.b32.xlu0 %v4047_v51, %s4246_s25 }
 0x7b7   :  { %v2053_v57 = vpop.f32.mrf.mxu1 }
 0x7b8   :  { %2178 = vrot.lane.b32.xlu1 %v2043_v54, %s4246_s25  ;;  %v5811_v47 = vpop.permute.xlu0 %2096 }
 0x7ba   :  { %2152 = vrot.lane.b32.xlu0 %v4050_v22, %s4253_s2 }
 0x7bc   :  { %2150 = vrot.lane.b32.xlu1 %v2053_v57, %s4253_s2  ;;  %v5815_v55 = vpop.permute.xlu0 %2120 }
 0x7bd   :  { %v4053_v39 = vpop.f32.mrf.mxu1 }
 0x7be   :  { %2168 = vrot.lane.b32.xlu0 %v4050_v22, %s4250_s12 }
 0x7bf   :  { %v2063_v13 = vpop.f32.mrf.mxu1 }
 0x7c0   :  { %2166 = vrot.lane.b32.xlu1 %v2053_v57, %s4250_s12  ;;  %v5817_v60 = vpop.permute.xlu0 %2094 }
 0x7c2   :  { %2184 = vrot.lane.b32.xlu0 %v4050_v22, %s4246_s25 }
 0x7c4   :  { %2182 = vrot.lane.b32.xlu1 %v2053_v57, %s4246_s25  ;;  %v5819_v19 = vpop.permute.xlu0 %2118 }
 0x7c5   :  { %v4056_v36 = vpop.f32.mrf.mxu1 }
 0x7c6   :  { %2156 = vrot.lane.b32.xlu0 %v4053_v39, %s4253_s2 }
 0x7c7   :  { %v2073_v14 = vpop.f32.mrf.mxu1 }
 0x7c8   :  { %2154 = vrot.lane.b32.xlu1 %v2063_v13, %s4253_s2  ;;  %v5821_v46 = vpop.permute.xlu0 %2100 }
 0x7ca   :  { %2172 = vrot.lane.b32.xlu0 %v4053_v39, %s4250_s12 }
 0x7cc   :  { %2170 = vrot.lane.b32.xlu1 %v2063_v13, %s4250_s12  ;;  %v5823_v50 = vpop.permute.xlu0 %2124 }
 0x7ce   :  { %2188 = vrot.lane.b32.xlu0 %v4053_v39, %s4246_s25 }
 0x7d0   :  { %2186 = vrot.lane.b32.xlu1 %v2063_v13, %s4246_s25  ;;  %v5825_v44 = vpop.permute.xlu0 %2098 }
 0x7d2   :  { %2160 = vrot.lane.b32.xlu0 %v4056_v36, %s4253_s2 }
 0x7d4   :  { %2158 = vrot.lane.b32.xlu1 %v2073_v14, %s4253_s2  ;;  %v5827_v23 = vpop.permute.xlu0 %2122 }
 0x7d6   :  { %2176 = vrot.lane.b32.xlu0 %v4056_v36, %s4250_s12 }
 0x7d8   :  { %2174 = vrot.lane.b32.xlu1 %v2073_v14, %s4250_s12  ;;  %v2105_v43 = vpop.permute.xlu0 %2104 }
 0x7da   :  { %2192 = vrot.lane.b32.xlu0 %v4056_v36, %s4246_s25 }
 0x7dc   :  { %2190 = vrot.lane.b32.xlu1 %v2073_v14, %s4246_s25  ;;  %v5829_v40 = vpop.permute.xlu0 %2128 }
 0x7e0   :  { %v5831_v27 = vpop.permute.xlu0 %2102 }
 0x7e4   :  { %v5833_v56 = vpop.permute.xlu0 %2126 }
 0x820   :  { %v2149_v59 = vpop.permute.xlu0 %2148 }
 0x821   :  { %2196 = vrot.lane.b32.xlu1 %v2149_v59, %s4246_s25 }
 0x822   :  { %v2147_v7 = vpop.permute.xlu1 %2146 }
 0x824   :  { %v2165_v49 = vpop.permute.xlu0 %2164 }
 0x825   :  { %2212 = vrot.lane.b32.xlu1 %v2165_v49, %s4246_s25 }
 0x826   :  { %v2163_v20 = vpop.permute.xlu1 %2162 }
 0x828   :  { %v5837_v0 = vpop.permute.xlu0 %2180 }
 0x829   :  { %2194 = vrot.lane.b32.xlu1 %v2147_v7, %s4246_s25 }
 0x82a   :  { %v5840_v4 = vpop.permute.xlu1 %2178 }
 0x82c   :  { %v2153_v10 = vpop.permute.xlu0 %2152 }
 0x82d   :  { %2210 = vrot.lane.b32.xlu1 %v2163_v20, %s4246_s25 }
 0x82e   :  { %v2151_v24 = vpop.permute.xlu1 %2150 }
 0x830   :  { %v2169_v1 = vpop.permute.xlu0 %2168 }
 0x831   :  { %2200 = vrot.lane.b32.xlu1 %v2153_v10, %s4246_s25 }
 0x832   :  { %v2167_v61 = vpop.permute.xlu1 %2166 }
 0x834   :  { %v5845_v3 = vpop.permute.xlu0 %2184 }
 0x835   :  { %2216 = vrot.lane.b32.xlu1 %v2169_v1, %s4246_s25 }
 0x836   :  { %v5849_v5 = vpop.permute.xlu1 %2182 }
 0x838   :  { %v2157_v63 = vpop.permute.xlu0 %2156 }
 0x839   :  { %2198 = vrot.lane.b32.xlu1 %v2151_v24, %s4246_s25 }
 0x83a   :  { %v2155_v9 = vpop.permute.xlu1 %2154 }
 0x83c   :  { %v2173_v6 = vpop.permute.xlu0 %2172 }
 0x83d   :  { %2214 = vrot.lane.b32.xlu1 %v2167_v61, %s4246_s25 }
 0x83e   :  { %v2171_v21 = vpop.permute.xlu1 %2170 }
 0x840   :  { %v5853_v52 = vpop.permute.xlu0 %2188 }
 0x841   :  { %2204 = vrot.lane.b32.xlu1 %v2157_v63, %s4246_s25 }
 0x842   :  { %v5857_v25 = vpop.permute.xlu1 %2186 }
 0x844   :  { %v2161_v12 = vpop.permute.xlu0 %2160 }
 0x845   :  { %2220 = vrot.lane.b32.xlu1 %v2173_v6, %s4246_s25 }
 0x846   :  { %v2159_v30 = vpop.permute.xlu1 %2158 }
 0x848   :  { %v2177_v28 = vpop.permute.xlu0 %2176 }
 0x849   :  { %2202 = vrot.lane.b32.xlu1 %v2155_v9, %s4246_s25 }
 0x84a   :  { %v2175_v34 = vpop.permute.xlu1 %2174 }
 0x84c   :  { %v2193_v63 = vpop.permute.xlu0 %2192 }
 0x84d   :  { %2218 = vrot.lane.b32.xlu1 %v2171_v21, %s4246_s25  ;;  %v2257_v9 = vsel %vm1088_vm4, %v5769_v11, %v2193_v63 }
 0x84e   :  { %v2191_v26 = vpop.permute.xlu1 %2190 }
 0x84f   :  { %v2256_v21 = vsel %vm1088_vm4, %v5775_v48, %v2191_v26 }
 0x850   :  { %v2280_v11 = vsel %vm1886_vm5, %v2256_v21, %v2191_v26 }
 0x851   :  { %2208 = vrot.lane.b32.xlu1 %v2161_v12, %s4246_s25  ;;  %v2255_v12 = vsel %vm1088_vm4, %v5757_v62, %v5853_v52 }
 0x852   :  { %v2279_v48 = vsel %vm1886_vm5, %v2255_v12, %v5853_v52 }
 0x855   :  { %2224 = vrot.lane.b32.xlu1 %v2177_v28, %s4246_s25  ;;  %v2254_v28 = vsel %vm1088_vm4, %v5763_v8, %v5857_v25  ;;  %v2252_v8 = vsel %vm1088_vm4, %v5751_v45, %v5849_v5  ;;  %v2250_v45 = vsel %vm1088_vm4, %v5739_v38, %v5840_v4 }
 0x856   :  { %v2278_v62 = vsel %vm1886_vm5, %v2254_v28, %v5857_v25  ;;  %v2276_v25 = vsel %vm1886_vm5, %v2252_v8, %v5849_v5  ;;  %v2274_v5 = vsel %vm1886_vm5, %v2250_v45, %v5840_v4 }
 0x859   :  { %2206 = vrot.lane.b32.xlu1 %v2159_v30, %s4246_s25  ;;  %v2253_v30 = vsel %vm1088_vm4, %v5745_v53, %v5845_v3  ;;  %v2251_v53 = vsel %vm1088_vm4, %v5733_v37, %v5837_v0 }
 0x85a   :  { %v2277_v52 = vsel %vm1886_vm5, %v2253_v30, %v5845_v3  ;;  %v2275_v3 = vsel %vm1886_vm5, %v2251_v53, %v5837_v0 }
 0x85d   :  { %2222 = vrot.lane.b32.xlu1 %v2175_v34, %s4246_s25 }
 0x893   :  { %v2197_v29 = vpop.permute.xlu1 %2196 }
 0x894   :  { %v2259_v61 = vsel %vm1088_vm4, %v5791_v17, %v2197_v29 }
 0x897   :  { %v5867_v15 = vpop.permute.xlu1 %2212 }
 0x89b   :  { %v2195_v58 = vpop.permute.xlu1 %2194 }
 0x89c   :  { %v2258_v6 = vsel %vm1088_vm4, %v5801_v31, %v2195_v58  ;;  %v2281_v31 = vsel %vm1886_vm5, %v2257_v9, %v2193_v63  ;;  %v1802_v63 = vld [vmem:[%s7629_s3 + $0xd0] sm:$0xff] }
 0x89d   :  { %v2282_v17 = vsel %vm1886_vm5, %v2258_v6, %v2195_v58  ;;  %v1804_v6 = vld [vmem:[%s7629_s3 + $0xe0] sm:$0xff]  ;;  %v1806_v9 = vld [vmem:[%s7629_s3 + $0xf0] sm:$0xff] }
 0x89f   :  { %v5869_v32 = vpop.permute.xlu1 %2210 }
 0x8a3   :  { %v2201_v33 = vpop.permute.xlu1 %2200 }
 0x8a4   :  { %v2261_v24 = vsel %vm1088_vm4, %v5811_v47, %v2201_v33 }
 0x8a7   :  { %v5871_v35 = vpop.permute.xlu1 %2216 }
 0x8a8   :  { %v2269_v26 = vsel %vm1088_vm4, %v5815_v55, %v5871_v35  ;;  %v2267_v55 = vsel %vm1088_vm4, %v5796_v41, %v5867_v15  ;;  %v1776_v41 = vld [vmem:[%s7629_s3] sm:$0xff] }
 0x8ab   :  { %v2199_v16 = vpop.permute.xlu1 %2198 }
 0x8af   :  { %v5873_v51 = vpop.permute.xlu1 %2214 }
 0x8b3   :  { %v2205_v54 = vpop.permute.xlu1 %2204 }
 0x8b4   :  { %v2263_v49 = vsel %vm1088_vm4, %v5821_v46, %v2205_v54 }
 0x8b7   :  { %v5875_v22 = vpop.permute.xlu1 %2220 }
 0x8b8   :  { %v2271_v0 = vsel %vm1088_vm4, %v5823_v50, %v5875_v22 }
 0x8bb   :  { %v2203_v57 = vpop.permute.xlu1 %2202 }
 0x8bc   :  { %v2262_v1 = vsel %vm1088_vm4, %v5825_v44, %v2203_v57  ;;  %v2285_v44 = vsel %vm1886_vm5, %v2261_v24, %v2201_v33  ;;  %v2291_v33 = vsel %vm1886_vm5, %v2267_v55, %v5867_v15  ;;  %v1778_v15 = vld [vmem:[%s7629_s3 + $0x10] sm:$0xff]  ;;  %v1799_v24 = vld [vmem:[%s7629_s3 + $0xb8] sm:$0xff] }
 0x8bd   :  { %v2286_v46 = vsel %vm1886_vm5, %v2262_v1, %v2203_v57  ;;  %v1787_v57 = vld [vmem:[%s7629_s3 + $0x58] sm:$0xff]  ;;  %v1797_v1 = vld [vmem:[%s7629_s3 + $0xa8] sm:$0xff] }
 0x8bf   :  { %v5877_v39 = vpop.permute.xlu1 %2218 }
 0x8c0   :  { %v2270_v4 = vsel %vm1088_vm4, %v5827_v23, %v5877_v39  ;;  %v2268_v23 = vsel %vm1088_vm4, %v5819_v19, %v5873_v51  ;;  %v2266_v19 = vsel %vm1088_vm4, %v5806_v18, %v5869_v32  ;;  %v1779_v18 = vld [vmem:[%s7629_s3 + $0x18] sm:$0xff] }
 0x8c1   :  { %v2294_v50 = vsel %vm1886_vm5, %v2270_v4, %v5877_v39  ;;  %v2292_v58 = vsel %vm1886_vm5, %v2268_v23, %v5873_v51  ;;  %v1782_v51 = vld [vmem:[%s7629_s3 + $0x30] sm:$0xff] }
 0x8c2   :  { %v1786_v39 = vld [vmem:[%s7629_s3 + $0x50] sm:$0xff] }
 0x8c3   :  { %v2209_v13 = vpop.permute.xlu1 %2208 }
 0x8c4   :  { %v2265_v36 = vsel %vm1088_vm4, %v2105_v43, %v2209_v13  ;;  %v2287_v43 = vsel %vm1886_vm5, %v2263_v49, %v2205_v54  ;;  %v1785_v54 = vld [vmem:[%s7629_s3 + $0x48] sm:$0xff]  ;;  %v1792_v49 = vld [vmem:[%s7629_s3 + $0x80] sm:$0xff] }
 0x8c5   :  { %v2289_v14 = vsel %vm1886_vm5, %v2265_v36, %v2209_v13  ;;  %v1789_v13 = vld [vmem:[%s7629_s3 + $0x68] sm:$0xff]  ;;  %v1788_v36 = vld [vmem:[%s7629_s3 + $0x60] sm:$0xff] }
 0x8c6   :  { %2348 = vmatpush1.msra.mxu0 %v2289_v14  ;;  %v1791_v14 = vld [vmem:[%s7629_s3 + $0x78] sm:$0xff] }
 0x8c7   :  { %v5881_v59 = vpop.permute.xlu1 %2224  ;;  %2349 = vmatprep.subr.mxu0 %v4241_v2 }
 0x8c8   :  { %v2273_v37 = vsel %vm1088_vm4, %v5829_v40, %v5881_v59 }
 0x8c9   :  { %v2297_v42 = vsel %vm1886_vm5, %v2273_v37, %v5881_v59  ;;  %v1790_v59 = vld [vmem:[%s7629_s3 + $0x70] sm:$0xff] }
 0x8cb   :  { %v2207_v7 = vpop.permute.xlu1 %2206 }
 0x8cc   :  { %v2264_v20 = vsel %vm1088_vm4, %v5831_v27, %v2207_v7  ;;  %v2260_v27 = vsel %vm1088_vm4, %v5817_v60, %v2199_v16  ;;  %v2283_v60 = vsel %vm1886_vm5, %v2259_v61, %v2197_v29  ;;  %v2293_v29 = vsel %vm1886_vm5, %v2269_v26, %v5871_v35  ;;  %v1803_v61 = vld [vmem:[%s7629_s3 + $0xd8] sm:$0xff] }
 0x8cd   :  { %v2288_v10 = vsel %vm1886_vm5, %v2264_v20, %v2207_v7  ;;  %v2284_v47 = vsel %vm1886_vm5, %v2260_v27, %v2199_v16  ;;  %v2290_v35 = vsel %vm1886_vm5, %v2266_v19, %v5869_v32  ;;  %v1781_v16 = vld [vmem:[%s7629_s3 + $0x28] sm:$0xff]  ;;  %v1783_v32 = vld [vmem:[%s7629_s3 + $0x38] sm:$0xff] }
 0x8ce   :  { %2350 = vmatpush1.msra.mxu0 %v2288_v10  ;;  %v1793_v7 = vld [vmem:[%s7629_s3 + $0x88] sm:$0xff]  ;;  %v1795_v20 = vld [vmem:[%s7629_s3 + $0x98] sm:$0xff]  ;;  %v1794_v10 = vld [vmem:[%s7629_s3 + $0x90] sm:$0xff] }
 0x8cf   :  { %2351 = vmatprep.subr.mxu0 %v4241_v2  ;;  %v2223_v34 = vpop.permute.xlu1 %2222  ;;  %v1801_v27 = vld [vmem:[%s7629_s3 + $0xc8] sm:$0xff] }
 0x8d0   :  { %2352 = vmatpush1.msra.mxu0 %v2287_v43  ;;  %v2272_v38 = vsel %vm1088_vm4, %v5833_v56, %v2223_v34  ;;  %v2295_v56 = vsel %vm1886_vm5, %v2271_v0, %v5875_v22  ;;  %v1784_v22 = vld [vmem:[%s7629_s3 + $0x40] sm:$0xff]  ;;  %vm3794_vm4 = vcmask 7168  }
 0x8d1   :  { %2353 = vmatprep.subr.mxu0 %v4241_v2  ;;  %v2296_v40 = vsel %vm1886_vm5, %v2272_v38, %v2223_v34  ;;  %v1796_v43 = vld [vmem:[%s7629_s3 + $0xa0] sm:$0xff] }
 0x8d2   :  { %2354 = vmatpush1.msra.mxu0 %v2286_v46  ;;  %v1798_v46 = vld [vmem:[%s7629_s3 + $0xb0] sm:$0xff] }
 0x8d3   :  { %2355 = vmatprep.subr.mxu0 %v4241_v2 }
 0x8d4   :  { %2356 = vmatpush1.msra.mxu0 %v2285_v44  ;;  %v1800_v44 = vld [vmem:[%s7629_s3 + $0xc0] sm:$0xff] }
 0x8d5   :  { %2357 = vmatprep.subr.mxu0 %v4241_v2 }
 0x8d6   :  { %2358 = vmatpush1.msra.mxu0 %v2284_v47  ;;  %v1805_v47 = vld [vmem:[%s7629_s3 + $0xe8] sm:$0xff] }
 0x8d7   :  { %2359 = vmatprep.subr.mxu0 %v4241_v2 }
 0x8d8   :  { %2360 = vmatpush1.msra.mxu0 %v2283_v60  ;;  %v1807_v60 = vld [vmem:[%s7629_s3 + $0xf8] sm:$0xff] }
 0x8d9   :  { %2361 = vmatprep.subr.mxu0 %v4241_v2 }
 0x8da   :  { %2362 = vmatpush1.msra.mxu0 %v2282_v17 }
 0x8db   :  { %2363 = vmatprep.subr.mxu0 %v4241_v2 }
 0x8dc   :  { %2364 = vmatpush1.msra.mxu0 %v2281_v31 }
 0x8dd   :  { %2365 = vmatprep.subr.mxu0 %v4241_v2 }
 0x8de   :  { %2366 = vmatpush1.msra.mxu0 %v2280_v11 }
 0x8df   :  { %2367 = vmatprep.subr.mxu0 %v4241_v2 }
 0x8e0   :  { %2368 = vmatpush1.msra.mxu0 %v2279_v48 }
 0x8e1   :  { %2369 = vmatprep.subr.mxu0 %v4241_v2 }
 0x8e2   :  { %2370 = vmatpush1.msra.mxu0 %v2278_v62 }
 0x8e3   :  { %2371 = vmatprep.subr.mxu0 %v4241_v2 }
 0x8e4   :  { %2372 = vmatpush1.msra.mxu0 %v2277_v52 }
 0x8e5   :  { %2373 = vmatprep.subr.mxu0 %v4241_v2 }
 0x8e6   :  { %2374 = vmatpush1.msra.mxu0 %v2276_v25 }
 0x8e7   :  { %2375 = vmatprep.subr.mxu0 %v4241_v2 }
 0x8e8   :  { %2376 = vmatpush1.msra.mxu0 %v2275_v3 }
 0x8e9   :  { %2377 = vmatprep.subr.mxu0 %v4241_v2 }
 0x8ea   :  { %2378 = vmatpush1.msra.mxu0 %v2274_v5 }
 0x8eb   :  { %2395 = vmatprep.subr.mxu0 %v4241_v2 }
 0x8ec   :  { %2396 = vmatpush2.msra.mxu0 %v2297_v42 }
 0x8ed   :  { %2397 = vmatprep.subr.mxu0 %v4241_v2 }
 0x8ee   :  { %2398 = vmatpush2.msra.mxu0 %v2296_v40 }
 0x8ef   :  { %2399 = vmatprep.subr.mxu0 %v4241_v2 }
 0x8f0   :  { %2400 = vmatpush2.msra.mxu0 %v2295_v56 }
 0x8f1   :  { %2401 = vmatprep.subr.mxu0 %v4241_v2 }
 0x8f2   :  { %2402 = vmatpush2.msra.mxu0 %v2294_v50 }
 0x8f3   :  { %2403 = vmatprep.subr.mxu0 %v4241_v2 }
 0x8f4   :  { %2404 = vmatpush2.msra.mxu0 %v2293_v29 }
 0x8f5   :  { %2405 = vmatprep.subr.mxu0 %v4241_v2 }
 0x8f6   :  { %2406 = vmatpush2.msra.mxu0 %v2292_v58 }
 0x8f7   :  { %2407 = vmatprep.subr.mxu0 %v4241_v2 }
 0x8f8   :  { %2408 = vmatpush2.msra.mxu0 %v2291_v33 }
 0x8f9   :  { %2409 = vmatprep.subr.mxu0 %v4241_v2  ;;  %v1780_v2 = vld [vmem:[%s7629_s3 + $0x20] sm:$0xff] }
 0x8fa   :  { %2410 = vmatpush2.msra.mxu0 %v2290_v35 }
 0x8fb   :  { %2412 = vmatmul.mubr.f32.vlgmr.msra.gmra.mxu0 %v1776_v41 }
 0x8fc   :  { %3980 = vmatprep.mubr.msk.f32.mxu0 %vm2298_vm6, %v1779_v18  ;;  %v2668_v18 = vld [vmem:[%s7630_s4 + $0x80] sm:$0xff] }
 0x8ff   :  { %2417 = vmatmul.mubr.f32.gmra.mxu0 %v1778_v15 }
 0x900   :  { %3981 = vmatprep.mubr.msk.f32.mxu0 %vm2298_vm6, %v1781_v16  ;;  %v2684_v16 = vld [vmem:[%s7630_s4 + $0x100] sm:$0xff] }
 0x903   :  { %2422 = vmatmul.mubr.f32.gmra.mxu0 %v1780_v2 }
 0x904   :  { %3982 = vmatprep.mubr.msk.f32.mxu0 %vm2298_vm6, %v1783_v32 }
 0x907   :  { %2427 = vmatmul.mubr.f32.gmra.mxu0 %v1782_v51 }
 0x908   :  { %3983 = vmatprep.mubr.msk.f32.mxu0 %vm2298_vm6, %v1785_v54  ;;  %v2700_v54 = vld [vmem:[%s7630_s4 + $0x180] sm:$0xff] }
 0x90b   :  { %2432 = vmatmul.mubr.f32.gmra.mxu0 %v1784_v22 }
 0x90c   :  { %3984 = vmatprep.mubr.msk.f32.mxu0 %vm2298_vm6, %v1787_v57 }
 0x90f   :  { %2437 = vmatmul.mubr.f32.gmra.mxu0 %v1786_v39  ;;  %v2716_v39 = vld [vmem:[%s7630_s4 + $0x200] sm:$0xff] }
 0x910   :  { %3985 = vmatprep.mubr.msk.f32.mxu0 %vm2298_vm6, %v1789_v13 }
 0x913   :  { %2442 = vmatmul.mubr.f32.gmra.mxu0 %v1788_v36 }
 0x914   :  { %3986 = vmatprep.mubr.msk.f32.mxu0 %vm2298_vm6, %v1791_v14 }
 0x917   :  { %2447 = vmatmul.mubr.f32.gmra.mxu0 %v1790_v59 }
 0x918   :  { %3987 = vmatprep.mubr.msk.f32.mxu0 %vm2298_vm6, %v1793_v7  ;;  %v6190_v7 = vld [vmem:[%s7630_s4] sm:$0xff] }
 0x91b   :  { %2452 = vmatmul.mubr.f32.gmra.mxu0 %v1792_v49 }
 0x91c   :  { %3988 = vmatprep.mubr.msk.f32.mxu0 %vm2298_vm6, %v1795_v20 }
 0x91f   :  { %2457 = vmatmul.mubr.f32.gmra.mxu0 %v1794_v10  ;;  %v6197_v10 = vld [vmem:[%s7630_s4 + $0x280] sm:$0xff] }
 0x920   :  { %3989 = vmatprep.mubr.msk.f32.mxu0 %vm2298_vm6, %v1797_v1 }
 0x923   :  { %2462 = vmatmul.mubr.f32.gmra.mxu0 %v1796_v43 }
 0x924   :  { %3990 = vmatprep.mubr.msk.f32.mxu0 %vm2298_vm6, %v1799_v24 }
 0x927   :  { %2467 = vmatmul.mubr.f32.gmra.mxu0 %v1798_v46  ;;  %v6204_v46 = vld [vmem:[%s7630_s4 + $0x88] sm:$0xff] }
 0x928   :  { %3991 = vmatprep.mubr.msk.f32.mxu0 %vm2298_vm6, %v1801_v27 }
 0x92b   :  { %2472 = vmatmul.mubr.f32.gmra.mxu0 %v1800_v44 }
 0x92c   :  { %3992 = vmatprep.mubr.msk.f32.mxu0 %vm2298_vm6, %v1803_v61  ;;  %v6212_v61 = vld [vmem:[%s7630_s4 + $0x108] sm:$0xff] }
 0x92f   :  { %2477 = vmatmul.mubr.f32.gmra.mxu0 %v1802_v63 }
 0x930   :  { %3993 = vmatprep.mubr.msk.f32.mxu0 %vm2298_vm6, %v1805_v47 }
 0x933   :  { %2482 = vmatmul.mubr.f32.gmra.mxu0 %v1804_v6  ;;  %v6219_v6 = vld [vmem:[%s7630_s4 + $0x188] sm:$0xff] }
 0x934   :  { %3994 = vmatprep.mubr.msk.f32.mxu0 %vm2298_vm6, %v1807_v60 }
 0x937   :  { %2487 = vmatmul.mubr.f32.gmra.mxu0 %v1806_v9 }
 0x9bb   :  { %v2413_v17 = vpop.f32.mrf.mxu0 }
 0x9bc   :  { %2508 = vrot.lane.b32.xlu0 %v2413_v17, %s4253_s2 }
 0x9bd   :  { %v2415_v21 = vpop.f32.mrf.mxu0 }
 0x9bf   :  { %v6110_v31 = vpop.f32.mrf.mxu0 }
 0x9c0   :  { %2510 = vrot.lane.b32.xlu1 %v6110_v31, %s4253_s2 }
 0x9c1   :  { %v2420_v12 = vpop.f32.mrf.mxu0 }
 0x9c3   :  { %v6114_v11 = vpop.f32.mrf.mxu0 }
 0x9c4   :  { %2512 = vrot.lane.b32.xlu0 %v6114_v11, %s4253_s2 }
 0x9c5   :  { %v2425_v28 = vpop.f32.mrf.mxu0 }
 0x9c7   :  { %v6118_v48 = vpop.f32.mrf.mxu0 }
 0x9c8   :  { %2514 = vrot.lane.b32.xlu1 %v6118_v48, %s4253_s2 }
 0x9c9   :  { %v2430_v30 = vpop.f32.mrf.mxu0 }
 0x9ca   :  { %v6234_v30 = vld [vmem:[%s7630_s4 + $0x8] sm:$0xff] }
 0x9cb   :  { %v6122_v62 = vpop.f32.mrf.mxu0 }
 0x9cc   :  { %2516 = vrot.lane.b32.xlu0 %v6122_v62, %s4253_s2 }
 0x9cd   :  { %v2435_v8 = vpop.f32.mrf.mxu0 }
 0x9cf   :  { %v6126_v52 = vpop.f32.mrf.mxu0 }
 0x9d0   :  { %2518 = vrot.lane.b32.xlu1 %v6126_v52, %s4253_s2 }
 0x9d1   :  { %v2440_v53 = vpop.f32.mrf.mxu0 }
 0x9d3   :  { %v6130_v25 = vpop.f32.mrf.mxu0 }
 0x9d4   :  { %2520 = vrot.lane.b32.xlu0 %v6130_v25, %s4253_s2 }
 0x9d5   :  { %v2445_v45 = vpop.f32.mrf.mxu0 }
 0x9d6   :  { %v6241_v45 = vld [vmem:[%s7630_s4 + $0x288] sm:$0xff] }
 0x9d7   :  { %v6134_v34 = vpop.f32.mrf.mxu0 }
 0x9d8   :  { %2522 = vrot.lane.b32.xlu1 %v6134_v34, %s4253_s2 }
 0x9d9   :  { %v2450_v3 = vpop.f32.mrf.mxu0 }
 0x9db   :  { %v6138_v37 = vpop.f32.mrf.mxu0 }
 0x9dc   :  { %2524 = vrot.lane.b32.xlu0 %v6138_v37, %s4253_s2 }
 0x9dd   :  { %v2455_v5 = vpop.f32.mrf.mxu0 }
 0x9df   :  { %v6142_v38 = vpop.f32.mrf.mxu0 }
 0x9e0   :  { %2526 = vrot.lane.b32.xlu1 %v6142_v38, %s4253_s2 }
 0x9e1   :  { %v2460_v42 = vpop.f32.mrf.mxu0 }
 0x9e3   :  { %v6146_v0 = vpop.f32.mrf.mxu0 }
 0x9e4   :  { %2528 = vrot.lane.b32.xlu0 %v6146_v0, %s4253_s2 }
 0x9e5   :  { %v2465_v40 = vpop.f32.mrf.mxu0 }
 0x9e6   :  { %v2670_v40 = vld [vmem:[%s7630_s4 + $0x90] sm:$0xff] }
 0x9e7   :  { %v6150_v4 = vpop.f32.mrf.mxu0 }
 0x9e8   :  { %2530 = vrot.lane.b32.xlu1 %v6150_v4, %s4253_s2 }
 0x9e9   :  { %v2470_v56 = vpop.f32.mrf.mxu0 }
 0x9eb   :  { %v6154_v26 = vpop.f32.mrf.mxu0 }
 0x9ec   :  { %2532 = vrot.lane.b32.xlu0 %v6154_v26, %s4253_s2 }
 0x9ed   :  { %v2475_v50 = vpop.f32.mrf.mxu0 }
 0x9ee   :  { %v2686_v50 = vld [vmem:[%s7630_s4 + $0x110] sm:$0xff] }
 0x9ef   :  { %v6158_v23 = vpop.f32.mrf.mxu0 }
 0x9f0   :  { %2534 = vrot.lane.b32.xlu1 %v6158_v23, %s4253_s2 }
 0x9f1   :  { %v2480_v29 = vpop.f32.mrf.mxu0 }
 0x9f3   :  { %v6162_v55 = vpop.f32.mrf.mxu0 }
 0x9f4   :  { %2536 = vrot.lane.b32.xlu0 %v6162_v55, %s4253_s2 }
 0x9f5   :  { %v2485_v58 = vpop.f32.mrf.mxu0 }
 0x9f7   :  { %v6166_v19 = vpop.f32.mrf.mxu0 }
 0x9f8   :  { %2538 = vrot.lane.b32.xlu1 %v6166_v19, %s4253_s2 }
 0x9f9   :  { %v2490_v33 = vpop.f32.mrf.mxu0 }
 0x9fa   :  { %v2702_v33 = vld [vmem:[%s7630_s4 + $0x190] sm:$0xff] }
 0xa2e   :  { %v2509_v41 = vpop.permute.xlu0 %2508 }
 0xa2f   :  { %v2556_v35 = vmax.f32 %v2413_v17, %v2509_v41  ;;  %v6226_v17 = vld [vmem:[%s7630_s4 + $0x208] sm:$0xff] }
 0xa31   :  { %v2572_v15 = vmax.f32 %v2556_v35, 0.0 }
 0xa32   :  { %v2511_v59 = vpop.permute.xlu1 %2510 }
 0xa33   :  { %2604 = vrot.lane.b32.xlu0 %v2572_v15, %s4250_s12  ;;  %v2919_v2 = vmul.f32 %v2668_v18, %v2572_v15  ;;  %v3090_v51 = vmul.f32 %v2684_v16, %v2572_v15  ;;  %v3261_v57 = vmul.f32 %v2700_v54, %v2572_v15  ;;  %v3432_v36 = vmul.f32 %v2716_v39, %v2572_v15  ;;  %v6261_v18 = vld [vmem:[%s7630_s4 + $0x290] sm:$0xff] }
 0xa34   :  { %v2557_v49 = vmax.f32 %v6110_v31, %v2511_v59  ;;  %v2748_v20 = vmul.f32 %v6190_v7, %v2572_v15  ;;  %v3603_v24 = vmul.f32 %v6197_v10, %v2572_v15 }
 0xa35   :  { %v2935_v32 = vsel %vm1871_vm2, %v2919_v2, 0.0  ;;  %v3106_v22 = vsel %vm1871_vm2, %v3090_v51, 0.0  ;;  %v3277_v13 = vsel %vm1871_vm2, %v3261_v57, 0.0  ;;  %v3448_v14 = vsel %vm1871_vm2, %v3432_v36, 0.0  ;;  %v6269_v51 = vld [vmem:[%s7630_s4 + $0x10] sm:$0xff] }
 0xa36   :  { %2936 = vadd.xlane.f32.xlu1 %v2935_v32  ;;  %v2573_v1 = vmax.f32 %v2557_v49, 0.0  ;;  %v2764_v43 = vsel %vm1871_vm2, %v2748_v20, 0.0  ;;  %v3619_v27 = vsel %vm1871_vm2, %v3603_v24, 0.0  ;;  %v2513_v28 = vpop.permute.xlu0 %2512  ;;  %v2718_v57 = vld [vmem:[%s7630_s4 + $0x210] sm:$0xff]  ;;  %v6288_v49 = vld [vmem:[%s7630_s4 + $0x98] sm:$0xff] }
 0xa37   :  { %v2558_v8 = vmax.f32 %v6114_v11, %v2513_v28 }
 0xa38   :  { %v2920_v44 = vmul.f32 %v6204_v46, %v2573_v1  ;;  %v3091_v47 = vmul.f32 %v6212_v61, %v2573_v1  ;;  %v3262_v9 = vmul.f32 %v6219_v6, %v2573_v1  ;;  %v3433_v31 = vmul.f32 %v6226_v17, %v2573_v1 }
 0xa39   :  { %v2749_v53 = vmul.f32 %v6234_v30, %v2573_v1  ;;  %v2574_v3 = vmax.f32 %v2558_v8, 0.0  ;;  %v3604_v42 = vmul.f32 %v6241_v45, %v2573_v1  ;;  %v6318_v8 = vld [vmem:[%s7630_s4 + $0x218] sm:$0xff] }
 0xa3a   :  { %3107 = vadd.xlane.f32.xlu1 %v3106_v22  ;;  %v2938_v63 = vsel %vm1871_vm2, %v2920_v44, 0.0  ;;  %v3109_v60 = vsel %vm1871_vm2, %v3091_v47, 0.0  ;;  %v3280_v21 = vsel %vm1871_vm2, %v3262_v9, 0.0  ;;  %v3451_v12 = vsel %vm1871_vm2, %v3433_v31, 0.0  ;;  %v2515_v32 = vpop.permute.xlu1 %2514  ;;  %v6302_v44 = vld [vmem:[%s7630_s4 + $0x198] sm:$0xff] }
 0xa3b   :  { %v2767_v5 = vsel %vm1871_vm2, %v2749_v53, 0.0  ;;  %v3622_v56 = vsel %vm1871_vm2, %v3604_v42, 0.0  ;;  %v2921_v11 = vmul.f32 %v2670_v40, %v2574_v3  ;;  %v3092_v58 = vmul.f32 %v2686_v50, %v2574_v3  ;;  %v6338_v50 = vld [vmem:[%s7630_s4 + $0x120] sm:$0xff] }
 0xa3c   :  { %v3263_v35 = vmul.f32 %v2702_v33, %v2574_v3  ;;  %v3605_v16 = vmul.f32 %v6261_v18, %v2574_v3  ;;  %v2559_v54 = vmax.f32 %v6118_v48, %v2515_v32  ;;  %v2750_v22 = vmul.f32 %v6269_v51, %v2574_v3  ;;  %v6345_v33 = vld [vmem:[%s7630_s4 + $0x1a0] sm:$0xff] }
 0xa3d   :  { %v2941_v29 = vsel %vm1871_vm2, %v2921_v11, 0.0  ;;  %v3112_v41 = vsel %vm1871_vm2, %v3092_v58, 0.0  ;;  %v3434_v36 = vmul.f32 %v2718_v57, %v2574_v3  ;;  %v6362_v57 = vld [vmem:[%s7630_s4 + $0x220] sm:$0xff] }
 0xa3e   :  { %3278 = vadd.xlane.f32.xlu1 %v3277_v13  ;;  %v3283_v15 = vsel %vm1871_vm2, %v3263_v35, 0.0  ;;  %v3625_v2 = vsel %vm1871_vm2, %v3605_v16, 0.0  ;;  %v2575_v39 = vmax.f32 %v2559_v54, 0.0  ;;  %v2770_v13 = vsel %vm1871_vm2, %v2750_v22, 0.0 }
 0xa3f   :  { %v3454_v48 = vsel %vm1871_vm2, %v3434_v36, 0.0  ;;  %v6368_v36 = vld [vmem:[%s7630_s4 + $0x28] sm:$0xff] }
 0xa40   :  { %v3264_v47 = vmul.f32 %v6302_v44, %v2575_v39 }
 0xa42   :  { %3449 = vadd.xlane.f32.xlu1 %v3448_v14  ;;  %v6280_v14 = vld [vmem:[%s7630_s4 + $0x18] sm:$0xff]  ;;  %v3286_v9 = vsel %vm1871_vm2, %v3264_v47, 0.0  ;;  %v2519_v54 = vpop.permute.xlu1 %2518  ;;  %v6390_v47 = vld [vmem:[%s7630_s4 + $0x1a8] sm:$0xff] }
 0xa43   :  { %v2751_v59 = vmul.f32 %v6280_v14, %v2575_v39  ;;  %v2561_v22 = vmax.f32 %v6126_v52, %v2519_v54  ;;  %v6376_v52 = vld [vmem:[%s7630_s4 + $0xa8] sm:$0xff] }
 0xa45   :  { %v2773_v20 = vsel %vm1871_vm2, %v2751_v59, 0.0 }
 0xa52   :  { %2765 = vadd.xlane.f32.xlu0 %v2764_v43  ;;  %v6295_v43 = vld [vmem:[%s7630_s4 + $0x118] sm:$0xff] }
 0xa53   :  { %2606 = vrot.lane.b32.xlu1 %v2573_v1, %s4250_s12  ;;  %v2922_v1 = vmul.f32 %v6288_v49, %v2575_v39 }
 0xa55   :  { %v2944_v24 = vsel %vm1871_vm2, %v2922_v1, 0.0 }
 0xa56   :  { %3620 = vadd.xlane.f32.xlu0 %v3619_v27  ;;  %v3093_v27 = vmul.f32 %v6295_v43, %v2575_v39 }
 0xa5a   :  { %2939 = vadd.xlane.f32.xlu0 %v2938_v63  ;;  %v3115_v63 = vsel %vm1871_vm2, %v3093_v27, 0.0 }
 0xa5e   :  { %3110 = vadd.xlane.f32.xlu0 %v3109_v60  ;;  %v6309_v60 = vld [vmem:[%s7630_s4 + $0x298] sm:$0xff] }
 0xa62   :  { %3281 = vadd.xlane.f32.xlu0 %v3280_v21  ;;  %v3606_v21 = vmul.f32 %v6309_v60, %v2575_v39 }
 0xa64   :  { %v3628_v31 = vsel %vm1871_vm2, %v3606_v21, 0.0 }
 0xa66   :  { %3452 = vadd.xlane.f32.xlu0 %v3451_v12  ;;  %v2517_v12 = vpop.permute.xlu0 %2516 }
 0xa67   :  { %v2560_v28 = vmax.f32 %v6122_v62, %v2517_v12  ;;  %v6331_v62 = vld [vmem:[%s7630_s4 + $0xa0] sm:$0xff] }
 0xa69   :  { %v2576_v53 = vmax.f32 %v2560_v28, 0.0 }
 0xa6b   :  { %v2923_v11 = vmul.f32 %v6331_v62, %v2576_v53  ;;  %v3094_v58 = vmul.f32 %v6338_v50, %v2576_v53  ;;  %v3265_v35 = vmul.f32 %v6345_v33, %v2576_v53 }
 0xa6d   :  { %v3289_v16 = vsel %vm1871_vm2, %v3265_v35, 0.0 }
 0xa77   :  { %2768 = vadd.xlane.f32.xlu1 %v2767_v5  ;;  %v6324_v5 = vld [vmem:[%s7630_s4 + $0x20] sm:$0xff] }
 0xa78   :  { %v2752_v40 = vmul.f32 %v6324_v5, %v2576_v53 }
 0xa7b   :  { %3623 = vadd.xlane.f32.xlu1 %v3622_v56  ;;  %v2776_v56 = vsel %vm1871_vm2, %v2752_v40, 0.0  ;;  %v6406_v40 = vld [vmem:[%s7630_s4 + $0x228] sm:$0xff] }
 0xa7c   :  { %2608 = vrot.lane.b32.xlu0 %v2574_v3, %s4250_s12  ;;  %v3435_v3 = vmul.f32 %v6318_v8, %v2575_v39 }
 0xa7e   :  { %v3457_v42 = vsel %vm1871_vm2, %v3435_v3, 0.0  ;;  %v2521_v3 = vpop.permute.xlu0 %2520 }
 0xa7f   :  { %2942 = vadd.xlane.f32.xlu1 %v2941_v29  ;;  %v2947_v29 = vsel %vm1871_vm2, %v2923_v11, 0.0 }
 0xa83   :  { %3113 = vadd.xlane.f32.xlu1 %v3112_v41  ;;  %v3118_v41 = vsel %vm1871_vm2, %v3094_v58, 0.0 }
 0xa87   :  { %3284 = vadd.xlane.f32.xlu1 %v3283_v15  ;;  %v6353_v15 = vld [vmem:[%s7630_s4 + $0x2a0] sm:$0xff] }
 0xa8b   :  { %3626 = vadd.xlane.f32.xlu1 %v3625_v2  ;;  %v3607_v2 = vmul.f32 %v6353_v15, %v2576_v53 }
 0xa8d   :  { %v3631_v32 = vsel %vm1871_vm2, %v3607_v2, 0.0  ;;  %v6426_v2 = vld [vmem:[%s7630_s4 + $0x130] sm:$0xff] }
 0xa9b   :  { %2771 = vadd.xlane.f32.xlu0 %v2770_v13  ;;  %v3436_v13 = vmul.f32 %v6362_v57, %v2576_v53 }
 0xa9c   :  { %2610 = vrot.lane.b32.xlu1 %v2575_v39, %s4250_s12  ;;  %v2577_v39 = vmax.f32 %v2561_v22, 0.0  ;;  %v6433_v22 = vld [vmem:[%s7630_s4 + $0x1b0] sm:$0xff] }
 0xa9e   :  { %v2753_v59 = vmul.f32 %v6368_v36, %v2577_v39  ;;  %v2924_v1 = vmul.f32 %v6376_v52, %v2577_v39  ;;  %v3266_v21 = vmul.f32 %v6390_v47, %v2577_v39  ;;  %v3437_v11 = vmul.f32 %v6406_v40, %v2577_v39 }
 0xa9f   :  { %3455 = vadd.xlane.f32.xlu0 %v3454_v48  ;;  %v3460_v48 = vsel %vm1871_vm2, %v3436_v13, 0.0 }
 0xaa0   :  { %v2950_v27 = vsel %vm1871_vm2, %v2924_v1, 0.0  ;;  %v3292_v12 = vsel %vm1871_vm2, %v3266_v21, 0.0  ;;  %v3463_v58 = vsel %vm1871_vm2, %v3437_v11, 0.0  ;;  %v6471_v11 = vld [vmem:[%s7630_s4 + $0x138] sm:$0xff] }
 0xaa3   :  { %2774 = vadd.xlane.f32.xlu0 %v2773_v20  ;;  %v2779_v20 = vsel %vm1871_vm2, %v2753_v59, 0.0 }
 0xaa7   :  { %2945 = vadd.xlane.f32.xlu0 %v2944_v24  ;;  %v6383_v24 = vld [vmem:[%s7630_s4 + $0x128] sm:$0xff] }
 0xaab   :  { %3116 = vadd.xlane.f32.xlu0 %v3115_v63  ;;  %v3095_v63 = vmul.f32 %v6383_v24, %v2577_v39 }
 0xaaf   :  { %3287 = vadd.xlane.f32.xlu0 %v3286_v9  ;;  %v3121_v9 = vsel %vm1871_vm2, %v3095_v63, 0.0 }
 0xab3   :  { %3629 = vadd.xlane.f32.xlu0 %v3628_v31  ;;  %v6397_v31 = vld [vmem:[%s7630_s4 + $0x2a8] sm:$0xff] }
 0xab4   :  { %v3608_v28 = vmul.f32 %v6397_v31, %v2577_v39 }
 0xac0   :  { %3458 = vadd.xlane.f32.xlu1 %v3457_v42  ;;  %v2562_v42 = vmax.f32 %v6130_v25, %v2521_v3  ;;  %v6419_v25 = vld [vmem:[%s7630_s4 + $0xb0] sm:$0xff] }
 0xac4   :  { %2777 = vadd.xlane.f32.xlu1 %v2776_v56  ;;  %v2578_v56 = vmax.f32 %v2562_v42, 0.0 }
 0xac6   :  { %v3096_v54 = vmul.f32 %v6426_v2, %v2578_v56  ;;  %v3267_v13 = vmul.f32 %v6433_v22, %v2578_v56 }
 0xac8   :  { %2948 = vadd.xlane.f32.xlu1 %v2947_v29  ;;  %v6412_v29 = vld [vmem:[%s7630_s4 + $0x30] sm:$0xff]  ;;  %v3295_v59 = vsel %vm1871_vm2, %v3267_v13, 0.0 }
 0xac9   :  { %2612 = vrot.lane.b32.xlu0 %v2576_v53, %s4250_s12  ;;  %v3634_v53 = vsel %vm1871_vm2, %v3608_v28, 0.0  ;;  %v6456_v28 = vld [vmem:[%s7630_s4 + $0x38] sm:$0xff] }
 0xacc   :  { %3119 = vadd.xlane.f32.xlu1 %v3118_v41  ;;  %v2754_v41 = vmul.f32 %v6412_v29, %v2578_v56 }
 0xace   :  { %v2782_v35 = vsel %vm1871_vm2, %v2754_v41, 0.0 }
 0xad0   :  { %3290 = vadd.xlane.f32.xlu1 %v3289_v16  ;;  %v2925_v16 = vmul.f32 %v6419_v25, %v2578_v56 }
 0xad4   :  { %3632 = vadd.xlane.f32.xlu1 %v3631_v32  ;;  %v2953_v32 = vsel %vm1871_vm2, %v2925_v16, 0.0 }
 0xae5   :  { %2614 = vrot.lane.b32.xlu1 %v2577_v39, %s4250_s12  ;;  %v3124_v39 = vsel %vm1871_vm2, %v3096_v54, 0.0  ;;  %v6485_v54 = vld [vmem:[%s7630_s4 + $0x2b8] sm:$0xff] }
 0xae6   :  { %7760 = vst [vmem:[#allocation5_spill] sm:$0xff] %v6485_v54 }
 0xae8   :  { %3461 = vadd.xlane.f32.xlu0 %v3460_v48  ;;  %v6441_v48 = vld [vmem:[%s7630_s4 + $0x2b0] sm:$0xff] }
 0xaec   :  { %2780 = vadd.xlane.f32.xlu0 %v2779_v20  ;;  %v3609_v20 = vmul.f32 %v6441_v48, %v2578_v56 }
 0xaee   :  { %v3637_v1 = vsel %vm1871_vm2, %v3609_v20, 0.0  ;;  %v2525_v20 = vpop.permute.xlu0 %2524 }
 0xaf0   :  { %2951 = vadd.xlane.f32.xlu0 %v2950_v27  ;;  %v2523_v27 = vpop.permute.xlu1 %2522 }
 0xaf1   :  { %v2563_v63 = vmax.f32 %v6134_v34, %v2523_v27  ;;  %v6464_v34 = vld [vmem:[%s7630_s4 + $0xb8] sm:$0xff] }
 0xaf2   :  { %v6494_v27 = vld [vmem:[%s7630_s4 + $0x238] sm:$0xff] }
 0xaf3   :  { %v2579_v21 = vmax.f32 %v2563_v63, 0.0 }
 0xaf4   :  { %3122 = vadd.xlane.f32.xlu0 %v3121_v9  ;;  %v6450_v9 = vld [vmem:[%s7630_s4 + $0x230] sm:$0xff] }
 0xaf5   :  { %v2755_v3 = vmul.f32 %v6456_v28, %v2579_v21  ;;  %v3097_v41 = vmul.f32 %v6471_v11, %v2579_v21  ;;  %v3610_v13 = vmul.f32 %v6485_v54, %v2579_v21 }
 0xaf7   :  { %v2785_v42 = vsel %vm1871_vm2, %v2755_v3, 0.0  ;;  %v3127_v16 = vsel %vm1871_vm2, %v3097_v41, 0.0 }
 0xaf8   :  { %3293 = vadd.xlane.f32.xlu0 %v3292_v12  ;;  %v3438_v12 = vmul.f32 %v6450_v9, %v2578_v56 }
 0xafc   :  { %3635 = vadd.xlane.f32.xlu0 %v3634_v53  ;;  %v3466_v53 = vsel %vm1871_vm2, %v3438_v12, 0.0  ;;  %v3439_v12 = vmul.f32 %v6494_v27, %v2579_v21 }
 0xafe   :  { %v3469_v3 = vsel %vm1871_vm2, %v3439_v12, 0.0 }
 0xb09   :  { %3464 = vadd.xlane.f32.xlu1 %v3463_v58 }
 0xb0d   :  { %2783 = vadd.xlane.f32.xlu1 %v2782_v35  ;;  %v6478_v35 = vld [vmem:[%s7630_s4 + $0x1b8] sm:$0xff] }
 0xb11   :  { %2954 = vadd.xlane.f32.xlu1 %v2953_v32  ;;  %v3268_v32 = vmul.f32 %v6478_v35, %v2579_v21 }
 0xb12   :  { %2616 = vrot.lane.b32.xlu0 %v2578_v56, %s4250_s12  ;;  %v2926_v56 = vmul.f32 %v6464_v34, %v2579_v21 }
 0xb14   :  { %v2956_v58 = vsel %vm1871_vm2, %v2926_v56, 0.0 }
 0xb15   :  { %3125 = vadd.xlane.f32.xlu1 %v3124_v39  ;;  %v3298_v39 = vsel %vm1871_vm2, %v3268_v32, 0.0  ;;  %v6521_v32 = vld [vmem:[%s7630_s4 + $0x1c0] sm:$0xff] }
 0xb16   :  { %7764 = vst [vmem:[#allocation9_spill] sm:$0xff] %v6521_v32 }
 0xb19   :  { %3296 = vadd.xlane.f32.xlu1 %v3295_v59  ;;  %v3640_v59 = vsel %vm1871_vm2, %v3610_v13, 0.0 }
 0xb1d   :  { %3638 = vadd.xlane.f32.xlu1 %v3637_v1  ;;  %v2564_v1 = vmax.f32 %v6138_v37, %v2525_v20  ;;  %v6507_v37 = vld [vmem:[%s7630_s4 + $0xc0] sm:$0xff] }
 0xb1e   :  { %7762 = vst [vmem:[#allocation7_spill] sm:$0xff] %v6507_v37 }
 0xb1f   :  { %v2580_v63 = vmax.f32 %v2564_v1, 0.0 }
 0xb21   :  { %v3269_v13 = vmul.f32 %v6521_v32, %v2580_v63 }
 0xb23   :  { %v3301_v20 = vsel %vm1871_vm2, %v3269_v13, 0.0 }
 0xb2e   :  { %2618 = vrot.lane.b32.xlu1 %v2579_v21, %s4250_s12  ;;  %v6514_v21 = vld [vmem:[%s7630_s4 + $0x140] sm:$0xff] }
 0xb2f   :  { %7763 = vst [vmem:[#allocation8_spill] sm:$0xff] %v6514_v21 }
 0xb31   :  { %3467 = vadd.xlane.f32.xlu0 %v3466_v53  ;;  %v6500_v53 = vld [vmem:[%s7630_s4 + $0x40] sm:$0xff] }
 0xb32   :  { %7761 = vst [vmem:[#allocation6_spill] sm:$0xff] %v6500_v53 }
 0xb35   :  { %2786 = vadd.xlane.f32.xlu0 %v2785_v42  ;;  %v2756_v42 = vmul.f32 %v6500_v53, %v2580_v63 }
 0xb37   :  { %v2788_v56 = vsel %vm1871_vm2, %v2756_v42, 0.0 }
 0xb39   :  { %2957 = vadd.xlane.f32.xlu0 %v2956_v58  ;;  %v2927_v58 = vmul.f32 %v6507_v37, %v2580_v63 }
 0xb3b   :  { %v2959_v41 = vsel %vm1871_vm2, %v2927_v58, 0.0 }
 0xb3d   :  { %3128 = vadd.xlane.f32.xlu0 %v3127_v16  ;;  %v3098_v16 = vmul.f32 %v6514_v21, %v2580_v63 }
 0xb41   :  { %3299 = vadd.xlane.f32.xlu0 %v3298_v39  ;;  %v3130_v39 = vsel %vm1871_vm2, %v3098_v16, 0.0  ;;  %v6544_v16 = vld [vmem:[%s7630_s4 + $0x48] sm:$0xff] }
 0xb45   :  { %3641 = vadd.xlane.f32.xlu0 %v3640_v59  ;;  %v6529_v59 = vld [vmem:[%s7630_s4 + $0x2c0] sm:$0xff] }
 0xb46   :  { %v3611_v1 = vmul.f32 %v6529_v59, %v2580_v63 }
 0xb48   :  { %v3643_v12 = vsel %vm1871_vm2, %v3611_v1, 0.0  ;;  %v6559_v1 = vld [vmem:[%s7630_s4 + $0x148] sm:$0xff] }
 0xb52   :  { %3470 = vadd.xlane.f32.xlu1 %v3469_v3  ;;  %v2527_v3 = vpop.permute.xlu1 %2526 }
 0xb53   :  { %v2565_v42 = vmax.f32 %v6142_v38, %v2527_v3  ;;  %v6552_v38 = vld [vmem:[%s7630_s4 + $0xc8] sm:$0xff] }
 0xb55   :  { %v2581_v58 = vmax.f32 %v2565_v42, 0.0  ;;  %v6566_v42 = vld [vmem:[%s7630_s4 + $0x1c8] sm:$0xff] }
 0xb56   :  { %2789 = vadd.xlane.f32.xlu1 %v2788_v56  ;;  %v6538_v56 = vld [vmem:[%s7630_s4 + $0x240] sm:$0xff]  ;;  %7766 = vst [vmem:[#allocation11_spill] sm:$0xff] %v6566_v42 }
 0xb57   :  { %7765 = vst [vmem:[#allocation10_spill] sm:$0xff] %v6538_v56  ;;  %v2757_v13 = vmul.f32 %v6544_v16, %v2581_v58  ;;  %v3099_v3 = vmul.f32 %v6559_v1, %v2581_v58 }
 0xb5a   :  { %2960 = vadd.xlane.f32.xlu1 %v2959_v41  ;;  %v3440_v41 = vmul.f32 %v6538_v56, %v2580_v63  ;;  %v2529_v56 = vpop.permute.xlu0 %2528 }
 0xb5b   :  { %2620 = vrot.lane.b32.xlu0 %v2580_v63, %s4250_s12  ;;  %v2928_v63 = vmul.f32 %v6552_v38, %v2581_v58  ;;  %v2566_v32 = vmax.f32 %v6146_v0, %v2529_v56  ;;  %v6595_v0 = vld [vmem:[%s7630_s4 + $0xd0] sm:$0xff] }
 0xb5c   :  { %7770 = vst [vmem:[#allocation15_spill] sm:$0xff] %v6595_v0 }
 0xb5e   :  { %3131 = vadd.xlane.f32.xlu1 %v3130_v39  ;;  %v3472_v39 = vsel %vm1871_vm2, %v3440_v41, 0.0  ;;  %v3133_v41 = vsel %vm1871_vm2, %v3099_v3, 0.0  ;;  %v6582_v3 = vld [vmem:[%s7630_s4 + $0x248] sm:$0xff] }
 0xb5f   :  { %7768 = vst [vmem:[#allocation13_spill] sm:$0xff] %v6582_v3  ;;  %v3441_v21 = vmul.f32 %v6582_v3, %v2581_v58 }
 0xb62   :  { %3302 = vadd.xlane.f32.xlu1 %v3301_v20  ;;  %v2791_v20 = vsel %vm1871_vm2, %v2757_v13, 0.0  ;;  %v6573_v13 = vld [vmem:[%s7630_s4 + $0x2c8] sm:$0xff] }
 0xb63   :  { %7767 = vst [vmem:[#allocation12_spill] sm:$0xff] %v6573_v13 }
 0xb66   :  { %3644 = vadd.xlane.f32.xlu1 %v3643_v12  ;;  %v2962_v12 = vsel %vm1871_vm2, %v2928_v63, 0.0  ;;  %v3612_v63 = vmul.f32 %v6573_v13, %v2581_v58  ;;  %v2531_v13 = vpop.permute.xlu1 %2530 }
 0xb77   :  { %2622 = vrot.lane.b32.xlu1 %v2581_v58, %s4250_s12 }
 0xb7a   :  { %3473 = vadd.xlane.f32.xlu0 %v3472_v39  ;;  %v3270_v39 = vmul.f32 %v6566_v42, %v2581_v58  ;;  %v6602_v58 = vld [vmem:[%s7630_s4 + $0x150] sm:$0xff] }
 0xb7b   :  { %7771 = vst [vmem:[#allocation16_spill] sm:$0xff] %v6602_v58 }
 0xb7e   :  { %2792 = vadd.xlane.f32.xlu0 %v2791_v20  ;;  %v3304_v20 = vsel %vm1871_vm2, %v3270_v39, 0.0  ;;  %v6588_v39 = vld [vmem:[%s7630_s4 + $0x50] sm:$0xff] }
 0xb7f   :  { %7769 = vst [vmem:[#allocation14_spill] sm:$0xff] %v6588_v39 }
 0xb82   :  { %2963 = vadd.xlane.f32.xlu0 %v2962_v12  ;;  %v3646_v12 = vsel %vm1871_vm2, %v3612_v63, 0.0 }
 0xb86   :  { %3134 = vadd.xlane.f32.xlu0 %v3133_v41  ;;  %v2582_v41 = vmax.f32 %v2566_v32, 0.0 }
 0xb88   :  { %v2758_v63 = vmul.f32 %v6588_v39, %v2582_v41  ;;  %v2929_v32 = vmul.f32 %v6595_v0, %v2582_v41  ;;  %v6617_v0 = vld [vmem:[%s7630_s4 + $0x2d0] sm:$0xff]  ;;  %v2533_v39 = vpop.permute.xlu0 %2532 }
 0xb89   :  { %7773 = vst [vmem:[#allocation18_spill] sm:$0xff] %v6617_v0 }
 0xb8a   :  { %3305 = vadd.xlane.f32.xlu0 %v3304_v20  ;;  %v3475_v20 = vsel %vm1871_vm2, %v3441_v21, 0.0  ;;  %v2794_v56 = vsel %vm1871_vm2, %v2758_v63, 0.0  ;;  %v2965_v21 = vsel %vm1871_vm2, %v2929_v32, 0.0 }
 0xb8c   :  { %v6622_v37 = vpop.permute.xlu0 %2536 }
 0xb8e   :  { %3647 = vadd.xlane.f32.xlu0 %v3646_v12  ;;  %v3100_v12 = vmul.f32 %v6602_v58, %v2582_v41 }
 0xb90   :  { %v3136_v63 = vsel %vm1871_vm2, %v3100_v12, 0.0  ;;  %v2567_v12 = vmax.f32 %v6150_v4, %v2531_v13 }
 0xb9b   :  { %3476 = vadd.xlane.f32.xlu1 %v3475_v20  ;;  %v6609_v20 = vld [vmem:[%s7630_s4 + $0x1d0] sm:$0xff] }
 0xb9c   :  { %7772 = vst [vmem:[#allocation17_spill] sm:$0xff] %v6609_v20 }
 0xb9f   :  { %2795 = vadd.xlane.f32.xlu1 %v2794_v56  ;;  %v3271_v56 = vmul.f32 %v6609_v20, %v2582_v41  ;;  %v6630_v20 = vpop.permute.xlu0 %2604 }
 0xba1   :  { %v3307_v32 = vsel %vm1871_vm2, %v3271_v56, 0.0  ;;  %v2583_v56 = vmax.f32 %v2567_v12, 0.0 }
 0xba3   :  { %2966 = vadd.xlane.f32.xlu1 %v2965_v21  ;;  %v3613_v21 = vmul.f32 %v6617_v0, %v2582_v41 }
 0xba4   :  { %2624 = vrot.lane.b32.xlu0 %v2582_v41, %s4250_s12 }
 0xba5   :  { %v3649_v58 = vsel %vm1871_vm2, %v3613_v21, 0.0  ;;  %v6643_v21 = vpop.permute.xlu1 %2534 }
 0xba7   :  { %3137 = vadd.xlane.f32.xlu1 %v3136_v63  ;;  %v6628_v63 = vld [vmem:[%s7630_s4 + $0x250] sm:$0xff] }
 0xba8   :  { %7774 = vst [vmem:[#allocation19_spill] sm:$0xff] %v6628_v63  ;;  %v3442_v0 = vmul.f32 %v6628_v63, %v2582_v41  ;;  %v6648_v41 = vld [vmem:[%s7630_s4 + $0xd8] sm:$0xff] }
 0xba9   :  { %7777 = vst [vmem:[#allocation22_spill] sm:$0xff] %v6648_v41  ;;  %v6654_v3 = vpop.permute.xlu1 %2538 }
 0xbaa   :  { %v3478_v4 = vsel %vm1871_vm2, %v3442_v0, 0.0  ;;  %v6659_v0 = vld [vmem:[%s7630_s4 + $0x158] sm:$0xff] }
 0xbab   :  { %3308 = vadd.xlane.f32.xlu1 %v3307_v32  ;;  %v6638_v32 = vpop.xlane.xlu0 %2765  ;;  %7779 = vst [vmem:[#allocation24_spill] sm:$0xff] %v6659_v0 }
 0xbac   :  { %7776 = vst [vmem:[#allocation21_spill] sm:$0xff] %v6638_v32  ;;  %v2930_v32 = vmul.f32 %v6648_v41, %v2583_v56 }
 0xbad   :  { %v6663_v53 = vpop.xlane.xlu1 %2936 }
 0xbae   :  { %7780 = vst [vmem:[#allocation25_spill] sm:$0xff] %v6663_v53 }
 0xbaf   :  { %3650 = vadd.xlane.f32.xlu1 %v3649_v58  ;;  %v6636_v58 = vld [vmem:[%s7630_s4 + $0x58] sm:$0xff]  ;;  %v6650_v12 = vpop.xlane.xlu0 %3620 }
 0xbb0   :  { %7775 = vst [vmem:[#allocation20_spill] sm:$0xff] %v6636_v58  ;;  %v2759_v13 = vmul.f32 %v6636_v58, %v2583_v56  ;;  %7778 = vst [vmem:[#allocation23_spill] sm:$0xff] %v6650_v12  ;;  %v3101_v58 = vmul.f32 %v6659_v0, %v2583_v56 }
 0xbb1   :  { %v6679_v0 = vpop.xlane.xlu1 %3107 }
 0xbb2   :  { %v2797_v63 = vsel %vm1871_vm2, %v2759_v13, 0.0  ;;  %v6668_v13 = vld [vmem:[%s7630_s4 + $0x1d8] sm:$0xff]  ;;  %7784 = vst [vmem:[#allocation29_spill] sm:$0xff] %v6679_v0 }
 0xbb3   :  { %7781 = vst [vmem:[#allocation26_spill] sm:$0xff] %v6668_v13  ;;  %v6670_v12 = vpop.xlane.xlu0 %2939  ;;  %v3272_v41 = vmul.f32 %v6668_v13, %v2583_v56  ;;  %v2568_v13 = vmax.f32 %v6154_v26, %v2533_v39  ;;  %v6694_v0 = vld [vmem:[%s7630_s4 + $0x258] sm:$0xff] }
 0xbb4   :  { %7782 = vst [vmem:[#allocation27_spill] sm:$0xff] %v6670_v12  ;;  %7788 = vst [vmem:[#allocation33_spill] sm:$0xff] %v6694_v0 }
 0xbb5   :  { %v3310_v53 = vsel %vm1871_vm2, %v3272_v41, 0.0 }
 0xbc0   :  { %2626 = vrot.lane.b32.xlu1 %v2583_v56, %s4250_s12 }
 0xbc3   :  { %3479 = vadd.xlane.f32.xlu0 %v3478_v4  ;;  %v2968_v4 = vsel %vm1871_vm2, %v2930_v32, 0.0  ;;  %v6677_v32 = vld [vmem:[%s7630_s4 + $0x2d8] sm:$0xff] }
 0xbc4   :  { %7783 = vst [vmem:[#allocation28_spill] sm:$0xff] %v6677_v32  ;;  %v3614_v42 = vmul.f32 %v6677_v32, %v2583_v56  ;;  %v2584_v32 = vmax.f32 %v2568_v13, 0.0  ;;  %v6715_v13 = vld [vmem:[%s7630_s4 + $0xe0] sm:$0xff] }
 0xbc5   :  { %7792 = vst [vmem:[#allocation37_spill] sm:$0xff] %v6715_v13 }
 0xbc6   :  { %v3652_v12 = vsel %vm1871_vm2, %v3614_v42, 0.0  ;;  %v6704_v42 = vld [vmem:[%s7630_s4 + $0x60] sm:$0xff] }
 0xbc7   :  { %2798 = vadd.xlane.f32.xlu0 %v2797_v63  ;;  %v3139_v63 = vsel %vm1871_vm2, %v3101_v58, 0.0  ;;  %v6686_v58 = vpop.xlane.xlu1 %3278  ;;  %7791 = vst [vmem:[#allocation36_spill] sm:$0xff] %v6704_v42  ;;  %v2760_v39 = vmul.f32 %v6704_v42, %v2584_v32 }
 0xbc8   :  { %7786 = vst [vmem:[#allocation31_spill] sm:$0xff] %v6686_v58 }
 0xbcb   :  { %2969 = vadd.xlane.f32.xlu0 %v2968_v4  ;;  %v6681_v4 = vpop.xlane.xlu0 %3110 }
 0xbcc   :  { %7785 = vst [vmem:[#allocation30_spill] sm:$0xff] %v6681_v4  ;;  %v6696_v4 = vpop.xlane.xlu1 %3449 }
 0xbcd   :  { %7789 = vst [vmem:[#allocation34_spill] sm:$0xff] %v6696_v4  ;;  %v2931_v4 = vmul.f32 %v6715_v13, %v2584_v32 }
 0xbcf   :  { %3140 = vadd.xlane.f32.xlu0 %v3139_v63  ;;  %v6688_v63 = vpop.xlane.xlu0 %3281 }
 0xbd0   :  { %7787 = vst [vmem:[#allocation32_spill] sm:$0xff] %v6688_v63 }
 0xbd3   :  { %3311 = vadd.xlane.f32.xlu0 %v3310_v53  ;;  %v6698_v41 = vpop.xlane.xlu0 %3452  ;;  %v3443_v53 = vmul.f32 %v6694_v0, %v2583_v56 }
 0xbd4   :  { %7790 = vst [vmem:[#allocation35_spill] sm:$0xff] %v6698_v41  ;;  %v2800_v41 = vsel %vm1871_vm2, %v2760_v39, 0.0 }
 0xbd5   :  { %v3481_v26 = vsel %vm1871_vm2, %v3443_v53, 0.0  ;;  %v6726_v53 = vld [vmem:[%s7630_s4 + $0x160] sm:$0xff] }
 0xbd6   :  { %7795 = vst [vmem:[#allocation40_spill] sm:$0xff] %v6726_v53  ;;  %v3102_v42 = vmul.f32 %v6726_v53, %v2584_v32 }
 0xbd7   :  { %3653 = vadd.xlane.f32.xlu0 %v3652_v12  ;;  %v6706_v12 = vpop.permute.xlu1 %2606  ;;  %v6710_v63 = vpop.permute.xlu0 %2608 }
 0xbdb   :  { %v6717_v56 = vpop.xlane.xlu1 %2768  ;;  %v6721_v58 = vpop.xlane.xlu0 %2771 }
 0xbdc   :  { %7793 = vst [vmem:[#allocation38_spill] sm:$0xff] %v6717_v56  ;;  %7794 = vst [vmem:[#allocation39_spill] sm:$0xff] %v6721_v58  ;;  %v6733_v56 = vld [vmem:[%s7630_s4 + $0x1e0] sm:$0xff]  ;;  %v3142_v58 = vsel %vm1871_vm2, %v3102_v42, 0.0 }
 0xbdd   :  { %7796 = vst [vmem:[#allocation41_spill] sm:$0xff] %v6733_v56  ;;  %v3273_v13 = vmul.f32 %v6733_v56, %v2584_v32 }
 0xbdf   :  { %v6735_v39 = vpop.xlane.xlu1 %3623  ;;  %v3313_v53 = vsel %vm1871_vm2, %v3273_v13, 0.0  ;;  %v6767_v13 = vld [vmem:[%s7630_s4 + $0x260] sm:$0xff] }
 0xbe0   :  { %7797 = vst [vmem:[#allocation42_spill] sm:$0xff] %v6735_v39  ;;  %7806 = vst [vmem:[#allocation51_spill] sm:$0xff] %v6767_v13 }
 0xbe4   :  { %3482 = vadd.xlane.f32.xlu1 %v3481_v26  ;;  %v2971_v26 = vsel %vm1871_vm2, %v2931_v4, 0.0  ;;  %v6745_v4 = vld [vmem:[%s7630_s4 + $0x2e0] sm:$0xff] }
 0xbe5   :  { %7799 = vst [vmem:[#allocation44_spill] sm:$0xff] %v6745_v4  ;;  %v3615_v39 = vmul.f32 %v6745_v4, %v2584_v32 }
 0xbe8   :  { %2801 = vadd.xlane.f32.xlu1 %v2800_v41  ;;  %v6738_v41 = vpop.xlane.xlu0 %3455 }
 0xbe9   :  { %7798 = vst [vmem:[#allocation43_spill] sm:$0xff] %v6738_v41  ;;  %v3655_v41 = vsel %vm1871_vm2, %v3615_v39, 0.0 }
 0xbec   :  { %2972 = vadd.xlane.f32.xlu1 %v2971_v26  ;;  %v6747_v26 = vpop.xlane.xlu1 %2942  ;;  %v6751_v0 = vpop.xlane.xlu0 %2774 }
 0xbed   :  { %2628 = vrot.lane.b32.xlu0 %v2584_v32, %s4250_s12  ;;  %7800 = vst [vmem:[#allocation45_spill] sm:$0xff] %v6747_v26  ;;  %7801 = vst [vmem:[#allocation46_spill] sm:$0xff] %v6751_v0  ;;  %v2569_v26 = vmax.f32 %v6158_v23, %v6643_v21 }
 0xbf0   :  { %3143 = vadd.xlane.f32.xlu1 %v3142_v58  ;;  %v6754_v42 = vpop.xlane.xlu1 %3113  ;;  %v6756_v58 = vpop.xlane.xlu0 %2945 }
 0xbf1   :  { %7802 = vst [vmem:[#allocation47_spill] sm:$0xff] %v6754_v42  ;;  %7803 = vst [vmem:[#allocation48_spill] sm:$0xff] %v6756_v58  ;;  %v3444_v42 = vmul.f32 %v6767_v13, %v2584_v32  ;;  %v6789_v32 = vld [vmem:[%s7630_s4 + $0xe8] sm:$0xff] }
 0xbf2   :  { %7811 = vst [vmem:[#allocation56_spill] sm:$0xff] %v6789_v32 }
 0xbf3   :  { %v3484_v21 = vsel %vm1871_vm2, %v3444_v42, 0.0  ;;  %v6798_v42 = vld [vmem:[%s7630_s4 + $0x168] sm:$0xff] }
 0xbf4   :  { %3314 = vadd.xlane.f32.xlu1 %v3313_v53  ;;  %v6758_v56 = vpop.xlane.xlu1 %3284  ;;  %v6760_v54 = vpop.xlane.xlu0 %3116  ;;  %7813 = vst [vmem:[#allocation58_spill] sm:$0xff] %v6798_v42 }
 0xbf5   :  { %7804 = vst [vmem:[#allocation49_spill] sm:$0xff] %v6758_v56  ;;  %7805 = vst [vmem:[#allocation50_spill] sm:$0xff] %v6760_v54  ;;  %v6777_v56 = vld [vmem:[%s7630_s4 + $0x68] sm:$0xff] }
 0xbf6   :  { %7809 = vst [vmem:[#allocation54_spill] sm:$0xff] %v6777_v56 }
 0xbf8   :  { %3656 = vadd.xlane.f32.xlu1 %v3655_v41  ;;  %v6769_v53 = vpop.xlane.xlu1 %3626  ;;  %v6771_v39 = vpop.xlane.xlu0 %3287  ;;  %v2585_v41 = vmax.f32 %v2569_v26, 0.0 }
 0xbf9   :  { %7807 = vst [vmem:[#allocation52_spill] sm:$0xff] %v6769_v53  ;;  %7808 = vst [vmem:[#allocation53_spill] sm:$0xff] %v6771_v39 }
 0xbfa   :  { %v2761_v54 = vmul.f32 %v6777_v56, %v2585_v41  ;;  %v2932_v39 = vmul.f32 %v6789_v32, %v2585_v41 }
 0xbfc   :  { %v6780_v23 = vpop.permute.xlu1 %2610  ;;  %v6784_v58 = vpop.xlane.xlu0 %3629  ;;  %v2803_v53 = vsel %vm1871_vm2, %v2761_v54, 0.0 }
 0xbfd   :  { %7810 = vst [vmem:[#allocation55_spill] sm:$0xff] %v6784_v58  ;;  %v3103_v58 = vmul.f32 %v6798_v42, %v2585_v41 }
 0xbff   :  { %v3145_v13 = vsel %vm1871_vm2, %v3103_v58, 0.0 }
 0xc00   :  { %v6791_v26 = vpop.xlane.xlu1 %3458  ;;  %v6800_v0 = vpop.permute.xlu0 %2612 }
 0xc01   :  { %7812 = vst [vmem:[#allocation57_spill] sm:$0xff] %v6791_v26  ;;  %v6807_v26 = vld [vmem:[%s7630_s4 + $0x1e8] sm:$0xff] }
 0xc02   :  { %7814 = vst [vmem:[#allocation59_spill] sm:$0xff] %v6807_v26  ;;  %v3274_v32 = vmul.f32 %v6807_v26, %v2585_v41 }
 0xc04   :  { %v6809_v54 = vpop.xlane.xlu1 %2777  ;;  %v3316_v42 = vsel %vm1871_vm2, %v3274_v32, 0.0 }
 0xc05   :  { %7815 = vst [vmem:[#allocation60_spill] sm:$0xff] %v6809_v54  ;;  %v2570_v54 = vmax.f32 %v6162_v55, %v6622_v37 }
 0xc09   :  { %2630 = vrot.lane.b32.xlu1 %v2585_v41, %s4250_s12 }
 0xc0c   :  { %3485 = vadd.xlane.f32.xlu0 %v3484_v21  ;;  %v2974_v21 = vsel %vm1871_vm2, %v2932_v39, 0.0  ;;  %v6818_v39 = vld [vmem:[%s7630_s4 + $0x2e8] sm:$0xff] }
 0xc0d   :  { %7817 = vst [vmem:[#allocation62_spill] sm:$0xff] %v6818_v39  ;;  %v3616_v56 = vmul.f32 %v6818_v39, %v2585_v41  ;;  %v2586_v39 = vmax.f32 %v2570_v54, 0.0  ;;  %v6855_v54 = vld [vmem:[%s7630_s4 + $0xf0] sm:$0xff] }
 0xc0e   :  { %7827 = vst [vmem:[#allocation72_spill] sm:$0xff] %v6855_v54 }
 0xc10   :  { %2804 = vadd.xlane.f32.xlu0 %v2803_v53  ;;  %v6811_v53 = vpop.xlane.xlu0 %3461 }
 0xc11   :  { %7816 = vst [vmem:[#allocation61_spill] sm:$0xff] %v6811_v53  ;;  %v3658_v53 = vsel %vm1871_vm2, %v3616_v56, 0.0 }
 0xc14   :  { %2975 = vadd.xlane.f32.xlu0 %v2974_v21  ;;  %v6820_v21 = vpop.xlane.xlu1 %2948  ;;  %v6824_v4 = vpop.xlane.xlu0 %2780 }
 0xc15   :  { %7818 = vst [vmem:[#allocation63_spill] sm:$0xff] %v6820_v21  ;;  %7819 = vst [vmem:[#allocation64_spill] sm:$0xff] %v6824_v4  ;;  %v6836_v21 = vld [vmem:[%s7630_s4 + $0x268] sm:$0xff] }
 0xc16   :  { %7822 = vst [vmem:[#allocation67_spill] sm:$0xff] %v6836_v21  ;;  %v3445_v56 = vmul.f32 %v6836_v21, %v2585_v41 }
 0xc18   :  { %3146 = vadd.xlane.f32.xlu0 %v3145_v13  ;;  %v6827_v58 = vpop.xlane.xlu1 %3119  ;;  %v6829_v13 = vpop.xlane.xlu0 %2951 }
 0xc19   :  { %7820 = vst [vmem:[#allocation65_spill] sm:$0xff] %v6827_v58  ;;  %7821 = vst [vmem:[#allocation66_spill] sm:$0xff] %v6829_v13 }
 0xc1c   :  { %3317 = vadd.xlane.f32.xlu0 %v3316_v42  ;;  %v6838_v32 = vpop.xlane.xlu1 %3290  ;;  %v6840_v4 = vpop.xlane.xlu0 %3122  ;;  %v6846_v42 = vld [vmem:[%s7630_s4 + $0x70] sm:$0xff] }
 0xc1d   :  { %7823 = vst [vmem:[#allocation68_spill] sm:$0xff] %v6838_v32  ;;  %7824 = vst [vmem:[#allocation69_spill] sm:$0xff] %v6840_v4  ;;  %v2762_v55 = vmul.f32 %v6846_v42, %v2586_v39  ;;  %v2933_v4 = vmul.f32 %v6855_v54, %v2586_v39 }
 0xc1e   :  { %7825 = vst [vmem:[#allocation70_spill] sm:$0xff] %v6846_v42 }
 0xc1f   :  { %v2806_v41 = vsel %vm1871_vm2, %v2762_v55, 0.0  ;;  %v6875_v55 = vld [vmem:[%s7630_s4 + $0x1f0] sm:$0xff] }
 0xc20   :  { %3659 = vadd.xlane.f32.xlu0 %v3658_v53  ;;  %v3487_v53 = vsel %vm1871_vm2, %v3445_v56, 0.0  ;;  %v6850_v37 = vpop.xlane.xlu1 %3632  ;;  %v6857_v32 = vpop.xlane.xlu0 %3293  ;;  %v6864_v56 = vld [vmem:[%s7630_s4 + $0x170] sm:$0xff]  ;;  %7831 = vst [vmem:[#allocation76_spill] sm:$0xff] %v6875_v55  ;;  %v3275_v54 = vmul.f32 %v6875_v55, %v2586_v39 }
 0xc21   :  { %7826 = vst [vmem:[#allocation71_spill] sm:$0xff] %v6850_v37  ;;  %7828 = vst [vmem:[#allocation73_spill] sm:$0xff] %v6857_v32  ;;  %v2977_v37 = vsel %vm1871_vm2, %v2933_v4, 0.0  ;;  %v3104_v58 = vmul.f32 %v6864_v56, %v2586_v39  ;;  %v6885_v4 = vld [vmem:[%s7630_s4 + $0x2f0] sm:$0xff] }
 0xc22   :  { %7829 = vst [vmem:[#allocation74_spill] sm:$0xff] %v6864_v56  ;;  %v3617_v56 = vmul.f32 %v6885_v4, %v2586_v39 }
 0xc23   :  { %v3148_v32 = vsel %vm1871_vm2, %v3104_v58, 0.0 }
 0xc24   :  { %v6866_v13 = vpop.permute.xlu1 %2614  ;;  %v3661_v58 = vsel %vm1871_vm2, %v3617_v56, 0.0 }
 0xc2d   :  { %3488 = vadd.xlane.f32.xlu1 %v3487_v53  ;;  %v6868_v53 = vpop.xlane.xlu0 %3635 }
 0xc2e   :  { %7830 = vst [vmem:[#allocation75_spill] sm:$0xff] %v6868_v53  ;;  %v3319_v53 = vsel %vm1871_vm2, %v3275_v54, 0.0  ;;  %v2571_v54 = vmax.f32 %v6166_v19, %v6654_v3 }
 0xc30   :  { %v6913_v56 = vmax.f32 %v2571_v54, 0.0 }
 0xc31   :  { %2807 = vadd.xlane.f32.xlu1 %v2806_v41  ;;  %v6878_v41 = vpop.xlane.xlu1 %3464 }
 0xc32   :  { %7832 = vst [vmem:[#allocation77_spill] sm:$0xff] %v6878_v41 }
 0xc35   :  { %2978 = vadd.xlane.f32.xlu1 %v2977_v37  ;;  %v6887_v37 = vpop.permute.xlu0 %2616  ;;  %v6891_v42 = vpop.xlane.xlu1 %2783 }
 0xc36   :  { %2632 = vrot.lane.b32.xlu0 %v2586_v39, %s4250_s12  ;;  %7833 = vst [vmem:[#allocation78_spill] sm:$0xff] %v6891_v42 }
 0xc39   :  { %3149 = vadd.xlane.f32.xlu1 %v3148_v32  ;;  %v6893_v41 = vpop.xlane.xlu0 %3467  ;;  %v6896_v32 = vpop.xlane.xlu1 %2954 }
 0xc3a   :  { %7834 = vst [vmem:[#allocation79_spill] sm:$0xff] %v6893_v41  ;;  %7835 = vst [vmem:[#allocation80_spill] sm:$0xff] %v6896_v32 }
 0xc3d   :  { %3320 = vadd.xlane.f32.xlu1 %v3319_v53  ;;  %v6898_v55 = vpop.xlane.xlu0 %2786  ;;  %v6900_v21 = vpop.xlane.xlu1 %3125  ;;  %v6909_v53 = vld [vmem:[%s7630_s4 + $0x270] sm:$0xff] }
 0xc3e   :  { %7836 = vst [vmem:[#allocation81_spill] sm:$0xff] %v6898_v55  ;;  %7837 = vst [vmem:[#allocation82_spill] sm:$0xff] %v6900_v21  ;;  %v3446_v32 = vmul.f32 %v6909_v53, %v2586_v39  ;;  %v6933_v39 = vld [vmem:[%s7630_s4 + $0xf8] sm:$0xff] }
 0xc3f   :  { %7839 = vst [vmem:[#allocation84_spill] sm:$0xff] %v6909_v53  ;;  %7843 = vst [vmem:[#allocation88_spill] sm:$0xff] %v6933_v39  ;;  %v2934_v21 = vmul.f32 %v6933_v39, %v6913_v56 }
 0xc40   :  { %v3490_v19 = vsel %vm1871_vm2, %v3446_v32, 0.0  ;;  %v6943_v32 = vld [vmem:[%s7630_s4 + $0x178] sm:$0xff] }
 0xc41   :  { %3662 = vadd.xlane.f32.xlu1 %v3661_v58  ;;  %v6902_v26 = vpop.xlane.xlu0 %2957  ;;  %v6911_v41 = vpop.xlane.xlu1 %3296  ;;  %7845 = vst [vmem:[#allocation90_spill] sm:$0xff] %v6943_v32  ;;  %v2980_v55 = vsel %vm1871_vm2, %v2934_v21, 0.0 }
 0xc42   :  { %7838 = vst [vmem:[#allocation83_spill] sm:$0xff] %v6902_v26  ;;  %7840 = vst [vmem:[#allocation85_spill] sm:$0xff] %v6911_v41  ;;  %v6921_v26 = vld [vmem:[%s7630_s4 + $0x78] sm:$0xff] }
 0xc43   :  { %v2763_v3 = vmul.f32 %v6921_v26, %v6913_v56 }
 0xc45   :  { %v6915_v58 = vpop.xlane.xlu0 %3128  ;;  %v6928_v41 = vpop.xlane.xlu1 %3638 }
 0xc46   :  { %7841 = vst [vmem:[#allocation86_spill] sm:$0xff] %v6915_v58  ;;  %7842 = vst [vmem:[#allocation87_spill] sm:$0xff] %v6928_v41  ;;  %v2809_v58 = vsel %vm1871_vm2, %v2763_v3, 0.0  ;;  %v6955_v3 = vld [vmem:[%s7630_s4 + $0x1f8] sm:$0xff] }
 0xc47   :  { %7847 = vst [vmem:[#allocation92_spill] sm:$0xff] %v6955_v3  ;;  %v3276_v53 = vmul.f32 %v6955_v3, %v6913_v56 }
 0xc49   :  { %v6935_v54 = vpop.xlane.xlu0 %3299  ;;  %v6945_v41 = vpop.permute.xlu1 %2618  ;;  %v3322_v21 = vsel %vm1871_vm2, %v3276_v53, 0.0 }
 0xc4a   :  { %7844 = vst [vmem:[#allocation89_spill] sm:$0xff] %v6935_v54  ;;  %v3105_v54 = vmul.f32 %v6943_v32, %v6913_v56 }
 0xc4c   :  { %v3151_v42 = vsel %vm1871_vm2, %v3105_v54, 0.0  ;;  %v2834_v54 = vmul.f32 %v6234_v30, %v6706_v12  ;;  %v3176_v30 = vmul.f32 %v6212_v61, %v6706_v12 }
 0xc4e   :  { %v2852_v53 = vsel %vm1871_vm2, %v2834_v54, 0.0 }
 0xc52   :  { %2634 = vrot.lane.b32.xlu1 %v6913_v56, %s4250_s12 }
 0xc55   :  { %3491 = vadd.xlane.f32.xlu0 %v3490_v19  ;;  %v6947_v19 = vpop.xlane.xlu0 %3641 }
 0xc56   :  { %7846 = vst [vmem:[#allocation91_spill] sm:$0xff] %v6947_v19 }
 0xc59   :  { %2810 = vadd.xlane.f32.xlu0 %v2809_v58  ;;  %v6957_v58 = vpop.xlane.xlu1 %3470  ;;  %v6962_v19 = vpop.permute.xlu0 %2620 }
 0xc5a   :  { %7848 = vst [vmem:[#allocation93_spill] sm:$0xff] %v6957_v58 }
 0xc5d   :  { %2981 = vadd.xlane.f32.xlu0 %v2980_v55  ;;  %v3688_v55 = vmul.f32 %v6197_v10, %v6630_v20  ;;  %v6967_v32 = vpop.xlane.xlu1 %2789  ;;  %v6969_v39 = vpop.xlane.xlu0 %3473  ;;  %v3005_v10 = vmul.f32 %v6204_v46, %v6706_v12  ;;  %v3194_v46 = vsel %vm1871_vm2, %v3176_v30, 0.0 }
 0xc5e   :  { %7849 = vst [vmem:[#allocation94_spill] sm:$0xff] %v6969_v39 }
 0xc5f   :  { %v3704_v58 = vsel %vm1871_vm2, %v3688_v55, 0.0  ;;  %v3023_v55 = vsel %vm1871_vm2, %v3005_v10, 0.0  ;;  %v2833_v10 = vmul.f32 %v6190_v7, %v6630_v20 }
 0xc61   :  { %3152 = vadd.xlane.f32.xlu0 %v3151_v42  ;;  %v6974_v3 = vpop.xlane.xlu1 %2960  ;;  %v6976_v42 = vpop.xlane.xlu0 %2792  ;;  %v2849_v30 = vsel %vm1871_vm2, %v2833_v10, 0.0 }
 0xc62   :  { %7850 = vst [vmem:[#allocation95_spill] sm:$0xff] %v6974_v3 }
 0xc65   :  { %3323 = vadd.xlane.f32.xlu0 %v3322_v21  ;;  %v6984_v21 = vld [vmem:[%s7630_s4 + $0x278] sm:$0xff]  ;;  %v6993_v39 = vpop.xlane.xlu0 %2963 }
 0xc66   :  { %v3447_v54 = vmul.f32 %v6984_v21, %v6913_v56  ;;  %7852 = vst [vmem:[#allocation97_spill] sm:$0xff] %v6993_v39  ;;  %v3518_v39 = vmul.f32 %v6226_v17, %v6706_v12 }
 0xc68   :  { %v3493_v3 = vsel %vm1871_vm2, %v3447_v54, 0.0  ;;  %v3536_v7 = vsel %vm1871_vm2, %v3518_v39, 0.0  ;;  %v2836_v39 = vmul.f32 %v6280_v14, %v6780_v23 }
 0xc69   :  { %3705 = vadd.xlane.f32.xlu0 %v3704_v58  ;;  %v6989_v58 = vpop.xlane.xlu1 %3131 }
 0xc6a   :  { %7851 = vst [vmem:[#allocation96_spill] sm:$0xff] %v6989_v58 }
 0xc6d   :  { %2853 = vadd.xlane.f32.xlu0 %v2852_v53  ;;  %v3347_v53 = vmul.f32 %v6219_v6, %v6706_v12  ;;  %v7001_v61 = vpop.xlane.xlu1 %3302  ;;  %v4211_v6 = vld [vmem:[%s7630_s4 + $0x80] sm:$0xff] }
 0xc6e   :  { %v3004_v54 = vmul.f32 %v4211_v6, %v6630_v20  ;;  %v4213_v6 = vld [vmem:[%s7630_s4 + $0x180] sm:$0xff] }
 0xc6f   :  { %v3365_v58 = vsel %vm1871_vm2, %v3347_v53, 0.0 }
 0xc70   :  { %v3020_v17 = vsel %vm1871_vm2, %v3004_v54, 0.0  ;;  %v3346_v54 = vmul.f32 %v4213_v6, %v6630_v20 }
 0xc71   :  { %3024 = vadd.xlane.f32.xlu0 %v3023_v55  ;;  %v7003_v55 = vpop.xlane.xlu0 %3134 }
 0xc72   :  { %v3362_v14 = vsel %vm1871_vm2, %v3346_v54, 0.0  ;;  %v3689_v54 = vmul.f32 %v6241_v45, %v6706_v12  ;;  %v3520_v12 = vmul.f32 %v6318_v8, %v6780_v23 }
 0xc75   :  { %3195 = vadd.xlane.f32.xlu0 %v3194_v46  ;;  %v7016_v46 = vpop.xlane.xlu1 %3644  ;;  %v7023_v10 = vpop.xlane.xlu0 %3305 }
 0xc76   :  { %3494 = vadd.xlane.f32.xlu1 %v3493_v3  ;;  %v3690_v3 = vmul.f32 %v6261_v18, %v6710_v63  ;;  %7853 = vst [vmem:[#allocation98_spill] sm:$0xff] %v7016_v46 }
 0xc79   :  { %3366 = vadd.xlane.f32.xlu0 %v3365_v58  ;;  %v4212_v58 = vld [vmem:[%s7630_s4 + $0x100] sm:$0xff] }
 0xc7a   :  { %2850 = vadd.xlane.f32.xlu1 %v2849_v30  ;;  %v3175_v53 = vmul.f32 %v4212_v58, %v6630_v20  ;;  %v3710_v30 = vsel %vm1871_vm2, %v3690_v3, 0.0  ;;  %v7035_v58 = vpop.xlane.xlu0 %3647  ;;  %v3007_v3 = vmul.f32 %v6288_v49, %v6780_v23 }
 0xc7b   :  { %7854 = vst [vmem:[#allocation99_spill] sm:$0xff] %v7035_v58 }
 0xc7c   :  { %v3191_v18 = vsel %vm1871_vm2, %v3175_v53, 0.0  ;;  %v4214_v53 = vld [vmem:[%s7630_s4 + $0x200] sm:$0xff]  ;;  %v3029_v6 = vsel %vm1871_vm2, %v3007_v3, 0.0  ;;  %v3707_v3 = vsel %vm1871_vm2, %v3689_v54, 0.0  ;;  %v4216_v54 = vld [vmem:[%s7630_s4 + $0x110] sm:$0xff] }
 0xc7d   :  { %3537 = vadd.xlane.f32.xlu0 %v3536_v7  ;;  %v7033_v7 = vpop.permute.xlu1 %2622 }
 0xc7e   :  { %3021 = vadd.xlane.f32.xlu1 %v3020_v17  ;;  %v2858_v17 = vsel %vm1871_vm2, %v2836_v39, 0.0  ;;  %v3178_v39 = vmul.f32 %v6295_v43, %v6780_v23  ;;  %v2835_v43 = vmul.f32 %v6269_v51, %v6710_v63 }
 0xc80   :  { %v3200_v58 = vsel %vm1871_vm2, %v3178_v39, 0.0  ;;  %v3542_v39 = vsel %vm1871_vm2, %v3520_v12, 0.0  ;;  %v4217_v12 = vld [vmem:[%s7630_s4 + $0x190] sm:$0xff] }
 0xc81   :  { %3711 = vadd.xlane.f32.xlu0 %v3710_v30  ;;  %v3517_v30 = vmul.f32 %v4214_v53, %v6630_v20  ;;  %v3349_v20 = vmul.f32 %v6302_v44, %v6780_v23  ;;  %v4215_v44 = vld [vmem:[%s7630_s4 + $0x90] sm:$0xff] }
 0xc82   :  { %3192 = vadd.xlane.f32.xlu1 %v3191_v18  ;;  %v7045_v18 = vpop.xlane.xlu1 %3476 }
 0xc83   :  { %v3533_v49 = vsel %vm1871_vm2, %v3517_v30, 0.0  ;;  %v3371_v45 = vsel %vm1871_vm2, %v3349_v20, 0.0  ;;  %v2855_v30 = vsel %vm1871_vm2, %v2835_v43, 0.0  ;;  %v3177_v20 = vmul.f32 %v4216_v54, %v6710_v63 }
 0xc84   :  { %v2838_v43 = vmul.f32 %v6368_v36, %v6866_v13 }
 0xc85   :  { %2859 = vadd.xlane.f32.xlu0 %v2858_v17  ;;  %v7053_v17 = vpop.permute.xlu0 %2624 }
 0xc86   :  { %3363 = vadd.xlane.f32.xlu1 %v3362_v14  ;;  %v7058_v14 = vpop.xlane.xlu1 %2795 }
 0xc89   :  { %3030 = vadd.xlane.f32.xlu0 %v3029_v6  ;;  %v7063_v53 = vpop.xlane.xlu0 %3479 }
 0xc8a   :  { %3534 = vadd.xlane.f32.xlu1 %v3533_v49  ;;  %v7073_v6 = vpop.xlane.xlu1 %2966  ;;  %v3692_v49 = vmul.f32 %v6353_v15, %v6800_v0  ;;  %v3197_v15 = vsel %vm1871_vm2, %v3177_v20, 0.0 }
 0xc8d   :  { %3201 = vadd.xlane.f32.xlu0 %v3200_v58  ;;  %v3006_v58 = vmul.f32 %v4215_v44, %v6710_v63  ;;  %v7075_v51 = vpop.xlane.xlu0 %2798 }
 0xc8e   :  { %3708 = vadd.xlane.f32.xlu1 %v3707_v3  ;;  %v3716_v3 = vsel %vm1871_vm2, %v3692_v49, 0.0  ;;  %v4218_v49 = vld [vmem:[%s7630_s4 + $0x210] sm:$0xff] }
 0xc8f   :  { %v3026_v8 = vsel %vm1871_vm2, %v3006_v58, 0.0  ;;  %v2864_v58 = vsel %vm1871_vm2, %v2838_v43, 0.0  ;;  %v3180_v43 = vmul.f32 %v6383_v24, %v6866_v13  ;;  %v2837_v24 = vmul.f32 %v6324_v5, %v6800_v0 }
 0xc91   :  { %3372 = vadd.xlane.f32.xlu0 %v3371_v45  ;;  %v7088_v45 = vpop.xlane.xlu1 %3137  ;;  %v7095_v44 = vpop.xlane.xlu0 %2969 }
 0xc92   :  { %2856 = vadd.xlane.f32.xlu1 %v2855_v30  ;;  %v3348_v30 = vmul.f32 %v4217_v12, %v6710_v63  ;;  %v3206_v12 = vsel %vm1871_vm2, %v3180_v43, 0.0 }
 0xc94   :  { %v3368_v36 = vsel %vm1871_vm2, %v3348_v30, 0.0 }
 0xc95   :  { %3543 = vadd.xlane.f32.xlu0 %v3542_v39  ;;  %v3009_v39 = vmul.f32 %v6376_v52, %v6866_v13  ;;  %v7105_v54 = vpop.xlane.xlu1 %3308  ;;  %v7107_v20 = vpop.xlane.xlu0 %3140 }
 0xc96   :  { %3027 = vadd.xlane.f32.xlu1 %v3026_v8  ;;  %v3519_v8 = vmul.f32 %v4218_v49, %v6710_v63  ;;  %v3351_v63 = vmul.f32 %v6390_v47, %v6866_v13  ;;  %v3008_v47 = vmul.f32 %v6331_v62, %v6800_v0 }
 0xc98   :  { %v3539_v52 = vsel %vm1871_vm2, %v3519_v8, 0.0  ;;  %v3032_v43 = vsel %vm1871_vm2, %v3008_v47, 0.0 }
 0xc99   :  { %3717 = vadd.xlane.f32.xlu0 %v3716_v3  ;;  %v3035_v3 = vsel %vm1871_vm2, %v3009_v39, 0.0  ;;  %v7118_v30 = vpop.xlane.xlu1 %3650  ;;  %v7123_v39 = vpop.xlane.xlu0 %3311 }
 0xc9a   :  { %3198 = vadd.xlane.f32.xlu1 %v3197_v15  ;;  %v3691_v15 = vmul.f32 %v6309_v60, %v6780_v23  ;;  %7855 = vst [vmem:[#allocation100_spill] sm:$0xff] %v7118_v30  ;;  %v3522_v60 = vmul.f32 %v6406_v40, %v6866_v13  ;;  %v2861_v23 = vsel %vm1871_vm2, %v2837_v24, 0.0  ;;  %v3179_v40 = vmul.f32 %v6338_v50, %v6800_v0 }
 0xc9b   :  { %v3011_v50 = vmul.f32 %v6464_v34, %v6945_v41  ;;  %v3693_v34 = vmul.f32 %v6397_v31, %v6866_v13  ;;  %v3524_v31 = vmul.f32 %v6494_v27, %v6945_v41  ;;  %v3181_v27 = vmul.f32 %v6426_v2, %v6887_v37 }
 0xc9c   :  { %v3548_v5 = vsel %vm1871_vm2, %v3522_v60, 0.0  ;;  %v3013_v2 = vmul.f32 %v6552_v38, %v7033_v7  ;;  %v7861_v38 = vld [vmem:[#allocation5_spill] sm:$0xff] }
 0xc9d   :  { %2865 = vadd.xlane.f32.xlu0 %v2864_v58  ;;  %v3713_v58 = vsel %vm1871_vm2, %v3691_v15, 0.0  ;;  %v7131_v49 = vpop.permute.xlu1 %2626  ;;  %v7133_v8 = vpop.xlane.xlu0 %3653  ;;  %v2840_v15 = vmul.f32 %v6456_v28, %v6945_v41  ;;  %v3521_v28 = vmul.f32 %v6362_v57, %v6800_v0 }
 0xc9e   :  { %3369 = vadd.xlane.f32.xlu1 %v3368_v36  ;;  %v3377_v36 = vsel %vm1871_vm2, %v3351_v63, 0.0  ;;  %7856 = vst [vmem:[#allocation101_spill] sm:$0xff] %v7133_v8 }
 0xc9f   :  { %v3545_v47 = vsel %vm1871_vm2, %v3521_v28, 0.0  ;;  %v3209_v28 = vsel %vm1871_vm2, %v3181_v27, 0.0 }
 0xca1   :  { %3036 = vadd.xlane.f32.xlu0 %v3035_v3  ;;  %v3694_v3 = vmul.f32 %v6441_v48, %v6887_v37  ;;  %v3350_v48 = vmul.f32 %v6345_v33, %v6800_v0  ;;  %v7149_v63 = vpop.permute.xlu0 %2628  ;;  %v3041_v33 = vsel %vm1871_vm2, %v3011_v50, 0.0  ;;  %v3353_v0 = vmul.f32 %v6478_v35, %v6945_v41 }
 0xca2   :  { %3540 = vadd.xlane.f32.xlu1 %v3539_v52  ;;  %v7141_v52 = vpop.xlane.xlu1 %3482  ;;  %v3010_v35 = vmul.f32 %v6419_v25, %v6887_v37 }
 0xca3   :  { %7857 = vst [vmem:[#allocation102_spill] sm:$0xff] %v7141_v52  ;;  %v3722_v62 = vsel %vm1871_vm2, %v3694_v3, 0.0 }
 0xca5   :  { %3207 = vadd.xlane.f32.xlu0 %v3206_v12  ;;  %v3203_v12 = vsel %vm1871_vm2, %v3179_v40, 0.0  ;;  %v7159_v60 = vpop.xlane.xlu0 %3485  ;;  %v3383_v40 = vsel %vm1871_vm2, %v3353_v0, 0.0 }
 0xca6   :  { %3714 = vadd.xlane.f32.xlu1 %v3713_v58  ;;  %v2870_v58 = vsel %vm1871_vm2, %v2840_v15, 0.0  ;;  %v7154_v24 = vpop.xlane.xlu1 %2801  ;;  %7858 = vst [vmem:[#allocation103_spill] sm:$0xff] %v7159_v60  ;;  %v7931_v60 = vld [vmem:[#allocation30_spill] sm:$0xff] }
 0xca9   :  { %3378 = vadd.xlane.f32.xlu0 %v3377_v36  ;;  %v3374_v36 = vsel %vm1871_vm2, %v3350_v48, 0.0  ;;  %v7169_v3 = vpop.xlane.xlu0 %2804  ;;  %v3038_v48 = vsel %vm1871_vm2, %v3010_v35, 0.0 }
 0xcaa   :  { %2862 = vadd.xlane.f32.xlu1 %v2861_v23  ;;  %v3182_v23 = vmul.f32 %v6471_v11, %v6945_v41  ;;  %v2839_v11 = vmul.f32 %v6412_v29, %v6887_v37  ;;  %v3696_v29 = vmul.f32 %v6529_v59, %v6962_v19  ;;  %v3352_v59 = vmul.f32 %v6433_v22, %v6887_v37 }
 0xcab   :  { %v3184_v22 = vmul.f32 %v6559_v1, %v7033_v7  ;;  %v7864_v1 = vld [vmem:[#allocation6_spill] sm:$0xff] }
 0xcac   :  { %v3212_v57 = vsel %vm1871_vm2, %v3182_v23, 0.0  ;;  %v3728_v25 = vsel %vm1871_vm2, %v3696_v29, 0.0  ;;  %v2841_v35 = vmul.f32 %v7864_v1, %v6962_v19  ;;  %v7866_v29 = vld [vmem:[#allocation13_spill] sm:$0xff] }
 0xcad   :  { %3549 = vadd.xlane.f32.xlu0 %v3548_v5  ;;  %v7167_v5 = vpop.xlane.xlu1 %2972  ;;  %v7185_v15 = vpop.xlane.xlu0 %2975 }
 0xcae   :  { %3033 = vadd.xlane.f32.xlu1 %v3032_v43  ;;  %v3719_v43 = vsel %vm1871_vm2, %v3693_v34, 0.0  ;;  %v2873_v27 = vsel %vm1871_vm2, %v2841_v35, 0.0 }
 0xcb1   :  { %3723 = vadd.xlane.f32.xlu0 %v3722_v62  ;;  %v7180_v13 = vpop.xlane.xlu1 %3143  ;;  %v2867_v62 = vsel %vm1871_vm2, %v2839_v11, 0.0  ;;  %v7195_v50 = vpop.xlane.xlu0 %3146 }
 0xcb2   :  { %3204 = vadd.xlane.f32.xlu1 %v3203_v12  ;;  %v3554_v12 = vsel %vm1871_vm2, %v3524_v31, 0.0 }
 0xcb5   :  { %2871 = vadd.xlane.f32.xlu0 %v2870_v58  ;;  %v7193_v58 = vpop.xlane.xlu1 %3314  ;;  %v7211_v34 = vpop.xlane.xlu0 %3317 }
 0xcb6   :  { %3375 = vadd.xlane.f32.xlu1 %v3374_v36  ;;  %v2842_v36 = vmul.f32 %v6544_v16, %v7033_v7  ;;  %v3523_v16 = vmul.f32 %v6450_v9, %v6887_v37  ;;  %7860 = vst [vmem:[#allocation105_spill] sm:$0xff] %v7211_v34  ;;  %v3218_v9 = vsel %vm1871_vm2, %v3184_v22, 0.0  ;;  %v7863_v37 = vld [vmem:[#allocation11_spill] sm:$0xff]  ;;  %v7933_v34 = vld [vmem:[#allocation60_spill] sm:$0xff] }
 0xcb7   :  { %v3355_v31 = vmul.f32 %v7863_v37, %v7033_v7 }
 0xcb8   :  { %v3551_v0 = vsel %vm1871_vm2, %v3523_v16, 0.0 }
 0xcb9   :  { %3042 = vadd.xlane.f32.xlu0 %v3041_v33  ;;  %v2876_v33 = vsel %vm1871_vm2, %v2842_v36, 0.0  ;;  %v7206_v23 = vpop.xlane.xlu1 %3656 }
 0xcba   :  { %3546 = vadd.xlane.f32.xlu1 %v3545_v47  ;;  %7859 = vst [vmem:[#allocation104_spill] sm:$0xff] %v7206_v23  ;;  %v3380_v47 = vsel %vm1871_vm2, %v3352_v59, 0.0 }
 0xcbd   :  { %3213 = vadd.xlane.f32.xlu0 %v3212_v57  ;;  %v3047_v57 = vsel %vm1871_vm2, %v3013_v2, 0.0  ;;  %v7219_v11 = vpop.permute.xlu1 %2630 }
 0xcbe   :  { %3720 = vadd.xlane.f32.xlu1 %v3719_v43  ;;  %v3695_v43 = vmul.f32 %v7861_v38, %v6945_v41  ;;  %v3389_v41 = vsel %vm1871_vm2, %v3355_v31, 0.0  ;;  %v7872_v31 = vld [vmem:[#allocation9_spill] sm:$0xff] }
 0xcc1   :  { %3384 = vadd.xlane.f32.xlu0 %v3383_v40  ;;  %v7221_v40 = vpop.xlane.xlu0 %3659 }
 0xcc2   :  { %2868 = vadd.xlane.f32.xlu1 %v2867_v62  ;;  %7862 = vst [vmem:[#allocation5_spill] sm:$0xff] %v7221_v40  ;;  %v3725_v62 = vsel %vm1871_vm2, %v3695_v43, 0.0  ;;  %v7871_v43 = vld [vmem:[#allocation20_spill] sm:$0xff] }
 0xcc5   :  { %3555 = vadd.xlane.f32.xlu0 %v3554_v12  ;;  %v7229_v12 = vpop.xlane.xlu1 %3488 }
 0xcc6   :  { %3039 = vadd.xlane.f32.xlu1 %v3038_v48  ;;  %7865 = vst [vmem:[#allocation11_spill] sm:$0xff] %v7229_v12  ;;  %v3526_v48 = vmul.f32 %v7866_v29, %v7033_v7  ;;  %v7873_v29 = vld [vmem:[#allocation22_spill] sm:$0xff] }
 0xcc8   :  { %v3560_v59 = vsel %vm1871_vm2, %v3526_v48, 0.0  ;;  %v3015_v48 = vmul.f32 %v7873_v29, %v7131_v49 }
 0xcc9   :  { %3729 = vadd.xlane.f32.xlu0 %v3728_v25  ;;  %v7867_v25 = vld [vmem:[#allocation7_spill] sm:$0xff] }
 0xcca   :  { %3210 = vadd.xlane.f32.xlu1 %v3209_v28  ;;  %v3012_v36 = vmul.f32 %v7867_v25, %v6962_v19  ;;  %v7237_v28 = vpop.permute.xlu0 %2632  ;;  %v7874_v25 = vld [vmem:[#allocation10_spill] sm:$0xff] }
 0xccc   :  { %v3044_v16 = vsel %vm1871_vm2, %v3012_v36, 0.0  ;;  %v3525_v36 = vmul.f32 %v7874_v25, %v6962_v19  ;;  %v7883_v25 = vld [vmem:[#allocation33_spill] sm:$0xff] }
 0xccd   :  { %2877 = vadd.xlane.f32.xlu0 %v2876_v33  ;;  %v7868_v33 = vld [vmem:[#allocation18_spill] sm:$0xff] }
 0xcce   :  { %3381 = vadd.xlane.f32.xlu1 %v3380_v47  ;;  %v3698_v2 = vmul.f32 %v7868_v33, %v7053_v17  ;;  %v7242_v47 = vpop.xlane.xlu1 %2807  ;;  %v3053_v33 = vsel %vm1871_vm2, %v3015_v48, 0.0 }
 0xcd0   :  { %v3734_v38 = vsel %vm1871_vm2, %v3698_v2, 0.0  ;;  %v7876_v2 = vld [vmem:[#allocation24_spill] sm:$0xff] }
 0xcd1   :  { %3048 = vadd.xlane.f32.xlu0 %v3047_v57  ;;  %v7869_v57 = vld [vmem:[#allocation8_spill] sm:$0xff] }
 0xcd2   :  { %3552 = vadd.xlane.f32.xlu1 %v3551_v0  ;;  %v3183_v22 = vmul.f32 %v7869_v57, %v6962_v19  ;;  %v7257_v35 = vpop.xlane.xlu1 %2978 }
 0xcd4   :  { %v3215_v37 = vsel %vm1871_vm2, %v3183_v22, 0.0  ;;  %v3557_v22 = vsel %vm1871_vm2, %v3525_v36, 0.0  ;;  %v3528_v36 = vmul.f32 %v7883_v25, %v7131_v49  ;;  %v7888_v25 = vld [vmem:[#allocation54_spill] sm:$0xff] }
 0xcd5   :  { %3219 = vadd.xlane.f32.xlu0 %v3218_v9  ;;  %v2844_v9 = vmul.f32 %v7871_v43, %v7131_v49 }
 0xcd6   :  { %3726 = vadd.xlane.f32.xlu1 %v3725_v62  ;;  %v3354_v62 = vmul.f32 %v7872_v31, %v6962_v19  ;;  %v7270_v57 = vpop.xlane.xlu1 %3149 }
 0xcd9   :  { %3390 = vadd.xlane.f32.xlu0 %v3389_v41  ;;  %v2882_v41 = vsel %vm1871_vm2, %v2844_v9, 0.0 }
 0xcda   :  { %2874 = vadd.xlane.f32.xlu1 %v2873_v27  ;;  %v3386_v27 = vsel %vm1871_vm2, %v3354_v62, 0.0 }
 0xcdd   :  { %3561 = vadd.xlane.f32.xlu0 %v3560_v59 }
 0xcde   :  { %v7247_v0 = vpop.xlane.xlu0 %3491  ;;  %3045 = vadd.xlane.f32.xlu1 %v3044_v16  ;;  %v3186_v16 = vmul.f32 %v7876_v2, %v7131_v49  ;;  %v7884_v2 = vld [vmem:[#allocation15_spill] sm:$0xff] }
 0xcdf   :  { %7870 = vst [vmem:[#allocation6_spill] sm:$0xff] %v7247_v0 }
 0xce0   :  { %v3224_v19 = vsel %vm1871_vm2, %v3186_v16, 0.0  ;;  %v3014_v16 = vmul.f32 %v7884_v2, %v7053_v17  ;;  %v7889_v2 = vld [vmem:[#allocation17_spill] sm:$0xff] }
 0xce1   :  { %3735 = vadd.xlane.f32.xlu0 %v3734_v38  ;;  %v7877_v38 = vld [vmem:[#allocation12_spill] sm:$0xff] }
 0xce2   :  { %v7255_v1 = vpop.xlane.xlu0 %2810  ;;  %3216 = vadd.xlane.f32.xlu1 %v3215_v37  ;;  %v3697_v43 = vmul.f32 %v7877_v38, %v7033_v7  ;;  %v7879_v37 = vld [vmem:[#allocation26_spill] sm:$0xff]  ;;  %v3566_v38 = vsel %vm1871_vm2, %v3528_v36, 0.0 }
 0xce3   :  { %v3357_v31 = vmul.f32 %v7879_v37, %v7131_v49 }
 0xce4   :  { %v3731_v62 = vsel %vm1871_vm2, %v3697_v43, 0.0  ;;  %v7885_v43 = vld [vmem:[#allocation44_spill] sm:$0xff] }
 0xce5   :  { %2883 = vadd.xlane.f32.xlu0 %v2882_v41  ;;  %v7880_v41 = vld [vmem:[#allocation14_spill] sm:$0xff]  ;;  %v3395_v7 = vsel %vm1871_vm2, %v3357_v31, 0.0  ;;  %v3050_v31 = vsel %vm1871_vm2, %v3014_v16, 0.0 }
 0xce6   :  { %v7265_v59 = vpop.xlane.xlu0 %2981  ;;  %3387 = vadd.xlane.f32.xlu1 %v3386_v27  ;;  %v2843_v29 = vmul.f32 %v7880_v41, %v7053_v17  ;;  %v7285_v27 = vpop.xlane.xlu1 %3320 }
 0xce7   :  { %7875 = vst [vmem:[#allocation13_spill] sm:$0xff] %v7265_v59  ;;  %7882 = vst [vmem:[#allocation8_spill] sm:$0xff] %v7285_v27  ;;  %v7950_v59 = vld [vmem:[#allocation35_spill] sm:$0xff] }
 0xce9   :  { %3054 = vadd.xlane.f32.xlu0 %v3053_v33  ;;  %v2879_v33 = vsel %vm1871_vm2, %v2843_v29, 0.0 }
 0xcea   :  { %v7275_v9 = vpop.xlane.xlu0 %3152  ;;  %3558 = vadd.xlane.f32.xlu1 %v3557_v22  ;;  %v7298_v37 = vpop.xlane.xlu1 %3662 }
 0xceb   :  { %7878 = vst [vmem:[#allocation7_spill] sm:$0xff] %v7275_v9  ;;  %7886 = vst [vmem:[#allocation20_spill] sm:$0xff] %v7298_v37 }
 0xced   :  { %3225 = vadd.xlane.f32.xlu0 %v3224_v19  ;;  %v3700_v19 = vmul.f32 %v7885_v43, %v7149_v63  ;;  %v3356_v43 = vmul.f32 %v7889_v2, %v7053_v17 }
 0xcee   :  { %v7283_v48 = vpop.xlane.xlu0 %3323  ;;  %3732 = vadd.xlane.f32.xlu1 %v3731_v62  ;;  %v7887_v62 = vld [vmem:[#allocation16_spill] sm:$0xff]  ;;  %v7313_v16 = vpop.permute.xlu1 %2634 }
 0xcef   :  { %7881 = vst [vmem:[#allocation18_spill] sm:$0xff] %v7283_v48  ;;  %v3185_v41 = vmul.f32 %v7887_v62, %v7053_v17 }
 0xcf1   :  { %3396 = vadd.xlane.f32.xlu0 %v3395_v7  ;;  %v3740_v7 = vsel %vm1871_vm2, %v3700_v19, 0.0  ;;  %v3221_v36 = vsel %vm1871_vm2, %v3185_v41, 0.0  ;;  %v3392_v19 = vsel %vm1871_vm2, %v3356_v43, 0.0 }
 0xcf2   :  { %v7293_v22 = vpop.xlane.xlu0 %3705  ;;  %2880 = vadd.xlane.f32.xlu1 %v2879_v33  ;;  %v2846_v33 = vmul.f32 %v7888_v25, %v7219_v11 }
 0xcf4   :  { %v2888_v62 = vsel %vm1871_vm2, %v2846_v33, 0.0 }
 0xcf5   :  { %3567 = vadd.xlane.f32.xlu0 %v3566_v38 }
 0xcf6   :  { %v7303_v29 = vpop.xlane.xlu0 %2853  ;;  %3051 = vadd.xlane.f32.xlu1 %v3050_v31  ;;  %v7890_v31 = vld [vmem:[#allocation56_spill] sm:$0xff] }
 0xcf7   :  { %v3017_v37 = vmul.f32 %v7890_v31, %v7219_v11  ;;  %v7894_v31 = vld [vmem:[#allocation28_spill] sm:$0xff] }
 0xcf9   :  { %3741 = vadd.xlane.f32.xlu0 %v3740_v7  ;;  %v7891_v7 = vld [vmem:[#allocation19_spill] sm:$0xff]  ;;  %v3059_v2 = vsel %vm1871_vm2, %v3017_v37, 0.0 }
 0xcfa   :  { %v7311_v38 = vpop.xlane.xlu0 %3024  ;;  %3222 = vadd.xlane.f32.xlu1 %v3221_v36  ;;  %v3527_v25 = vmul.f32 %v7891_v7, %v7053_v17  ;;  %v7893_v36 = vld [vmem:[#allocation58_spill] sm:$0xff] }
 0xcfb   :  { %v3188_v23 = vmul.f32 %v7893_v36, %v7219_v11 }
 0xcfc   :  { %v3563_v33 = vsel %vm1871_vm2, %v3527_v25, 0.0 }
 0xcfd   :  { %2889 = vadd.xlane.f32.xlu0 %v2888_v62  ;;  %v3699_v62 = vmul.f32 %v7894_v31, %v7131_v49  ;;  %v3230_v17 = vsel %vm1871_vm2, %v3188_v23, 0.0  ;;  %v7897_v49 = vld [vmem:[#allocation67_spill] sm:$0xff]  ;;  %v7898_v31 = vld [vmem:[#allocation37_spill] sm:$0xff] }
 0xcfe   :  { %v3196_v41 = vpop.xlane.xlu0 %3195  ;;  %3393 = vadd.xlane.f32.xlu1 %v3392_v19  ;;  %v7895_v19 = vld [vmem:[#allocation59_spill] sm:$0xff] }
 0xcff   :  { %v7321_v40 = vpop.xlane.xlu1 %3494  ;;  %v3359_v7 = vmul.f32 %v7895_v19, %v7219_v11  ;;  %v3737_v37 = vsel %vm1871_vm2, %v3699_v62, 0.0  ;;  %v3016_v19 = vmul.f32 %v7898_v31, %v7149_v63 }
 0xd00   :  { %7892 = vst [vmem:[#allocation9_spill] sm:$0xff] %v7321_v40  ;;  %v7896_v40 = vld [vmem:[#allocation36_spill] sm:$0xff] }
 0xd01   :  { %3060 = vadd.xlane.f32.xlu0 %v3059_v2  ;;  %v2845_v36 = vmul.f32 %v7896_v40, %v7149_v63  ;;  %v3401_v0 = vsel %vm1871_vm2, %v3359_v7, 0.0  ;;  %v3056_v7 = vsel %vm1871_vm2, %v3016_v19, 0.0 }
 0xd02   :  { %v3367_v8 = vpop.xlane.xlu0 %3366  ;;  %3564 = vadd.xlane.f32.xlu1 %v3563_v33  ;;  %v3530_v33 = vmul.f32 %v7897_v49, %v7219_v11  ;;  %v7899_v49 = vld [vmem:[#allocation40_spill] sm:$0xff] }
 0xd03   :  { %v2851_v43 = vpop.xlane.xlu1 %2850  ;;  %v2885_v23 = vsel %vm1871_vm2, %v2845_v36, 0.0 }
 0xd04   :  { %v3572_v40 = vsel %vm1871_vm2, %v3530_v33, 0.0 }
 0xd05   :  { %3231 = vadd.xlane.f32.xlu0 %v3230_v17 }
 0xd06   :  { %v3538_v2 = vpop.xlane.xlu0 %3537  ;;  %3738 = vadd.xlane.f32.xlu1 %v3737_v37  ;;  %v3702_v37 = vmul.f32 %v6885_v4, %v7237_v28  ;;  %v7900_v4 = vld [vmem:[#allocation41_spill] sm:$0xff] }
 0xd07   :  { %v3022_v25 = vpop.xlane.xlu1 %3021 }
 0xd08   :  { %v3746_v31 = vsel %vm1871_vm2, %v3702_v37, 0.0 }
 0xd09   :  { %3402 = vadd.xlane.f32.xlu0 %v3401_v0  ;;  %v3187_v0 = vmul.f32 %v7899_v49, %v7149_v63 }
 0xd0a   :  { %v3712_v17 = vpop.xlane.xlu0 %3711  ;;  %2886 = vadd.xlane.f32.xlu1 %v2885_v23  ;;  %v3358_v23 = vmul.f32 %v7900_v4, %v7149_v63 }
 0xd0b   :  { %v3193_v62 = vpop.xlane.xlu1 %3192  ;;  %v3227_v33 = vsel %vm1871_vm2, %v3187_v0, 0.0 }
 0xd0c   :  { %v3239_v30 = vadd.f32 %v3196_v41, %v3193_v62  ;;  %v2848_v41 = vmul.f32 %v6921_v26, %v7313_v16  ;;  %v3398_v37 = vsel %vm1871_vm2, %v3358_v23, 0.0  ;;  %v7902_v26 = vld [vmem:[#allocation51_spill] sm:$0xff]  ;;  %v2897_v23 = vadd.f32 %v7303_v29, %v2851_v43 }
 0xd0d   :  { %3573 = vadd.xlane.f32.xlu0 %v3572_v40 }
 0xd0e   :  { %v2860_v48 = vpop.xlane.xlu0 %2859  ;;  %3057 = vadd.xlane.f32.xlu1 %v3056_v7  ;;  %v2894_v49 = vsel %vm1871_vm2, %v2848_v41, 0.0  ;;  %v7901_v7 = vld [vmem:[#allocation88_spill] sm:$0xff] }
 0xd0f   :  { %v3364_v36 = vpop.xlane.xlu1 %3363 }
 0xd10   :  { %v3410_v12 = vadd.f32 %v3367_v8, %v3364_v36  ;;  %v3019_v8 = vmul.f32 %v7901_v7, %v7313_v16  ;;  %v3529_v36 = vmul.f32 %v7902_v26, %v7149_v63 }
 0xd11   :  { %3747 = vadd.xlane.f32.xlu0 %v3746_v31 }
 0xd12   :  { %v3031_v62 = vpop.xlane.xlu0 %3030  ;;  %3228 = vadd.xlane.f32.xlu1 %v3227_v33  ;;  %v3065_v33 = vsel %vm1871_vm2, %v3019_v8, 0.0  ;;  %v3569_v41 = vsel %vm1871_vm2, %v3529_v36, 0.0  ;;  %v7905_v8 = vld [vmem:[#allocation92_spill] sm:$0xff]  ;;  %v7906_v36 = vld [vmem:[#allocation70_spill] sm:$0xff] }
 0xd13   :  { %v3535_v19 = vpop.xlane.xlu1 %3534 }
 0xd14   :  { %v3581_v40 = vadd.f32 %v3538_v2, %v3535_v19  ;;  %v7903_v2 = vld [vmem:[#allocation90_spill] sm:$0xff] }
 0xd15   :  { %2895 = vadd.xlane.f32.xlu0 %v2894_v49  ;;  %v3190_v19 = vmul.f32 %v7903_v2, %v7313_v16  ;;  %v7904_v49 = vld [vmem:[#allocation62_spill] sm:$0xff]  ;;  %v2847_v2 = vmul.f32 %v7906_v36, %v7237_v28 }
 0xd16   :  { %v3202_v31 = vpop.xlane.xlu0 %3201  ;;  %3399 = vadd.xlane.f32.xlu1 %v3398_v37  ;;  %v3701_v7 = vmul.f32 %v7904_v49, %v7219_v11  ;;  %v3068_v11 = vadd.f32 %v7311_v38, %v3022_v25 }
 0xd17   :  { %v3709_v0 = vpop.xlane.xlu1 %3708 }
 0xd18   :  { %v3752_v4 = vadd.f32 %v3709_v0, %v7293_v22  ;;  %v3236_v22 = vsel %vm1871_vm2, %v3190_v19, 0.0  ;;  %v3361_v0 = vmul.f32 %v7905_v8, %v7313_v16  ;;  %v3532_v19 = vmul.f32 %v6984_v21, %v7313_v16 }
 0xd19   :  { %3066 = vadd.xlane.f32.xlu0 %v3065_v33  ;;  %v3743_v33 = vsel %vm1871_vm2, %v3701_v7, 0.0  ;;  %v7907_v7 = vld [vmem:[#allocation72_spill] sm:$0xff] }
 0xd1a   :  { %v3373_v27 = vpop.xlane.xlu0 %3372  ;;  %3570 = vadd.xlane.f32.xlu1 %v3569_v41  ;;  %v3753_v63 = vadd.f32 %v3752_v4, %v3712_v17  ;;  %v3407_v4 = vsel %vm1871_vm2, %v3361_v0, 0.0  ;;  %v2891_v41 = vsel %vm1871_vm2, %v2847_v2, 0.0  ;;  %v7908_v0 = vld [vmem:[#allocation74_spill] sm:$0xff] }
 0xd1b   :  { %v2857_v37 = vpop.xlane.xlu1 %2856 }
 0xd1c   :  { %v2898_v26 = vadd.f32 %v2897_v23, %v2857_v37  ;;  %v3018_v23 = vmul.f32 %v7907_v7, %v7237_v28 }
 0xd1d   :  { %3237 = vadd.xlane.f32.xlu0 %v3236_v22 }
 0xd1e   :  { %v3544_v49 = vpop.xlane.xlu0 %3543  ;;  %3744 = vadd.xlane.f32.xlu1 %v3743_v33  ;;  %v2899_v29 = vadd.f32 %v2898_v26, %v2860_v48  ;;  %v2747_v48 = vld [vmem:[%s7630_s4 + $0x2f8] sm:$0xff]  ;;  %v3578_v26 = vsel %vm1871_vm2, %v3532_v19, 0.0  ;;  %v3062_v21 = vsel %vm1871_vm2, %v3018_v23, 0.0  ;;  %v3189_v33 = vmul.f32 %v7908_v0, %v7237_v28  ;;  %s4254_s4 = smov 1  }
 0xd1f   :  { %v3028_v43 = vpop.xlane.xlu1 %3027  ;;  %v3703_v8 = vmul.f32 %v2747_v48, %v7313_v16  ;;  %v3618_v0 = vmul.f32 %v2747_v48, %v6913_v56 }
 0xd20   :  { %v3069_v17 = vadd.f32 %v3068_v11, %v3028_v43 }
 0xd21   :  { %3408 = vadd.xlane.f32.xlu0 %v3407_v4  ;;  %v3749_v43 = vsel %vm1871_vm2, %v3703_v8, 0.0 }
 0xd22   :  { %v3718_v37 = vpop.xlane.xlu0 %3717  ;;  %2892 = vadd.xlane.f32.xlu1 %v2891_v41  ;;  %v3070_v22 = vadd.f32 %v3069_v17, %v3031_v62  ;;  %v7909_v17 = vld [vmem:[#allocation76_spill] sm:$0xff] }
 0xd23   :  { %v3199_v38 = vpop.xlane.xlu1 %3198  ;;  %v3360_v4 = vmul.f32 %v7909_v17, %v7237_v28 }
 0xd24   :  { %v3240_v25 = vadd.f32 %v3239_v30, %v3199_v38  ;;  %v3233_v30 = vsel %vm1871_vm2, %v3189_v33, 0.0  ;;  %v7910_v38 = vld [vmem:[#allocation84_spill] sm:$0xff] }
 0xd25   :  { %3579 = vadd.xlane.f32.xlu0 %v3578_v26  ;;  %v3404_v23 = vsel %vm1871_vm2, %v3360_v4, 0.0 }
 0xd26   :  { %v2866_v36 = vpop.xlane.xlu0 %2865  ;;  %3063 = vadd.xlane.f32.xlu1 %v3062_v21  ;;  %v3241_v2 = vadd.f32 %v3240_v25, %v3202_v31  ;;  %v3531_v31 = vmul.f32 %v7910_v38, %v7237_v28 }
 0xd27   :  { %v3370_v62 = vpop.xlane.xlu1 %3369 }
 0xd28   :  { %v3411_v11 = vadd.f32 %v3410_v12, %v3370_v62  ;;  %v3575_v21 = vsel %vm1871_vm2, %v3531_v31, 0.0 }
 0xd29   :  { %3750 = vadd.xlane.f32.xlu0 %v3749_v43 }
 0xd2a   :  { %v3037_v16 = vpop.xlane.xlu0 %3036  ;;  %3234 = vadd.xlane.f32.xlu1 %v3233_v30  ;;  %v3412_v19 = vadd.f32 %v3411_v11, %v3373_v27 }
 0xd2b   :  { %v3541_v41 = vpop.xlane.xlu1 %3540 }
 0xd2c   :  { %v3582_v7 = vadd.f32 %v3581_v40, %v3541_v41  ;;  %v3664_v40 = vsel %vm1871_vm2, %v3618_v0, 0.0 }
 0xd2e   :  { %v3208_v25 = vpop.xlane.xlu0 %3207  ;;  %3405 = vadd.xlane.f32.xlu1 %v3404_v23  ;;  %v3583_v12 = vadd.f32 %v3582_v7, %v3544_v49 }
 0xd2f   :  { %v3715_v26 = vpop.xlane.xlu1 %3714 }
 0xd30   :  { %v3754_v8 = vadd.f32 %v3753_v63, %v3715_v26 }
 0xd32   :  { %v3379_v33 = vpop.xlane.xlu0 %3378  ;;  %3576 = vadd.xlane.f32.xlu1 %v3575_v21  ;;  %v3755_v62 = vadd.f32 %v3754_v8, %v3718_v37 }
 0xd33   :  { %v2863_v27 = vpop.xlane.xlu1 %2862 }
 0xd34   :  { %v2900_v11 = vadd.f32 %v2899_v29, %v2863_v27 }
 0xd36   :  { %v3550_v43 = vpop.xlane.xlu0 %3549  ;;  %3665 = vadd.xlane.f32.xlu1 %v3664_v40  ;;  %v2901_v30 = vadd.f32 %v2900_v11, %v2866_v36 }
 0xd37   :  { %v3034_v28 = vpop.xlane.xlu1 %3033 }
 0xd38   :  { %v3071_v17 = vadd.f32 %v3070_v22, %v3034_v28 }
 0xd3a   :  { %v3724_v4 = vpop.xlane.xlu0 %3723  ;;  %v3072_v49 = vadd.f32 %v3071_v17, %v3037_v16 }
 0xd3b   :  { %v3205_v41 = vpop.xlane.xlu1 %3204 }
 0xd3c   :  { %v3242_v63 = vadd.f32 %v3241_v2, %v3205_v41 }
 0xd3e   :  { %v2872_v7 = vpop.xlane.xlu0 %2871  ;;  %v3243_v23 = vadd.f32 %v3242_v63, %v3208_v25 }
 0xd3f   :  { %v3376_v38 = vpop.xlane.xlu1 %3375 }
 0xd40   :  { %v3413_v56 = vadd.f32 %v3412_v19, %v3376_v38 }
 0xd42   :  { %v3043_v48 = vpop.xlane.xlu0 %3042  ;;  %v3414_v31 = vadd.f32 %v3413_v56, %v3379_v33 }
 0xd43   :  { %v3547_v37 = vpop.xlane.xlu1 %3546 }
 0xd44   :  { %v3584_v26 = vadd.f32 %v3583_v12, %v3547_v37 }
 0xd46   :  { %v3214_v29 = vpop.xlane.xlu0 %3213  ;;  %v3585_v8 = vadd.f32 %v3584_v26, %v3550_v43 }
 0xd47   :  { %v3721_v21 = vpop.xlane.xlu1 %3720 }
 0xd48   :  { %v3756_v0 = vadd.f32 %v3755_v62, %v3721_v21 }
 0xd4a   :  { %v3385_v27 = vpop.xlane.xlu0 %3384  ;;  %v3757_v36 = vadd.f32 %v3756_v0, %v3724_v4 }
 0xd4b   :  { %v2869_v11 = vpop.xlane.xlu1 %2868 }
 0xd4c   :  { %v2902_v22 = vadd.f32 %v2901_v30, %v2869_v11 }
 0xd4e   :  { %v3556_v40 = vpop.xlane.xlu0 %3555  ;;  %v2903_v16 = vadd.f32 %v2902_v22, %v2872_v7 }
 0xd4f   :  { %v3040_v28 = vpop.xlane.xlu1 %3039 }
 0xd50   :  { %v3073_v2 = vadd.f32 %v3072_v49, %v3040_v28 }
 0xd52   :  { %v3730_v17 = vpop.xlane.xlu0 %3729  ;;  %v7398_v25 = vadd.f32 %v3073_v2, %v3043_v48 }
 0xd53   :  { %v3211_v19 = vpop.xlane.xlu1 %3210 }
 0xd54   :  { %v3244_v41 = vadd.f32 %v3243_v23, %v3211_v19 }
 0xd56   :  { %v2878_v33 = vpop.xlane.xlu0 %2877  ;;  %v7400_v63 = vadd.f32 %v3244_v41, %v3214_v29 }
 0xd57   :  { %v3382_v12 = vpop.xlane.xlu1 %3381 }
 0xd58   :  { %v3415_v43 = vadd.f32 %v3414_v31, %v3382_v12 }
 0xd5a   :  { %v7402_v38 = vpop.xlane.xlu0 %3048  ;;  %v7404_v62 = vadd.f32 %v3415_v43, %v3385_v27 }
 0xd5b   :  { %v3553_v4 = vpop.xlane.xlu1 %3552 }
 0xd5c   :  { %v3586_v30 = vadd.f32 %v3585_v8, %v3553_v4 }
 0xd5e   :  { %v7406_v56 = vpop.xlane.xlu0 %3219  ;;  %v7408_v7 = vadd.f32 %v3586_v30, %v3556_v40 }
 0xd5f   :  { %v3727_v49 = vpop.xlane.xlu1 %3726 }
 0xd60   :  { %7911 = vst [vmem:[#allocation22_spill] sm:$0xff] %v7408_v7  ;;  %v3758_v48 = vadd.f32 %v3757_v36, %v3727_v49  ;;  %v7921_v49 = vld [vmem:[#allocation21_spill] sm:$0xff] }
 0xd62   :  { %v7410_v37 = vpop.xlane.xlu0 %3390  ;;  %v7412_v23 = vadd.f32 %v3758_v48, %v3730_v17  ;;  %v7922_v48 = vld [vmem:[#allocation38_spill] sm:$0xff] }
 0xd63   :  { %7912 = vst [vmem:[#allocation10_spill] sm:$0xff] %v7410_v37  ;;  %v2875_v26 = vpop.xlane.xlu1 %2874 }
 0xd64   :  { %v2904_v29 = vadd.f32 %v2903_v16, %v2875_v26  ;;  %v2812_v26 = vadd.f32 %v7922_v48, %v7921_v49 }
 0xd66   :  { %v7414_v21 = vpop.xlane.xlu0 %3561  ;;  %v2905_v31 = vadd.f32 %v2904_v29, %v2878_v33 }
 0xd67   :  { %7913 = vst [vmem:[#allocation24_spill] sm:$0xff] %v7414_v21  ;;  %v7416_v0 = vpop.xlane.xlu1 %3045  ;;  %v7924_v21 = vld [vmem:[#allocation39_spill] sm:$0xff] }
 0xd6a   :  { %v7418_v27 = vpop.xlane.xlu0 %3735 }
 0xd6b   :  { %v7420_v8 = vpop.xlane.xlu1 %3216 }
 0xd6e   :  { %v2884_v11 = vpop.xlane.xlu0 %2883 }
 0xd6f   :  { %v7422_v22 = vpop.xlane.xlu1 %3387 }
 0xd72   :  { %v7424_v40 = vpop.xlane.xlu0 %3054 }
 0xd73   :  { %7914 = vst [vmem:[#allocation12_spill] sm:$0xff] %v7424_v40  ;;  %v7426_v36 = vpop.xlane.xlu1 %3558  ;;  %v7937_v40 = vld [vmem:[#allocation64_spill] sm:$0xff] }
 0xd74   :  { %7915 = vst [vmem:[#allocation26_spill] sm:$0xff] %v7426_v36  ;;  %v7932_v36 = vld [vmem:[#allocation45_spill] sm:$0xff] }
 0xd76   :  { %v7428_v28 = vpop.xlane.xlu0 %3225 }
 0xd77   :  { %7916 = vst [vmem:[#allocation14_spill] sm:$0xff] %v7428_v28  ;;  %v7430_v2 = vpop.xlane.xlu1 %3732  ;;  %v2813_v28 = vadd.f32 %v2812_v26, %v7924_v21  ;;  %v7936_v26 = vld [vmem:[#allocation48_spill] sm:$0xff] }
 0xd7a   :  { %v7432_v16 = vpop.xlane.xlu0 %3396 }
 0xd7b   :  { %7917 = vst [vmem:[#allocation33_spill] sm:$0xff] %v7432_v16  ;;  %v2881_v17 = vpop.xlane.xlu1 %2880 }
 0xd7c   :  { %v2906_v19 = vadd.f32 %v2905_v31, %v2881_v17  ;;  %v7926_v31 = vld [vmem:[#allocation25_spill] sm:$0xff]  ;;  %v7927_v17 = vld [vmem:[#allocation27_spill] sm:$0xff] }
 0xd7e   :  { %v7434_v41 = vpop.xlane.xlu0 %3567  ;;  %v2907_v33 = vadd.f32 %v2906_v19, %v2884_v11  ;;  %v7928_v11 = vld [vmem:[#allocation46_spill] sm:$0xff] }
 0xd7f   :  { %7918 = vst [vmem:[#allocation15_spill] sm:$0xff] %v7434_v41  ;;  %v7436_v12 = vpop.xlane.xlu1 %3051  ;;  %v2983_v41 = vadd.f32 %v7927_v17, %v7926_v31  ;;  %v2814_v19 = vadd.f32 %v2813_v28, %v7928_v11  ;;  %v7939_v28 = vld [vmem:[#allocation31_spill] sm:$0xff]  ;;  %v7940_v17 = vld [vmem:[#allocation32_spill] sm:$0xff] }
 0xd80   :  { %v3325_v11 = vadd.f32 %v7940_v17, %v7939_v28  ;;  %v7951_v17 = vld [vmem:[#allocation53_spill] sm:$0xff] }
 0xd81   :  { %v2984_v9 = vadd.f32 %v2983_v41, %v7932_v36  ;;  %v2815_v49 = vadd.f32 %v2814_v19, %v7933_v34  ;;  %v7943_v36 = vld [vmem:[#allocation78_spill] sm:$0xff]  ;;  %v7944_v34 = vld [vmem:[#allocation49_spill] sm:$0xff] }
 0xd82   :  { %v7438_v43 = vpop.xlane.xlu0 %3741  ;;  %v3326_v19 = vadd.f32 %v3325_v11, %v7944_v34  ;;  %v7954_v34 = vld [vmem:[#allocation43_spill] sm:$0xff] }
 0xd83   :  { %7919 = vst [vmem:[#allocation44_spill] sm:$0xff] %v7438_v43  ;;  %v7440_v4 = vpop.xlane.xlu1 %3222  ;;  %v7930_v43 = vld [vmem:[#allocation29_spill] sm:$0xff] }
 0xd84   :  { %7920 = vst [vmem:[#allocation16_spill] sm:$0xff] %v7440_v4  ;;  %v3154_v7 = vadd.f32 %v7931_v60, %v7930_v43  ;;  %v2816_v4 = vadd.f32 %v2815_v49, %v7937_v40  ;;  %v7942_v60 = vld [vmem:[#allocation63_spill] sm:$0xff]  ;;  %v7948_v40 = vld [vmem:[#allocation81_spill] sm:$0xff] }
 0xd86   :  { %v2890_v30 = vpop.xlane.xlu0 %2889  ;;  %v2817_v41 = vadd.f32 %v2816_v4, %v7943_v36  ;;  %v7953_v4 = vld [vmem:[#allocation80_spill] sm:$0xff] }
 0xd87   :  { %v7444_v29 = vpop.xlane.xlu1 %3393 }
 0xd88   :  { %7923 = vst [vmem:[#allocation54_spill] sm:$0xff] %v7444_v29  ;;  %v7935_v29 = vld [vmem:[#allocation47_spill] sm:$0xff]  ;;  %v2818_v49 = vadd.f32 %v2817_v41, %v7948_v40 }
 0xd89   :  { %v3155_v21 = vadd.f32 %v3154_v7, %v7935_v29  ;;  %v7946_v7 = vld [vmem:[#allocation65_spill] sm:$0xff] }
 0xd8a   :  { %v7447_v16 = vpop.xlane.xlu0 %3060  ;;  %v2819_v11 = vadd.f32 %v2818_v49, %v6967_v32  ;;  %v7960_v32 = vld [vmem:[#allocation57_spill] sm:$0xff] }
 0xd8b   :  { %7925 = vst [vmem:[#allocation17_spill] sm:$0xff] %v7447_v16  ;;  %v7452_v37 = vpop.xlane.xlu1 %3564  ;;  %v2985_v16 = vadd.f32 %v2984_v9, %v7936_v26  ;;  %v7947_v9 = vld [vmem:[#allocation66_spill] sm:$0xff] }
 0xd8c   :  { %7929 = vst [vmem:[#allocation56_spill] sm:$0xff] %v7452_v37  ;;  %v7941_v37 = vld [vmem:[#allocation50_spill] sm:$0xff] }
 0xd8d   :  { %v3156_v52 = vadd.f32 %v3155_v21, %v7941_v37  ;;  %v2986_v43 = vadd.f32 %v2985_v16, %v7942_v60  ;;  %v3327_v37 = vadd.f32 %v3326_v19, %v7951_v17  ;;  %v7952_v16 = vld [vmem:[#allocation69_spill] sm:$0xff]  ;;  %v7958_v19 = vld [vmem:[#allocation23_spill] sm:$0xff] }
 0xd8e   :  { %v7458_v48 = vpop.xlane.xlu0 %3231 }
 0xd8f   :  { %7934 = vst [vmem:[#allocation19_spill] sm:$0xff] %v7458_v48  ;;  %v7463_v31 = vpop.xlane.xlu1 %3738  ;;  %v3157_v29 = vadd.f32 %v3156_v52, %v7946_v7  ;;  %v2987_v26 = vadd.f32 %v2986_v43, %v7947_v9  ;;  %v7955_v52 = vld [vmem:[#allocation68_spill] sm:$0xff]  ;;  %v7956_v9 = vld [vmem:[#allocation82_spill] sm:$0xff] }
 0xd90   :  { %7938 = vst [vmem:[#allocation58_spill] sm:$0xff] %v7463_v31  ;;  %v7949_v31 = vld [vmem:[#allocation34_spill] sm:$0xff]  ;;  %v3328_v7 = vadd.f32 %v3327_v37, %v7955_v52 }
 0xd91   :  { %v3496_v28 = vadd.f32 %v7950_v59, %v7949_v31  ;;  %v3158_v60 = vadd.f32 %v3157_v29, %v7952_v16  ;;  %v2988_v36 = vadd.f32 %v2987_v26, %v7953_v4  ;;  %v7957_v59 = vld [vmem:[#allocation83_spill] sm:$0xff]  ;;  %v7959_v29 = vld [vmem:[#allocation42_spill] sm:$0xff] }
 0xd92   :  { %v7471_v48 = vpop.xlane.xlu0 %3402  ;;  %v3667_v26 = vadd.f32 %v7959_v29, %v7958_v19  ;;  %v7962_v37 = vld [vmem:[#allocation86_spill] sm:$0xff]  ;;  %v7963_v4 = vld [vmem:[#allocation95_spill] sm:$0xff]  ;;  %v7968_v29 = vld [vmem:[#allocation97_spill] sm:$0xff] }
 0xd93   :  { %7945 = vst [vmem:[#allocation28_spill] sm:$0xff] %v7471_v48  ;;  %v2887_v46 = vpop.xlane.xlu1 %2886  ;;  %v3497_v48 = vadd.f32 %v3496_v28, %v7954_v34  ;;  %v3159_v40 = vadd.f32 %v3158_v60, %v7956_v9  ;;  %v2989_v31 = vadd.f32 %v2988_v36, %v7957_v59  ;;  %v7961_v28 = vld [vmem:[#allocation73_spill] sm:$0xff]  ;;  %v7964_v60 = vld [vmem:[#allocation52_spill] sm:$0xff] }
 0xd94   :  { %v2908_v21 = vadd.f32 %v2907_v33, %v2887_v46  ;;  %v2820_v46 = vadd.f32 %v2819_v11, %v6976_v42  ;;  %v3329_v17 = vadd.f32 %v3328_v7, %v7961_v28  ;;  %v3668_v34 = vadd.f32 %v3667_v26, %v7964_v60  ;;  %v7965_v36 = vld [vmem:[#allocation61_spill] sm:$0xff]  ;;  %v7967_v59 = vld [vmem:[#allocation96_spill] sm:$0xff]  ;;  %v7973_v60 = vld [vmem:[#allocation79_spill] sm:$0xff] }
 0xd95   :  { %v3498_v49 = vadd.f32 %v3497_v48, %v7960_v32  ;;  %v3160_v16 = vadd.f32 %v3159_v40, %v7962_v37  ;;  %v7966_v42 = vld [vmem:[#allocation85_spill] sm:$0xff]  ;;  %v7969_v40 = vld [vmem:[#allocation55_spill] sm:$0xff] }
 0xd96   :  { %v7484_v43 = vpop.xlane.xlu0 %3573  ;;  %v7486_v41 = vadd.f32 %v2908_v21, %v2890_v30  ;;  %v2990_v30 = vadd.f32 %v2989_v31, %v7963_v4  ;;  %v2821_v21 = vadd.f32 %v2820_v46, %v7058_v14  ;;  %v3330_v11 = vadd.f32 %v3329_v17, %v7966_v42  ;;  %v7970_v28 = vld [vmem:[#allocation77_spill] sm:$0xff]  ;;  %v7972_v4 = vld [vmem:[#allocation71_spill] sm:$0xff] }
 0xd97   :  { %v7491_v33 = vpop.xlane.xlu1 %3057  ;;  %v3499_v52 = vadd.f32 %v3498_v49, %v7965_v36  ;;  %v3161_v19 = vadd.f32 %v3160_v16, %v7967_v59  ;;  %v3669_v31 = vadd.f32 %v3668_v34, %v7969_v40  ;;  %v7971_v46 = vld [vmem:[#allocation89_spill] sm:$0xff] }
 0xd98   :  { %v2991_v48 = vadd.f32 %v2990_v30, %v7968_v29  ;;  %v2822_v7 = vadd.f32 %v2821_v21, %v7075_v51  ;;  %v3331_v26 = vadd.f32 %v3330_v11, %v7971_v46  ;;  %v3075_v21 = vadd.f32 %v7398_v25, %v7416_v0  ;;  %v7975_v11 = vld [vmem:[#allocation93_spill] sm:$0xff] }
 0xd99   :  { %v3500_v14 = vadd.f32 %v3499_v52, %v7970_v28  ;;  %v3162_v49 = vadd.f32 %v3161_v19, %v7003_v55  ;;  %v3670_v16 = vadd.f32 %v3669_v31, %v7972_v4  ;;  %v3417_v46 = vadd.f32 %v7404_v62, %v7422_v22  ;;  %v7985_v22 = vld [vmem:[#allocation105_spill] sm:$0xff] }
 0xd9a   :  { %v7503_v9 = vpop.xlane.xlu0 %3747  ;;  %v2992_v17 = vadd.f32 %v2991_v48, %v7073_v6  ;;  %v2823_v37 = vadd.f32 %v2822_v7, %v7154_v24  ;;  %v3332_v51 = vadd.f32 %v3331_v26, %v7001_v61  ;;  %v7974_v24 = vld [vmem:[#allocation75_spill] sm:$0xff]  ;;  %v3246_v48 = vadd.f32 %v7400_v63, %v7420_v8 }
 0xd9b   :  { %v7508_v32 = vpop.xlane.xlu1 %3228  ;;  %v3501_v30 = vadd.f32 %v3500_v14, %v7973_v60  ;;  %v3163_v36 = vadd.f32 %v3162_v49, %v7088_v45  ;;  %v3671_v42 = vadd.f32 %v3670_v16, %v7974_v24  ;;  %v3760_v45 = vadd.f32 %v7412_v23, %v7430_v2  ;;  %v7978_v8 = vld [vmem:[#allocation91_spill] sm:$0xff]  ;;  %v7979_v49 = vld [vmem:[#allocation13_spill] sm:$0xff] }
 0xd9c   :  { %v2993_v52 = vadd.f32 %v2992_v17, %v7095_v44  ;;  %v2824_v55 = vadd.f32 %v2823_v37, %v7169_v3  ;;  %v3333_v19 = vadd.f32 %v3332_v51, %v7023_v10  ;;  %v7976_v44 = vld [vmem:[#allocation94_spill] sm:$0xff]  ;;  %v3076_v7 = vadd.f32 %v3075_v21, %v7402_v38  ;;  %v7977_v10 = vld [vmem:[#allocation87_spill] sm:$0xff] }
 0xd9d   :  { %v3502_v59 = vadd.f32 %v3501_v30, %v7975_v11  ;;  %v3164_v61 = vadd.f32 %v3163_v36, %v7107_v20  ;;  %v3672_v20 = vadd.f32 %v3671_v42, %v7977_v10  ;;  %v7980_v17 = vld [vmem:[#allocation58_spill] sm:$0xff]  ;;  %v7984_v30 = vld [vmem:[#allocation12_spill] sm:$0xff]  ;;  %v7986_v51 = vld [vmem:[#allocation7_spill] sm:$0xff] }
 0xd9e   :  { %v7521_v34 = vpop.xlane.xlu0 %2895  ;;  %v2994_v25 = vadd.f32 %v2993_v52, %v7167_v5  ;;  %v2825_v0 = vadd.f32 %v2824_v55, %v7242_v47  ;;  %v3334_v3 = vadd.f32 %v3333_v19, %v7105_v54  ;;  %v3077_v63 = vadd.f32 %v3076_v7, %v7436_v12  ;;  %v7987_v36 = vld [vmem:[#allocation26_spill] sm:$0xff]  ;;  %v7989_v55 = vld [vmem:[#allocation99_spill] sm:$0xff] }
 0xd9f   :  { %v7526_v6 = vpop.xlane.xlu1 %3399  ;;  %v3503_v29 = vadd.f32 %v3502_v59, %v7976_v44  ;;  %v3165_v5 = vadd.f32 %v3164_v61, %v7180_v13  ;;  %v3673_v38 = vadd.f32 %v3672_v20, %v7978_v8  ;;  %v3761_v13 = vadd.f32 %v3760_v45, %v7418_v27  ;;  %v7981_v27 = vld [vmem:[#allocation98_spill] sm:$0xff]  ;;  %v7990_v42 = vld [vmem:[#allocation103_spill] sm:$0xff] }
 0xda0   :  { %v2995_v47 = vadd.f32 %v2994_v25, %v7185_v15  ;;  %v2826_v31 = vadd.f32 %v2825_v0, %v7255_v1  ;;  %v3335_v54 = vadd.f32 %v3334_v3, %v7123_v39  ;;  %v3078_v62 = vadd.f32 %v3077_v63, %v7984_v30  ;;  %v7991_v59 = vld [vmem:[#allocation10_spill] sm:$0xff]  ;;  %v7992_v0 = vld [vmem:[#allocation8_spill] sm:$0xff]  ;;  %v7994_v10 = vld [vmem:[#allocation11_spill] sm:$0xff] }
 0xda1   :  { %v3504_v2 = vadd.f32 %v3503_v29, %v7045_v18  ;;  %v3166_v28 = vadd.f32 %v3165_v5, %v7195_v50  ;;  %v3247_v18 = vadd.f32 %v3246_v48, %v7406_v56  ;;  %v3674_v4 = vadd.f32 %v3673_v38, %v7981_v27  ;;  %v7993_v3 = vld [vmem:[#allocation44_spill] sm:$0xff]  ;;  %v7995_v5 = vld [vmem:[#allocation54_spill] sm:$0xff] }
 0xda2   :  { %v7541_v40 = vpop.xlane.xlu0 %3066  ;;  %v2996_v14 = vadd.f32 %v2995_v47, %v7257_v35  ;;  %v3336_v1 = vadd.f32 %v3335_v54, %v7193_v58  ;;  %v2827_v26 = vrot.slane %v2826_v31, 4  ;;  %v3762_v35 = vadd.f32 %v3761_v13, %v7980_v17  ;;  %v7983_v58 = vld [vmem:[#allocation16_spill] sm:$0xff]  ;;  %v7997_v38 = vld [vmem:[#allocation18_spill] sm:$0xff] }
 0xda3   :  { %v7547_v23 = vpop.xlane.xlu1 %3570  ;;  %v3505_v15 = vadd.f32 %v3504_v2, %v7063_v53  ;;  %v3167_v12 = vadd.f32 %v3166_v28, %v7270_v57  ;;  %v7982_v53 = vld [vmem:[#allocation102_spill] sm:$0xff]  ;;  %v3248_v60 = vadd.f32 %v3247_v18, %v7983_v58  ;;  %v3675_v24 = vadd.f32 %v3674_v4, %v7989_v55  ;;  %v7998_v28 = vld [vmem:[#allocation24_spill] sm:$0xff]  ;;  %v8006_v55 = vld [vmem:[#allocation19_spill] sm:$0xff] }
 0xda4   :  { %v2997_v50 = vadd.f32 %v2996_v14, %v7979_v49  ;;  %v3337_v56 = vadd.f32 %v3336_v1, %v7985_v22  ;;  %v7988_v57 = vld [vmem:[#allocation22_spill] sm:$0xff]  ;;  %v3418_v19 = vadd.f32 %v3417_v46, %v7991_v59  ;;  %v3079_v61 = vadd.f32 %v3078_v62, %v7491_v33  ;;  %v8002_v27 = vld [vmem:[#allocation56_spill] sm:$0xff]  ;;  %v8007_v59 = vld [vmem:[#allocation15_spill] sm:$0xff] }
 0xda5   :  { %v3506_v16 = vadd.f32 %v3505_v15, %v7982_v53  ;;  %v3168_v21 = vadd.f32 %v3167_v12, %v7986_v51  ;;  %v3588_v52 = vadd.f32 %v7988_v57, %v7987_v36  ;;  %v2828_v44 = vadd.f32 %v2827_v26, %v2826_v31  ;;  %v7996_v2 = vld [vmem:[#allocation14_spill] sm:$0xff]  ;;  %v7999_v15 = vld [vmem:[#allocation100_spill] sm:$0xff]  ;;  %v8000_v12 = vld [vmem:[#allocation17_spill] sm:$0xff] }
 0xda6   :  { %v7561_v39 = vpop.xlane.xlu0 %3237  ;;  %v3338_v45 = vadd.f32 %v3337_v56, %v7992_v0  ;;  %v2998_v29 = vrot.slane %v2997_v50, 4  ;;  %v3763_v48 = vadd.f32 %v3762_v35, %v7993_v3  ;;  %v3419_v47 = vadd.f32 %v3418_v19, %v7995_v5  ;;  %v8001_v49 = vld [vmem:[#allocation6_spill] sm:$0xff] }
 0xda7   :  { %v3745_v37 = vpop.xlane.xlu1 %3744  ;;  %v3507_v11 = vadd.f32 %v3506_v16, %v7990_v42  ;;  %v3249_v54 = vadd.f32 %v3248_v60, %v7996_v2  ;;  %v3169_v8 = vrot.slane %v3168_v21, 4  ;;  %v3589_v14 = vadd.f32 %v3588_v52, %v7998_v28  ;;  %v8003_v16 = vld [vmem:[#allocation101_spill] sm:$0xff] }
 0xda8   :  { %v3339_v33 = vadd.f32 %v3338_v45, %v7997_v38  ;;  %v3764_v13 = vadd.f32 %v3763_v48, %v3745_v37  ;;  %v3676_v31 = vadd.f32 %v3675_v24, %v7999_v15  ;;  %v3080_v26 = vadd.f32 %v3079_v61, %v8000_v12  ;;  %v8004_v37 = vld [vmem:[#allocation33_spill] sm:$0xff] }
 0xda9   :  { %v3508_v20 = vadd.f32 %v3507_v11, %v7994_v10  ;;  %v3250_v1 = vadd.f32 %v3249_v54, %v7508_v32  ;;  %v2829_v35 = vrot.slane %v2828_v44, 2  ;;  %v3590_v4 = vadd.f32 %v3589_v14, %v8002_v27  ;;  %v8010_v2 = vld [vmem:[#allocation5_spill] sm:$0xff] }
 0xdaa   :  { %v7578_v25 = vpop.xlane.xlu0 %3408  ;;  %v3677_v58 = vadd.f32 %v3676_v31, %v8003_v16  ;;  %v3420_v60 = vadd.f32 %v3419_v47, %v8004_v37  ;;  %v3170_v32 = vadd.f32 %v3169_v8, %v3168_v21  ;;  %v3340_v22 = vrot.slane %v3339_v33, 4  ;;  %v8008_v21 = vld [vmem:[#allocation104_spill] sm:$0xff] }
 0xdab   :  { %v2893_v7 = vpop.xlane.xlu1 %2892  ;;  %v3509_v17 = vadd.f32 %v3508_v20, %v8001_v49  ;;  %v3765_v51 = vadd.f32 %v3764_v13, %v7503_v9  ;;  %v3251_v24 = vadd.f32 %v3250_v1, %v8006_v55  ;;  %v2830_v42 = vadd.f32 %v2829_v35, %v2828_v44  ;;  %v8009_v44 = vld [vmem:[#allocation28_spill] sm:$0xff] }
 0xdac   :  { %v2910_v63 = vadd.f32 %v7486_v41, %v2893_v7  ;;  %v2999_v41 = vadd.f32 %v2998_v29, %v2997_v50  ;;  %v3421_v36 = vadd.f32 %v3420_v60, %v7526_v6  ;;  %v3591_v19 = vadd.f32 %v3590_v4, %v8007_v59 }
 0xdad   :  { %v3678_v45 = vadd.f32 %v3677_v58, %v8008_v21  ;;  %v3171_v9 = vrot.slane %v3170_v32, 2  ;;  %v3341_v7 = vadd.f32 %v3340_v22, %v3339_v33 }
 0xdae   :  { %v2911_v46 = vadd.f32 %v2910_v63, %v7521_v34  ;;  %v7591_v18 = vpop.xlane.xlu0 %3579  ;;  %v8005_v34 = vld [vmem:[#allocation9_spill] sm:$0xff]  ;;  %v3000_v11 = vrot.slane %v2999_v41, 2  ;;  %v3592_v10 = vadd.f32 %v3591_v19, %v7547_v23  ;;  %v3422_v47 = vadd.f32 %v3421_v36, %v8009_v44 }
 0xdaf   :  { %v3064_v53 = vpop.xlane.xlu1 %3063  ;;  %v3510_v56 = vadd.f32 %v3509_v17, %v8005_v34  ;;  %v3679_v54 = vadd.f32 %v3678_v45, %v8010_v2  ;;  %v2831_v63 = vrot.slane %v2830_v42, 1  ;;  %v3172_v33 = vadd.f32 %v3171_v9, %v3170_v32  ;;  %v8011_v17 = vld [vmem:[#allocation20_spill] sm:$0xff] }
 0xdb0   :  { %v2912_v30 = vrot.slane %v2911_v46, 4  ;;  %v3081_v62 = vadd.f32 %v3080_v26, %v3064_v53  ;;  %v3001_v8 = vadd.f32 %v3000_v11, %v2999_v41  ;;  %v3342_v1 = vrot.slane %v3341_v7, 2 }
 0xdb1   :  { %v3511_v6 = vrot.slane %v3510_v56, 4  ;;  %v3593_v23 = vadd.f32 %v3592_v10, %v7484_v43  ;;  %v3680_v35 = vadd.f32 %v3679_v54, %v8011_v17  ;;  %v2832_v27 = vadd.f32 %v2831_v63, %v2830_v42 }
 0xdb2   :  { %v2913_v57 = vadd.f32 %v2912_v30, %v2911_v46  ;;  %v3082_v50 = vadd.f32 %v3081_v62, %v7541_v40  ;;  %v3751_v52 = vpop.xlane.xlu0 %3750  ;;  %v3002_v41 = vrot.slane %v3001_v8, 1  ;;  %v3173_v30 = vrot.slane %v3172_v33, 1 }
 0xdb3   :  { %v3766_v61 = vadd.f32 %v3765_v51, %v3751_v52  ;;  %v3235_v0 = vpop.xlane.xlu1 %3234  ;;  %v3512_v46 = vadd.f32 %v3511_v6, %v3510_v56  ;;  %v3343_v62 = vadd.f32 %v3342_v1, %v3341_v7 }
 0xdb4   :  { %v2914_v29 = vrot.slane %v2913_v57, 2  ;;  %v3083_v3 = vrot.slane %v3082_v50, 4  ;;  %v3252_v48 = vadd.f32 %v3251_v24, %v3235_v0  ;;  %v3003_v51 = vadd.f32 %v3002_v41, %v3001_v8 }
 0xdb5   :  { %v3767_v38 = vrot.slane %v3766_v61, 4  ;;  %v3513_v32 = vrot.slane %v3512_v46, 2  ;;  %v3174_v42 = vadd.f32 %v3173_v30, %v3172_v33  ;;  %v3344_v11 = vrot.slane %v3343_v62, 1 }
 0xdb6   :  { %v2915_v40 = vadd.f32 %v2914_v29, %v2913_v57  ;;  %v3084_v20 = vadd.f32 %v3083_v3, %v3082_v50  ;;  %v3253_v5 = vadd.f32 %v3252_v48, %v7561_v39 }
 0xdb7   :  { %v3406_v28 = vpop.xlane.xlu1 %3405  ;;  %v3768_v4 = vadd.f32 %v3767_v38, %v3766_v61  ;;  %v3514_v59 = vadd.f32 %v3513_v32, %v3512_v46  ;;  %v3345_v7 = vadd.f32 %v3344_v11, %v3343_v62 }
 0xdb8   :  { %v2916_v14 = vrot.slane %v2915_v40, 1  ;;  %v3085_v13 = vrot.slane %v3084_v20, 2  ;;  %v3254_v15 = vrot.slane %v3253_v5, 4  ;;  %v3423_v31 = vadd.f32 %v3422_v47, %v3406_v28 }
 0xdb9   :  { %v3769_v36 = vrot.slane %v3768_v4, 2  ;;  %v3515_v6 = vrot.slane %v3514_v59, 1 }
 0xdba   :  { %v3086_v12 = vadd.f32 %v3085_v13, %v3084_v20  ;;  %v3255_v26 = vadd.f32 %v3254_v15, %v3253_v5  ;;  %v3424_v39 = vadd.f32 %v3423_v31, %v7578_v25  ;;  %v2917_v49 = vadd.f32 %v2916_v14, %v2915_v40 }
 0xdbb   :  { %v3577_v53 = vpop.xlane.xlu1 %3576  ;;  %v3516_v54 = vadd.f32 %v3515_v6, %v3514_v59 }
 0xdbc   :  { %v3087_v16 = vrot.slane %v3086_v12, 1  ;;  %v3256_v58 = vrot.slane %v3255_v26, 2  ;;  %v3425_v37 = vrot.slane %v3424_v39, 4  ;;  %v3594_v60 = vadd.f32 %v3593_v23, %v3577_v53 }
 0xdbd   :  { %v2918_v43 = vsel %vm560_vm8, %v2832_v27, %v2917_v49 }
 0xdbe   :  { %v3257_v22 = vadd.f32 %v3256_v58, %v3255_v26  ;;  %v3426_v34 = vadd.f32 %v3425_v37, %v3424_v39  ;;  %v3595_v25 = vadd.f32 %v3594_v60, %v7591_v18  ;;  %v3088_v56 = vadd.f32 %v3087_v16, %v3086_v12  ;;  %v3995_v39 = vld [vmem:[%s7631_s5] ss:$0 sm:$0xff] }
 0xdbf   :  { %v3666_v57 = vpop.xlane.xlu1 %3665  ;;  %v3770_v18 = vadd.f32 %v3769_v36, %v3768_v4 }
 0xdc0   :  { %v3258_v50 = vrot.slane %v3257_v22, 1  ;;  %v3427_v52 = vrot.slane %v3426_v34, 2  ;;  %v3596_v55 = vrot.slane %v3595_v25, 4  ;;  %v3681_v24 = vadd.f32 %v3680_v35, %v3666_v57 }
 0xdc1   :  { %v3089_v19 = vsel %vm560_vm8, %v3003_v51, %v3088_v56  ;;  %v3771_v5 = vrot.slane %v3770_v18, 1 }
 0xdc2   :  { %v3428_v61 = vadd.f32 %v3427_v52, %v3426_v34  ;;  %v3597_v0 = vadd.f32 %v3596_v55, %v3595_v25  ;;  %v3682_v21 = vrot.slane %v3681_v24, 4  ;;  %3775 = vrot.lane.b32.xlu1 %v3089_v19, %s4254_s4  ;;  %v3259_v45 = vadd.f32 %v3258_v50, %v3257_v22 }
 0xdc3   :  { %v3772_v38 = vadd.f32 %v3771_v5, %v3770_v18 }
 0xdc4   :  { %v3429_v29 = vrot.slane %v3428_v61, 1  ;;  %v3598_v3 = vrot.slane %v3597_v0, 2  ;;  %v3683_v48 = vadd.f32 %v3682_v21, %v3681_v24  ;;  %v3260_v9 = vsel %vm560_vm8, %v3174_v42, %v3259_v45 }
 0xdc5   :  { %3779 = vrot.lane.b32.xlu0 %v3260_v9, %s4255_s1 }
 0xdc6   :  { %v3599_v10 = vadd.f32 %v3598_v3, %v3597_v0  ;;  %v3684_v40 = vrot.slane %v3683_v48, 2  ;;  %v3430_v20 = vadd.f32 %v3429_v29, %v3428_v61 }
 0xdc8   :  { %v3600_v44 = vrot.slane %v3599_v10, 1  ;;  %v3685_v47 = vadd.f32 %v3684_v40, %v3683_v48  ;;  %v3431_v2 = vsel %vm560_vm8, %v3345_v7, %v3430_v20 }
 0xdc9   :  { %3783 = vrot.lane.b32.xlu1 %v3431_v2, %s4256_s11 }
 0xdca   :  { %v3686_v63 = vrot.slane %v3685_v47, 1  ;;  %v3601_v8 = vadd.f32 %v3600_v44, %v3599_v10 }
 0xdcc   :  { %v3687_v28 = vadd.f32 %v3686_v63, %v3685_v47  ;;  %v3602_v14 = vsel %vm560_vm8, %v3516_v54, %v3601_v8 }
 0xdcd   :  { %3787 = vrot.lane.b32.xlu1 %v3602_v14, %s4257_s13 }
 0xdce   :  { %v3773_v13 = vsel %vm560_vm8, %v3687_v28, %v3772_v38  ;;  %vm3811_vm8 = vcmask 41984  }
 0xdcf   :  { %3791 = vrot.lane.b32.xlu0 %v3773_v13, %s4258_s14 }
 0xe34   :  { %v3776_v15 = vpop.permute.xlu1 %3775 }
 0xe35   :  { %v3795_v1 = vsel %vm3794_vm4, %v2918_v43, %v3776_v15 }
 0xe37   :  { %v3780_v31 = vpop.permute.xlu0 %3779 }
 0xe38   :  { %v3797_v46 = vsel %vm3796_vm14, %v3795_v1, %v3780_v31 }
 0xe3b   :  { %v3784_v33 = vpop.permute.xlu1 %3783 }
 0xe3c   :  { %v3798_v23 = vsel %vm599_vm3, %v3797_v46, %v3784_v33 }
 0xe3f   :  { %v3788_v12 = vpop.permute.xlu1 %3787 }
 0xe40   :  { %v3800_v26 = vsel %vm3799_vm10, %v3798_v23, %v3788_v12 }
 0xe41   :  { %v3792_v49 = vpop.permute.xlu0 %3791 }
 0xe42   :  { %v3802_v17 = vsel %vm3801_vm12, %v3800_v26, %v3792_v49 }
 0xe43   :  { %v3810_v35 = vadd.f32 %v3995_v39, %v3802_v17 }
 0xe45   :  { %3812 = vst.msk [vmem:[#allocation2] sm:$0x3] %vm3811_vm8, %v3810_v35 }
 0xe46   :  { %4230 = shalt.err (!%p4227_p4)
}
 0xe47   :  { %3822 = dma.vmem_to_hbm [thread:$0]  %s3820_s17, 32, %s7632_s6, [#allocation3]  }
 0xe48   :  { %4239 = dma.done.wait [#allocation3], 32  }
 0xe49   :  { %4240 = vsyncadd [#allocation3], 4294967264 }
 0xe4a   :  { %3826 = vsyncpa [#allocation3], 1 }

</bundles_post_ra>
